<compile_context>
chip_gen: v6e
topology: v6e:2x2x1
jax: 0.10.0
libtpu: 0.0.40
codegen_flags: <defaults>
</compile_context>

<pallas_src>
import numpy as np

import jax
import jax.numpy as jnp
from jax.experimental import pallas as pl
from jax.experimental.pallas import tpu as pltpu

# --- scaled-down (but structure-preserving) hyper-parameters ----------------
D_K = 32          # per-head key dim   (same as reference)
D_V = 32          # per-head value dim (same as reference)
N_HEADS = 4       # n_heads_hyper (reference: 16)
D_EMB = 128       # d_embedding   (reference: 512)
D_FF = 256        # d_ff          (reference: 1024)
SEQ = 8           # fixed by hyper.view(batch, heads, 8, d_k) in the reference
N_LAYERS = 1
LN_EPS = 1e-5
NEG = -1e9

TB = 16                  # sequences per grid step
ROWS = TB * SEQ          # 128 rows per tile -> full MXU row occupancy


def _encoder_layer_kernel(x_ref, bias_ref, hyper_ref,
                          wqkv_ref, bqkv_ref, wo_ref, w1_ref, c1_ref, w2_ref,
                          vec_ref, out_ref):
    x = x_ref[0]                                   # (ROWS, E) bf16
    x_f32 = x.astype(jnp.float32)

    # Fused Q|K|V projection: one (ROWS, 3*H*d_k) = (128, 384) MXU matmul.
    # 1/sqrt(d_k) is already folded into the Q columns / bias in the wrapper.
    qkv = (jnp.dot(x, wqkv_ref[...], preferred_element_type=jnp.float32)
           + bqkv_ref[...]).astype(jnp.bfloat16)   # (ROWS, 384) bf16

    # Precomputed per-tile additive bias: block-diagonal (a query row only
    # attends to keys of its own sequence) + key padding (-1e9).
    bias = bias_ref[0]                             # (ROWS, ROWS) f32

    KO = N_HEADS * D_K
    VO = 2 * N_HEADS * D_K

    ctx_heads = []
    for h in range(N_HEADS):                       # static, fully unrolled
        q_h = qkv[:, h * D_K:(h + 1) * D_K]                      # (ROWS, d_k)
        k_h = qkv[:, KO + h * D_K: KO + (h + 1) * D_K]           # (ROWS, d_k)
        v_h = qkv[:, VO + h * D_V: VO + (h + 1) * D_V]           # (ROWS, d_v)

        scores = jax.lax.dot_general(
            q_h, k_h, (((1,), (1,)), ((), ())),
            preferred_element_type=jnp.float32) + bias           # (ROWS, ROWS)
        m = jnp.max(scores, axis=-1, keepdims=True)
        e = jnp.exp(scores - m)
        p = (e * pl.reciprocal(jnp.sum(e, axis=-1, keepdims=True),
                               approx=True)).astype(jnp.bfloat16)
        ctx_heads.append(jnp.dot(p, v_h,
                                 preferred_element_type=jnp.float32))

    # Concatenate heads -> lane-dense (ROWS, H*d_v) = (128, 128), gate once,
    # then a single K=128 output projection (no per-head K=32 dots).
    ctx = jnp.concatenate(ctx_heads, axis=-1)                    # (ROWS, 128) f32
    ctx = (ctx * hyper_ref[0]).astype(jnp.bfloat16)
    attn = jnp.dot(ctx, wo_ref[...], preferred_element_type=jnp.float32)

    vec = vec_ref[...]                              # (6, E): bo,g1,b1,c2,g2,b2
    bo, g1, be1, c2, g2, be2 = (vec[i:i + 1] for i in range(6))

    # ---- output projection bias + residual + LayerNorm 1 (f32 stats) -------
    y1 = attn + bo + x_f32
    mu1 = jnp.mean(y1, axis=-1, keepdims=True)
    d1 = y1 - mu1
    var1 = jnp.mean(d1 * d1, axis=-1, keepdims=True)
    ln1 = d1 * jax.lax.rsqrt(var1 + LN_EPS) * g1 + be1

    # ---- position-wise FFN (1x1 convs == matmuls) + residual + LayerNorm 2 -
    h1 = jnp.maximum(
        jnp.dot(ln1.astype(jnp.bfloat16), w1_ref[...],
                preferred_element_type=jnp.float32) + c1_ref[...], 0.0)
    ffn = jnp.dot(h1.astype(jnp.bfloat16), w2_ref[...],
                  preferred_element_type=jnp.float32) + c2
    y2 = ffn + ln1
    mu2 = jnp.mean(y2, axis=-1, keepdims=True)
    d2 = y2 - mu2
    var2 = jnp.mean(d2 * d2, axis=-1, keepdims=True)
    ln2 = d2 * jax.lax.rsqrt(var2 + LN_EPS) * g2 + be2

    out_ref[0] = ln2.astype(out_ref.dtype)


def _encoder_layer(x_rows, bias, hyper_rows, weights):
    NB = x_rows.shape[0]

    in_specs = [
        pl.BlockSpec((1, ROWS, D_EMB), lambda b: (b, 0, 0)),            # x tile
        pl.BlockSpec((1, ROWS, ROWS), lambda b: (b, 0, 0)),             # bias
        pl.BlockSpec((1, ROWS, N_HEADS * D_V), lambda b: (b, 0, 0)),    # hyper
    ]
    for w in weights:                               # grid-invariant weight slabs
        in_specs.append(pl.BlockSpec(w.shape, lambda b, nd=w.ndim: (0,) * nd))

    return pl.pallas_call(
        _encoder_layer_kernel,
        out_shape=jax.ShapeDtypeStruct((NB, ROWS, D_EMB), jnp.bfloat16),
        grid=(NB,),
        in_specs=in_specs,
        out_specs=pl.BlockSpec((1, ROWS, D_EMB), lambda b: (b, 0, 0)),
        compiler_params=pltpu.CompilerParams(
            dimension_semantics=("parallel",)),
    )(x_rows, bias, hyper_rows, *weights)


@jax.jit
def transformer_hyper_forward(x, hyper, params):
    """Equivalent of Transformer_hyper.forward(enc_inputs, hyper)."""
    B, S, E = x.shape
    NB = -(-B // TB)
    B_pad = NB * TB
    if B_pad != B:                                  # pad batch to a tile multiple
        x = jnp.pad(x, ((0, B_pad - B), (0, 0), (0, 0)))
        hyper = jnp.pad(hyper, ((0, B_pad - B), (0, 0), (0, 0), (0, 0)))

    # Per-tile additive attention bias: block-diagonal (own-sequence keys only)
    # fused with the key-padding mask (token-proxy channel-0 == 0), built once
    # in the wrapper -> no mask construction inside the kernel.
    pad = (x[:, :, 0] == 0.0)                                   # (B_pad, S)
    kb = jnp.where(pad, NEG, 0.0).astype(jnp.float32).reshape(NB, 1, ROWS)
    r_seq = np.arange(ROWS)[:, None] // SEQ
    c_seq = np.arange(ROWS)[None, :] // SEQ
    same_seq = jnp.asarray(r_seq == c_seq)[None]                # (1, ROWS, ROWS)
    bias = jnp.where(same_seq, kb, NEG)                         # (NB, ROWS, ROWS)

    # Lane-dense, row-flattened activation / gate layouts.
    x_rows = x.astype(jnp.bfloat16).reshape(NB, ROWS, D_EMB)
    hyper_rows = (hyper.astype(jnp.float32)
                  .transpose(0, 2, 1, 3)                        # (B, S, H, d_v)
                  .reshape(NB, ROWS, N_HEADS * D_V))            # head-concat lanes

    # Weight slabs (layout plumbing outside the kernel).
    p = params
    scale = 1.0 / float(np.sqrt(D_K))
    wqkv = jnp.concatenate([p["wq"] * scale, p["wk"], p["wv"]],
                           axis=1).astype(jnp.bfloat16)         # (E, 3*H*d_k)
    bqkv = jnp.concatenate([p["bq"] * scale, p["bk"], p["bv"]], axis=1)  # (1,384)
    vec = jnp.concatenate([p["bo"], p["ln1_g"], p["ln1_b"],
                           p["c2"], p["ln2_g"], p["ln2_b"]], axis=0)     # (6, E)
    weights = (wqkv, bqkv,
               p["wo"].astype(jnp.bfloat16),
               p["w1"].astype(jnp.bfloat16), p["c1"],
               p["w2"].astype(jnp.bfloat16), vec)

    out = x_rows
    for _ in range(N_LAYERS):
        out = _encoder_layer(out, bias, hyper_rows, weights)    # bf16 output

    return out.astype(jnp.float32).reshape(B_pad, SEQ, D_EMB)[:B]


# --------------------------- pure-JAX reference ------------------------------
def reference_forward(x, hyper, p):
    B, S, E = x.shape
    pad = (x[:, :, 0] == 0.0)                                          # (B,S)
    out = x
    for _ in range(N_LAYERS):
        q = (out @ p["wq"] + p["bq"]).reshape(B, S, N_HEADS, D_K).transpose(0, 2, 1, 3)
        k = (out @ p["wk"] + p["bk"]).reshape(B, S, N_HEADS, D_K).transpose(0, 2, 1, 3)
        v = (out @ p["wv"] + p["bv"]).reshape(B, S, N_HEADS, D_V).transpose(0, 2, 1, 3)
        scores = jnp.einsum("bhqd,bhkd->bhqk", q, k) / np.sqrt(D_K)
        scores = jnp.where(pad[:, None, None, :], NEG, scores)
        w = jax.nn.softmax(scores, axis=-1)
        ctx = jnp.einsum("bhqk,bhkd->bhqd", w, v) * hyper
        ctx = ctx.transpose(0, 2, 1, 3).reshape(B, S, N_HEADS * D_V)
        attn_out = ctx @ p["wo"] + p["bo"]
        y1 = attn_out + out
        mu1 = y1.mean(-1, keepdims=True)
        var1 = jnp.square(y1 - mu1).mean(-1, keepdims=True)
        ln1 = (y1 - mu1) / jnp.sqrt(var1 + LN_EPS) * p["ln1_g"] + p["ln1_b"]
        h1 = jax.nn.relu(ln1 @ p["w1"] + p["c1"])
        ffn = h1 @ p["w2"] + p["c2"]
        y2 = ffn + ln1
        mu2 = y2.mean(-1, keepdims=True)
        var2 = jnp.square(y2 - mu2).mean(-1, keepdims=True)
        out = (y2 - mu2) / jnp.sqrt(var2 + LN_EPS) * p["ln2_g"] + p["ln2_b"]
    return out


# ------------------------- deterministic parameter init ----------------------
def init_params(key):
    keys = jax.random.split(key, 16)

    def w(k, shape, scale):
        return jax.random.normal(k, shape, jnp.float32) * scale

    return {
        "wq": w(keys[0], (D_EMB, N_HEADS * D_K), 1.0 / np.sqrt(D_EMB)),
        "bq": w(keys[1], (1, N_HEADS * D_K), 0.02),
        "wk": w(keys[2], (D_EMB, N_HEADS * D_K), 1.0 / np.sqrt(D_EMB)),
        "bk": w(keys[3], (1, N_HEADS * D_K), 0.02),
        "wv": w(keys[4], (D_EMB, N_HEADS * D_V), 1.0 / np.sqrt(D_EMB)),
        "bv": w(keys[5], (1, N_HEADS * D_V), 0.02),
        "wo": w(keys[6], (N_HEADS * D_V, D_EMB), 1.0 / np.sqrt(N_HEADS * D_V)),
        "bo": w(keys[7], (1, D_EMB), 0.02),
        "ln1_g": 1.0 + w(keys[8], (1, D_EMB), 0.02),
        "ln1_b": w(keys[9], (1, D_EMB), 0.02),
        "w1": w(keys[10], (D_EMB, D_FF), 1.0 / np.sqrt(D_EMB)),
        "c1": w(keys[11], (1, D_FF), 0.02),
        "w2": w(keys[12], (D_FF, D_EMB), 1.0 / np.sqrt(D_FF)),
        "c2": w(keys[13], (1, D_EMB), 0.02),
        "ln2_g": 1.0 + w(keys[14], (1, D_EMB), 0.02),
        "ln2_b": w(keys[15], (1, D_EMB), 0.02),
    }


if __name__ == "__main__":
    key = jax.random.PRNGKey(0)
    kx, kh, kp = jax.random.split(key, 3)

    B = 64                                   # 4 grid steps of TB=16 sequences
    x = jax.random.normal(kx, (B, SEQ, D_EMB), jnp.float32)
    # Plant a few zero "tokens" in channel 0 so the padding-mask path is hit.
    x = x.at[:, SEQ - 1, 0].set(0.0)
    x = x.at[1, SEQ - 2, 0].set(0.0)
    x = x.at[17, SEQ - 3, 0].set(0.0)

    hyper = jax.random.normal(kh, (B, N_HEADS, SEQ, D_K), jnp.float32)
    params = init_params(kp)

    out = transformer_hyper_forward(x, hyper, params)
    out = jax.block_until_ready(out)

    with jax.default_matmul_precision("highest"):
        ref = reference_forward(x, hyper, params)

    # Kernel uses bf16 matmul operands (f32 accumulation) and bf16 output vs.
    # a full-f32 reference, so use a bf16-appropriate tolerance.
    np.testing.assert_allclose(np.asarray(out), np.asarray(ref),
                               rtol=5e-2, atol=5e-2)
    print("KERNEL_OK")
</pallas_src>

<mosaic_0001>
module attributes {stable_mosaic.version = 11 : i64} {
  func.func @_encoder_layer_kernel(%arg0: i32, %arg1: memref<1x128x128xbf16, #tpu.memory_space<vmem>>, %arg2: memref<1x128x128xf32, #tpu.memory_space<vmem>>, %arg3: memref<1x128x128xf32, #tpu.memory_space<vmem>>, %arg4: memref<128x384xbf16, #tpu.memory_space<vmem>>, %arg5: memref<1x384xf32, #tpu.memory_space<vmem>>, %arg6: memref<128x128xbf16, #tpu.memory_space<vmem>>, %arg7: memref<128x256xbf16, #tpu.memory_space<vmem>>, %arg8: memref<1x256xf32, #tpu.memory_space<vmem>>, %arg9: memref<256x128xbf16, #tpu.memory_space<vmem>>, %arg10: memref<6x128xf32, #tpu.memory_space<vmem>>, %arg11: memref<1x128x128xbf16, #tpu.memory_space<vmem>>) attributes {dimension_semantics = [#tpu.dimension_semantics<parallel>], iteration_bounds = array<i64: 4>, scalar_prefetch = 0 : i64, scratch_operands = 0 : i64, tpu.core_type = #tpu.core_type<tc>, window_params = [{transform_indices = @transform_0, window_bounds = array<i64: 1, 128, 128>}, {transform_indices = @transform_1, window_bounds = array<i64: 1, 128, 128>}, {transform_indices = @transform_2, window_bounds = array<i64: 1, 128, 128>}, {pipeline_mode = #tpu.pipeline_mode<synchronous>, transform_indices = @transform_3, window_bounds = array<i64: 128, 384>}, {pipeline_mode = #tpu.pipeline_mode<synchronous>, transform_indices = @transform_4, window_bounds = array<i64: 1, 384>}, {pipeline_mode = #tpu.pipeline_mode<synchronous>, transform_indices = @transform_5, window_bounds = array<i64: 128, 128>}, {pipeline_mode = #tpu.pipeline_mode<synchronous>, transform_indices = @transform_6, window_bounds = array<i64: 128, 256>}, {pipeline_mode = #tpu.pipeline_mode<synchronous>, transform_indices = @transform_7, window_bounds = array<i64: 1, 256>}, {pipeline_mode = #tpu.pipeline_mode<synchronous>, transform_indices = @transform_8, window_bounds = array<i64: 256, 128>}, {pipeline_mode = #tpu.pipeline_mode<synchronous>, transform_indices = @transform_9, window_bounds = array<i64: 6, 128>}, {transform_indices = @transform_10, window_bounds = array<i64: 1, 128, 128>}]} {
    %c0 = arith.constant 0 : index
    %c0_0 = arith.constant 0 : index
    %c0_1 = arith.constant 0 : index
    %0 = vector.load %arg1[%c0, %c0_0, %c0_1] : memref<1x128x128xbf16, #tpu.memory_space<vmem>>, vector<1x128x128xbf16>
    %1 = vector.shape_cast %0 : vector<1x128x128xbf16> to vector<128x128xbf16>
    %2 = arith.extf %1 : vector<128x128xbf16> to vector<128x128xf32>
    %c0_2 = arith.constant 0 : index
    %c0_3 = arith.constant 0 : index
    %3 = vector.load %arg4[%c0_2, %c0_3] : memref<128x384xbf16, #tpu.memory_space<vmem>>, vector<128x384xbf16>
    %cst = arith.constant dense<0.000000e+00> : vector<128x384xf32>
    %4 = tpu.matmul %1, %3, %cst {dimension_numbers = #tpu.dot_dimension_numbers<[1], [0], [0], [1], [0, 0, 1, 1], [], []>} : vector<128x128xbf16>, vector<128x384xbf16>, vector<128x384xf32> -> vector<128x384xf32>
    %c0_4 = arith.constant 0 : index
    %c0_5 = arith.constant 0 : index
    %5 = vector.load %arg5[%c0_4, %c0_5] : memref<1x384xf32, #tpu.memory_space<vmem>>, vector<1x384xf32>
    %6 = vector.broadcast %5 : vector<1x384xf32> to vector<128x384xf32>
    %7 = arith.addf %4, %6 : vector<128x384xf32>
    %8 = arith.truncf %7 : vector<128x384xf32> to vector<128x384xbf16>
    %c0_6 = arith.constant 0 : index
    %c0_7 = arith.constant 0 : index
    %c0_8 = arith.constant 0 : index
    %9 = vector.load %arg2[%c0_6, %c0_7, %c0_8] : memref<1x128x128xf32, #tpu.memory_space<vmem>>, vector<1x128x128xf32>
    %10 = vector.shape_cast %9 : vector<1x128x128xf32> to vector<128x128xf32>
    %11 = vector.extract_strided_slice %8 {offsets = [0, 0], sizes = [128, 32], strides = [1, 1]} : vector<128x384xbf16> to vector<128x32xbf16>
    %12 = vector.extract_strided_slice %8 {offsets = [0, 128], sizes = [128, 32], strides = [1, 1]} : vector<128x384xbf16> to vector<128x32xbf16>
    %13 = vector.extract_strided_slice %8 {offsets = [0, 256], sizes = [128, 32], strides = [1, 1]} : vector<128x384xbf16> to vector<128x32xbf16>
    %cst_9 = arith.constant dense<0.000000e+00> : vector<128x128xf32>
    %14 = tpu.matmul %11, %12, %cst_9 {dimension_numbers = #tpu.dot_dimension_numbers<[1], [1], [0], [0], [0, 0, 1, 0], [], []>} : vector<128x32xbf16>, vector<128x32xbf16>, vector<128x128xf32> -> vector<128x128xf32>
    %15 = arith.addf %14, %10 : vector<128x128xf32>
    %cst_10 = arith.constant dense<0xFF800000> : vector<128xf32>
    %16 = vector.multi_reduction <maximumf>, %15, %cst_10 [1] : vector<128x128xf32> to vector<128xf32>
    %17 = vector.shape_cast %16 : vector<128xf32> to vector<128x1xf32>
    %18 = vector.broadcast %17 : vector<128x1xf32> to vector<128x128xf32>
    %19 = arith.subf %15, %18 : vector<128x128xf32>
    %20 = math.exp %19 : vector<128x128xf32>
    %cst_11 = arith.constant dense<0.000000e+00> : vector<128xf32>
    %21 = vector.multi_reduction <add>, %20, %cst_11 [1] : vector<128x128xf32> to vector<128xf32>
    %22 = vector.shape_cast %21 : vector<128xf32> to vector<128x1xf32>
    %23 = tpu.reciprocal %22 {approx = true} : vector<128x1xf32> -> vector<128x1xf32>
    %24 = vector.broadcast %23 : vector<128x1xf32> to vector<128x128xf32>
    %25 = arith.mulf %20, %24 : vector<128x128xf32>
    %26 = arith.truncf %25 : vector<128x128xf32> to vector<128x128xbf16>
    %cst_12 = arith.constant dense<0.000000e+00> : vector<128x32xf32>
    %27 = tpu.matmul %26, %13, %cst_12 {dimension_numbers = #tpu.dot_dimension_numbers<[1], [0], [0], [1], [0, 0, 1, 1], [], []>} : vector<128x128xbf16>, vector<128x32xbf16>, vector<128x32xf32> -> vector<128x32xf32>
    %28 = vector.extract_strided_slice %8 {offsets = [0, 32], sizes = [128, 32], strides = [1, 1]} : vector<128x384xbf16> to vector<128x32xbf16>
    %29 = vector.extract_strided_slice %8 {offsets = [0, 160], sizes = [128, 32], strides = [1, 1]} : vector<128x384xbf16> to vector<128x32xbf16>
    %30 = vector.extract_strided_slice %8 {offsets = [0, 288], sizes = [128, 32], strides = [1, 1]} : vector<128x384xbf16> to vector<128x32xbf16>
    %cst_13 = arith.constant dense<0.000000e+00> : vector<128x128xf32>
    %31 = tpu.matmul %28, %29, %cst_13 {dimension_numbers = #tpu.dot_dimension_numbers<[1], [1], [0], [0], [0, 0, 1, 0], [], []>} : vector<128x32xbf16>, vector<128x32xbf16>, vector<128x128xf32> -> vector<128x128xf32>
    %32 = arith.addf %31, %10 : vector<128x128xf32>
    %cst_14 = arith.constant dense<0xFF800000> : vector<128xf32>
    %33 = vector.multi_reduction <maximumf>, %32, %cst_14 [1] : vector<128x128xf32> to vector<128xf32>
    %34 = vector.shape_cast %33 : vector<128xf32> to vector<128x1xf32>
    %35 = vector.broadcast %34 : vector<128x1xf32> to vector<128x128xf32>
    %36 = arith.subf %32, %35 : vector<128x128xf32>
    %37 = math.exp %36 : vector<128x128xf32>
    %cst_15 = arith.constant dense<0.000000e+00> : vector<128xf32>
    %38 = vector.multi_reduction <add>, %37, %cst_15 [1] : vector<128x128xf32> to vector<128xf32>
    %39 = vector.shape_cast %38 : vector<128xf32> to vector<128x1xf32>
    %40 = tpu.reciprocal %39 {approx = true} : vector<128x1xf32> -> vector<128x1xf32>
    %41 = vector.broadcast %40 : vector<128x1xf32> to vector<128x128xf32>
    %42 = arith.mulf %37, %41 : vector<128x128xf32>
    %43 = arith.truncf %42 : vector<128x128xf32> to vector<128x128xbf16>
    %cst_16 = arith.constant dense<0.000000e+00> : vector<128x32xf32>
    %44 = tpu.matmul %43, %30, %cst_16 {dimension_numbers = #tpu.dot_dimension_numbers<[1], [0], [0], [1], [0, 0, 1, 1], [], []>} : vector<128x128xbf16>, vector<128x32xbf16>, vector<128x32xf32> -> vector<128x32xf32>
    %45 = vector.extract_strided_slice %8 {offsets = [0, 64], sizes = [128, 32], strides = [1, 1]} : vector<128x384xbf16> to vector<128x32xbf16>
    %46 = vector.extract_strided_slice %8 {offsets = [0, 192], sizes = [128, 32], strides = [1, 1]} : vector<128x384xbf16> to vector<128x32xbf16>
    %47 = vector.extract_strided_slice %8 {offsets = [0, 320], sizes = [128, 32], strides = [1, 1]} : vector<128x384xbf16> to vector<128x32xbf16>
    %cst_17 = arith.constant dense<0.000000e+00> : vector<128x128xf32>
    %48 = tpu.matmul %45, %46, %cst_17 {dimension_numbers = #tpu.dot_dimension_numbers<[1], [1], [0], [0], [0, 0, 1, 0], [], []>} : vector<128x32xbf16>, vector<128x32xbf16>, vector<128x128xf32> -> vector<128x128xf32>
    %49 = arith.addf %48, %10 : vector<128x128xf32>
    %cst_18 = arith.constant dense<0xFF800000> : vector<128xf32>
    %50 = vector.multi_reduction <maximumf>, %49, %cst_18 [1] : vector<128x128xf32> to vector<128xf32>
    %51 = vector.shape_cast %50 : vector<128xf32> to vector<128x1xf32>
    %52 = vector.broadcast %51 : vector<128x1xf32> to vector<128x128xf32>
    %53 = arith.subf %49, %52 : vector<128x128xf32>
    %54 = math.exp %53 : vector<128x128xf32>
    %cst_19 = arith.constant dense<0.000000e+00> : vector<128xf32>
    %55 = vector.multi_reduction <add>, %54, %cst_19 [1] : vector<128x128xf32> to vector<128xf32>
    %56 = vector.shape_cast %55 : vector<128xf32> to vector<128x1xf32>
    %57 = tpu.reciprocal %56 {approx = true} : vector<128x1xf32> -> vector<128x1xf32>
    %58 = vector.broadcast %57 : vector<128x1xf32> to vector<128x128xf32>
    %59 = arith.mulf %54, %58 : vector<128x128xf32>
    %60 = arith.truncf %59 : vector<128x128xf32> to vector<128x128xbf16>
    %cst_20 = arith.constant dense<0.000000e+00> : vector<128x32xf32>
    %61 = tpu.matmul %60, %47, %cst_20 {dimension_numbers = #tpu.dot_dimension_numbers<[1], [0], [0], [1], [0, 0, 1, 1], [], []>} : vector<128x128xbf16>, vector<128x32xbf16>, vector<128x32xf32> -> vector<128x32xf32>
    %62 = vector.extract_strided_slice %8 {offsets = [0, 96], sizes = [128, 32], strides = [1, 1]} : vector<128x384xbf16> to vector<128x32xbf16>
    %63 = vector.extract_strided_slice %8 {offsets = [0, 224], sizes = [128, 32], strides = [1, 1]} : vector<128x384xbf16> to vector<128x32xbf16>
    %64 = vector.extract_strided_slice %8 {offsets = [0, 352], sizes = [128, 32], strides = [1, 1]} : vector<128x384xbf16> to vector<128x32xbf16>
    %cst_21 = arith.constant dense<0.000000e+00> : vector<128x128xf32>
    %65 = tpu.matmul %62, %63, %cst_21 {dimension_numbers = #tpu.dot_dimension_numbers<[1], [1], [0], [0], [0, 0, 1, 0], [], []>} : vector<128x32xbf16>, vector<128x32xbf16>, vector<128x128xf32> -> vector<128x128xf32>
    %66 = arith.addf %65, %10 : vector<128x128xf32>
    %cst_22 = arith.constant dense<0xFF800000> : vector<128xf32>
    %67 = vector.multi_reduction <maximumf>, %66, %cst_22 [1] : vector<128x128xf32> to vector<128xf32>
    %68 = vector.shape_cast %67 : vector<128xf32> to vector<128x1xf32>
    %69 = vector.broadcast %68 : vector<128x1xf32> to vector<128x128xf32>
    %70 = arith.subf %66, %69 : vector<128x128xf32>
    %71 = math.exp %70 : vector<128x128xf32>
    %cst_23 = arith.constant dense<0.000000e+00> : vector<128xf32>
    %72 = vector.multi_reduction <add>, %71, %cst_23 [1] : vector<128x128xf32> to vector<128xf32>
    %73 = vector.shape_cast %72 : vector<128xf32> to vector<128x1xf32>
    %74 = tpu.reciprocal %73 {approx = true} : vector<128x1xf32> -> vector<128x1xf32>
    %75 = vector.broadcast %74 : vector<128x1xf32> to vector<128x128xf32>
    %76 = arith.mulf %71, %75 : vector<128x128xf32>
    %77 = arith.truncf %76 : vector<128x128xf32> to vector<128x128xbf16>
    %cst_24 = arith.constant dense<0.000000e+00> : vector<128x32xf32>
    %78 = tpu.matmul %77, %64, %cst_24 {dimension_numbers = #tpu.dot_dimension_numbers<[1], [0], [0], [1], [0, 0, 1, 1], [], []>} : vector<128x128xbf16>, vector<128x32xbf16>, vector<128x32xf32> -> vector<128x32xf32>
    %79 = tpu.concatenate %27, %44, %61, %78 in 1 : vector<128x32xf32>, vector<128x32xf32>, vector<128x32xf32>, vector<128x32xf32> -> vector<128x128xf32>
    %c0_25 = arith.constant 0 : index
    %c0_26 = arith.constant 0 : index
    %c0_27 = arith.constant 0 : index
    %80 = vector.load %arg3[%c0_25, %c0_26, %c0_27] : memref<1x128x128xf32, #tpu.memory_space<vmem>>, vector<1x128x128xf32>
    %81 = vector.shape_cast %80 : vector<1x128x128xf32> to vector<128x128xf32>
    %82 = arith.mulf %79, %81 : vector<128x128xf32>
    %83 = arith.truncf %82 : vector<128x128xf32> to vector<128x128xbf16>
    %c0_28 = arith.constant 0 : index
    %c0_29 = arith.constant 0 : index
    %84 = vector.load %arg6[%c0_28, %c0_29] : memref<128x128xbf16, #tpu.memory_space<vmem>>, vector<128x128xbf16>
    %cst_30 = arith.constant dense<0.000000e+00> : vector<128x128xf32>
    %85 = tpu.matmul %83, %84, %cst_30 {dimension_numbers = #tpu.dot_dimension_numbers<[1], [0], [0], [1], [0, 0, 1, 1], [], []>} : vector<128x128xbf16>, vector<128x128xbf16>, vector<128x128xf32> -> vector<128x128xf32>
    %c0_31 = arith.constant 0 : index
    %c0_32 = arith.constant 0 : index
    %86 = vector.load %arg10[%c0_31, %c0_32] : memref<6x128xf32, #tpu.memory_space<vmem>>, vector<6x128xf32>
    %87 = vector.extract_strided_slice %86 {offsets = [0, 0], sizes = [1, 128], strides = [1, 1]} : vector<6x128xf32> to vector<1x128xf32>
    %88 = vector.extract_strided_slice %86 {offsets = [1, 0], sizes = [1, 128], strides = [1, 1]} : vector<6x128xf32> to vector<1x128xf32>
    %89 = vector.extract_strided_slice %86 {offsets = [2, 0], sizes = [1, 128], strides = [1, 1]} : vector<6x128xf32> to vector<1x128xf32>
    %90 = vector.extract_strided_slice %86 {offsets = [3, 0], sizes = [1, 128], strides = [1, 1]} : vector<6x128xf32> to vector<1x128xf32>
    %91 = vector.extract_strided_slice %86 {offsets = [4, 0], sizes = [1, 128], strides = [1, 1]} : vector<6x128xf32> to vector<1x128xf32>
    %92 = vector.extract_strided_slice %86 {offsets = [5, 0], sizes = [1, 128], strides = [1, 1]} : vector<6x128xf32> to vector<1x128xf32>
    %93 = vector.broadcast %87 : vector<1x128xf32> to vector<128x128xf32>
    %94 = arith.addf %85, %93 : vector<128x128xf32>
    %95 = arith.addf %94, %2 : vector<128x128xf32>
    %cst_33 = arith.constant dense<0.000000e+00> : vector<128xf32>
    %96 = vector.multi_reduction <add>, %95, %cst_33 [1] : vector<128x128xf32> to vector<128xf32>
    %97 = vector.shape_cast %96 : vector<128xf32> to vector<128x1xf32>
    %cst_34 = arith.constant 1.280000e+02 : f32
    %98 = vector.broadcast %cst_34 : f32 to vector<128x1xf32>
    %99 = arith.divf %97, %98 : vector<128x1xf32>
    %100 = vector.broadcast %99 : vector<128x1xf32> to vector<128x128xf32>
    %101 = arith.subf %95, %100 : vector<128x128xf32>
    %102 = arith.mulf %101, %101 : vector<128x128xf32>
    %cst_35 = arith.constant dense<0.000000e+00> : vector<128xf32>
    %103 = vector.multi_reduction <add>, %102, %cst_35 [1] : vector<128x128xf32> to vector<128xf32>
    %104 = vector.shape_cast %103 : vector<128xf32> to vector<128x1xf32>
    %cst_36 = arith.constant 1.280000e+02 : f32
    %105 = vector.broadcast %cst_36 : f32 to vector<128x1xf32>
    %106 = arith.divf %104, %105 : vector<128x1xf32>
    %cst_37 = arith.constant 9.99999974E-6 : f32
    %107 = vector.broadcast %cst_37 : f32 to vector<128x1xf32>
    %108 = arith.addf %106, %107 : vector<128x1xf32>
    %109 = math.rsqrt %108 : vector<128x1xf32>
    %110 = vector.broadcast %109 : vector<128x1xf32> to vector<128x128xf32>
    %111 = arith.mulf %101, %110 : vector<128x128xf32>
    %112 = vector.broadcast %88 : vector<1x128xf32> to vector<128x128xf32>
    %113 = arith.mulf %111, %112 : vector<128x128xf32>
    %114 = vector.broadcast %89 : vector<1x128xf32> to vector<128x128xf32>
    %115 = arith.addf %113, %114 : vector<128x128xf32>
    %116 = arith.truncf %115 : vector<128x128xf32> to vector<128x128xbf16>
    %c0_38 = arith.constant 0 : index
    %c0_39 = arith.constant 0 : index
    %117 = vector.load %arg7[%c0_38, %c0_39] : memref<128x256xbf16, #tpu.memory_space<vmem>>, vector<128x256xbf16>
    %cst_40 = arith.constant dense<0.000000e+00> : vector<128x256xf32>
    %118 = tpu.matmul %116, %117, %cst_40 {dimension_numbers = #tpu.dot_dimension_numbers<[1], [0], [0], [1], [0, 0, 1, 1], [], []>} : vector<128x128xbf16>, vector<128x256xbf16>, vector<128x256xf32> -> vector<128x256xf32>
    %c0_41 = arith.constant 0 : index
    %c0_42 = arith.constant 0 : index
    %119 = vector.load %arg8[%c0_41, %c0_42] : memref<1x256xf32, #tpu.memory_space<vmem>>, vector<1x256xf32>
    %120 = vector.broadcast %119 : vector<1x256xf32> to vector<128x256xf32>
    %121 = arith.addf %118, %120 : vector<128x256xf32>
    %cst_43 = arith.constant 0.000000e+00 : f32
    %122 = vector.broadcast %cst_43 : f32 to vector<128x256xf32>
    %123 = arith.maximumf %121, %122 : vector<128x256xf32>
    %124 = arith.truncf %123 : vector<128x256xf32> to vector<128x256xbf16>
    %c0_44 = arith.constant 0 : index
    %c0_45 = arith.constant 0 : index
    %125 = vector.load %arg9[%c0_44, %c0_45] : memref<256x128xbf16, #tpu.memory_space<vmem>>, vector<256x128xbf16>
    %cst_46 = arith.constant dense<0.000000e+00> : vector<128x128xf32>
    %126 = tpu.matmul %124, %125, %cst_46 {dimension_numbers = #tpu.dot_dimension_numbers<[1], [0], [0], [1], [0, 0, 1, 1], [], []>} : vector<128x256xbf16>, vector<256x128xbf16>, vector<128x128xf32> -> vector<128x128xf32>
    %127 = vector.broadcast %90 : vector<1x128xf32> to vector<128x128xf32>
    %128 = arith.addf %126, %127 : vector<128x128xf32>
    %129 = arith.addf %128, %115 : vector<128x128xf32>
    %cst_47 = arith.constant dense<0.000000e+00> : vector<128xf32>
    %130 = vector.multi_reduction <add>, %129, %cst_47 [1] : vector<128x128xf32> to vector<128xf32>
    %131 = vector.shape_cast %130 : vector<128xf32> to vector<128x1xf32>
    %cst_48 = arith.constant 1.280000e+02 : f32
    %132 = vector.broadcast %cst_48 : f32 to vector<128x1xf32>
    %133 = arith.divf %131, %132 : vector<128x1xf32>
    %134 = vector.broadcast %133 : vector<128x1xf32> to vector<128x128xf32>
    %135 = arith.subf %129, %134 : vector<128x128xf32>
    %136 = arith.mulf %135, %135 : vector<128x128xf32>
    %cst_49 = arith.constant dense<0.000000e+00> : vector<128xf32>
    %137 = vector.multi_reduction <add>, %136, %cst_49 [1] : vector<128x128xf32> to vector<128xf32>
    %138 = vector.shape_cast %137 : vector<128xf32> to vector<128x1xf32>
    %cst_50 = arith.constant 1.280000e+02 : f32
    %139 = vector.broadcast %cst_50 : f32 to vector<128x1xf32>
    %140 = arith.divf %138, %139 : vector<128x1xf32>
    %cst_51 = arith.constant 9.99999974E-6 : f32
    %141 = vector.broadcast %cst_51 : f32 to vector<128x1xf32>
    %142 = arith.addf %140, %141 : vector<128x1xf32>
    %143 = math.rsqrt %142 : vector<128x1xf32>
    %144 = vector.broadcast %143 : vector<128x1xf32> to vector<128x128xf32>
    %145 = arith.mulf %135, %144 : vector<128x128xf32>
    %146 = vector.broadcast %91 : vector<1x128xf32> to vector<128x128xf32>
    %147 = arith.mulf %145, %146 : vector<128x128xf32>
    %148 = vector.broadcast %92 : vector<1x128xf32> to vector<128x128xf32>
    %149 = arith.addf %147, %148 : vector<128x128xf32>
    %150 = arith.truncf %149 : vector<128x128xf32> to vector<128x128xbf16>
    %c0_52 = arith.constant 0 : index
    %c0_53 = arith.constant 0 : index
    %c0_54 = arith.constant 0 : index
    %151 = vector.load %arg11[%c0_52, %c0_53, %c0_54] : memref<1x128x128xbf16, #tpu.memory_space<vmem>>, vector<1x128x128xbf16>
    %152 = vector.shape_cast %151 : vector<1x128x128xbf16> to vector<128x128xbf16>
    %153 = vector.shape_cast %150 : vector<128x128xbf16> to vector<1x128x128xbf16>
    tpu.vector_store %arg11[%c0_52, %c0_53, %c0_54], %153 {strides = array<i32>} : memref<1x128x128xbf16, #tpu.memory_space<vmem>>, vector<1x128x128xbf16>,
    return
  }
  func.func @transform_0(%arg0: i32) -> (i32, i32, i32) {
    %c0_i32 = arith.constant 0 : i32
    %c0_i32_0 = arith.constant 0 : i32
    %c0_i32_1 = arith.constant 0 : i32
    return %arg0, %c0_i32, %c0_i32_0 : i32, i32, i32
  }
  func.func @transform_1(%arg0: i32) -> (i32, i32, i32) {
    %c0_i32 = arith.constant 0 : i32
    %c0_i32_0 = arith.constant 0 : i32
    %c0_i32_1 = arith.constant 0 : i32
    return %arg0, %c0_i32, %c0_i32_0 : i32, i32, i32
  }
  func.func @transform_2(%arg0: i32) -> (i32, i32, i32) {
    %c0_i32 = arith.constant 0 : i32
    %c0_i32_0 = arith.constant 0 : i32
    %c0_i32_1 = arith.constant 0 : i32
    return %arg0, %c0_i32, %c0_i32_0 : i32, i32, i32
  }
  func.func @transform_3(%arg0: i32) -> (i32, i32) {
    %c0_i32 = arith.constant 0 : i32
    %c0_i32_0 = arith.constant 0 : i32
    %c0_i32_1 = arith.constant 0 : i32
    return %c0_i32, %c0_i32_0 : i32, i32
  }
  func.func @transform_4(%arg0: i32) -> (i32, i32) {
    %c0_i32 = arith.constant 0 : i32
    %c0_i32_0 = arith.constant 0 : i32
    %c0_i32_1 = arith.constant 0 : i32
    return %c0_i32, %c0_i32_0 : i32, i32
  }
  func.func @transform_5(%arg0: i32) -> (i32, i32) {
    %c0_i32 = arith.constant 0 : i32
    %c0_i32_0 = arith.constant 0 : i32
    %c0_i32_1 = arith.constant 0 : i32
    return %c0_i32, %c0_i32_0 : i32, i32
  }
  func.func @transform_6(%arg0: i32) -> (i32, i32) {
    %c0_i32 = arith.constant 0 : i32
    %c0_i32_0 = arith.constant 0 : i32
    %c0_i32_1 = arith.constant 0 : i32
    return %c0_i32, %c0_i32_0 : i32, i32
  }
  func.func @transform_7(%arg0: i32) -> (i32, i32) {
    %c0_i32 = arith.constant 0 : i32
    %c0_i32_0 = arith.constant 0 : i32
    %c0_i32_1 = arith.constant 0 : i32
    return %c0_i32, %c0_i32_0 : i32, i32
  }
  func.func @transform_8(%arg0: i32) -> (i32, i32) {
    %c0_i32 = arith.constant 0 : i32
    %c0_i32_0 = arith.constant 0 : i32
    %c0_i32_1 = arith.constant 0 : i32
    return %c0_i32, %c0_i32_0 : i32, i32
  }
  func.func @transform_9(%arg0: i32) -> (i32, i32) {
    %c0_i32 = arith.constant 0 : i32
    %c0_i32_0 = arith.constant 0 : i32
    %c0_i32_1 = arith.constant 0 : i32
    return %c0_i32, %c0_i32_0 : i32, i32
  }
  func.func @transform_10(%arg0: i32) -> (i32, i32, i32) {
    %c0_i32 = arith.constant 0 : i32
    %c0_i32_0 = arith.constant 0 : i32
    %c0_i32_1 = arith.constant 0 : i32
    return %arg0, %c0_i32, %c0_i32_0 : i32, i32, i32
  }
}

</mosaic_0001>

<bundles_post_ra>
// kernel: transformer_hyper_forward.1
= control target key start
LH: loop header
LB: loop body
LE: loop exit
PB: predicated region body
PF: predicated region fallthrough
CT: control target
= control target key end

     0   :  { %s5569_s13 = smov 0   ;;  %s7776_s0 = inlined_call_operand.vmem [shape: bf16[4,128,128], index: 0, kind: input, shape index: {}]   ;;  %s7777_s1 = inlined_call_operand.vmem [shape: f32[4,128,128], index: 1, kind: input, shape index: {}]   ;;  %s7778_s2 = inlined_call_operand.vmem [shape: f32[4,128,128], index: 2, kind: input, shape index: {}]   ;;  %s7779_s3 = inlined_call_operand.vmem [shape: bf16[128,384], index: 3, kind: input, shape index: {}]   ;;  %s7780_s4 = inlined_call_operand.vmem [shape: f32[1,384], index: 4, kind: input, shape index: {}]   ;;  %s7781_s5 = inlined_call_operand.vmem [shape: bf16[128,128], index: 5, kind: input, shape index: {}]   ;;  %s7782_s6 = inlined_call_operand.vmem [shape: bf16[128,256], index: 6, kind: input, shape index: {}]   ;;  %s7783_s7 = inlined_call_operand.vmem [shape: f32[1,256], index: 7, kind: input, shape index: {}]   ;;  %s7784_s8 = inlined_call_operand.vmem [shape: bf16[256,128], index: 8, kind: input, shape index: {}]   ;;  %s7785_s9 = inlined_call_operand.vmem [shape: f32[6,128], index: 9, kind: input, shape index: {}]   ;;  %s7786_s10 = inlined_call_operand.vmem [shape: bf16[4,128,128], index: 10, kind: output, shape index: {}]  }
   0x1 LB: > { %s4255_s14 = sadd.s32 4294967295, %s5508_s13   ;;  %p4259_p0 = scmp.ge.s32.totalorder %s5508_s13, 1  ;;  %s5508_s13 = sphi %s5569_s13, %s20_s13  }
   0x2   : > { %p332_p1 = scmp.lt.s32.totalorder %s5508_s13, 5 }
   0x4   : > { %p333_p2 = pnand %p4259_p0, %p332_p1 }
   0x6   : > { %336 = sbr.rel (%p333_p2) target bundleno = 4346 (0x10fa), region = 60 }
   0xb   : > { %v5061_v0 = vld [vmem:[%s7779_s3 + $0xac] ss:$12 sps:$4 sm:$0xff]   ;;  %p380_p3 = scmp.lt.s32.totalorder %s4255_s14, 3  ;;  %v5063_v1 = vld [vmem:[%s7779_s3 + $0xa8] ss:$12 sps:$4 sm:$0xff]   ;;  %v7788_v2 = vmov 0   ;;  %v467_v33 = vlaneseq }
   0xc   : > { %690 = vmatprep.mubr.bf16.mxu0 %v7788_v2  ;;  %658 = vmatprep.subr.bf16.mxu0 %v5061_v0  ;;  %v5064_v3 = vld [vmem:[%s7779_s3 + $0x94] ss:$12 sps:$4 sm:$0xff]   ;;  %v5066_v4 = vld [vmem:[%s7779_s3 + $0x90] ss:$12 sps:$4 sm:$0xff]   ;;  %v5069_v6 = vld [vmem:[%s7779_s3 + $0x78] ss:$12 sps:$4 sm:$0xff]  }
   0xd   : > { %s7915_s14 = smov (!%p380_p3, %s4255_s14), 3  ;;  %659 = vmatpush1.bf16.msra.mxu0 %v5063_v1  ;;  %v5067_v5 = vld [vmem:[%s7779_s3 + $0x7c] ss:$12 sps:$4 sm:$0xff]   ;;  %v5070_v7 = vld [vmem:[%s7779_s3 + $0x64] ss:$12 sps:$4 sm:$0xff]   ;;  %v5675_v34 = vshrl.u32 %v467_v33, 7 }
   0xe   : > { %660 = vmatprep.subr.bf16.mxu0 %v5064_v3  ;;  %s4390_s25 = sshll.u32 %s7915_s14, 6  ;;  %v5072_v9 = vld [vmem:[%s7779_s3 + $0x60] ss:$12 sps:$4 sm:$0xff]   ;;  %v5075_v11 = vld [vmem:[%s7779_s3 + $0x48] ss:$12 sps:$4 sm:$0xff]   ;;  %vm908_vm0 = vcmask 261120  }
   0xf   : > { %s5604_s30 = scalar_lea.vmem %s7776_s0, %s4390_s25  ;;  %v5073_v10 = vld [vmem:[%s7779_s3 + $0x4c] ss:$12 sps:$4 sm:$0xff]   ;;  %v5093_v12 = vld [vmem:[%s7779_s3 + $0xb0] ss:$12 sps:$4 sm:$0xff]   ;;  %v5076_v14 = vld [vmem:[%s7779_s3 + $0x34] ss:$12 sps:$4 sm:$0xff]   ;;  %s7722_s16 = scalar_lea.vmem %s7786_s10, %s4390_s25 }
  0x10   : > { %v401_v8 = vld [vmem:[%s5604_s30] sm:$0xff]   ;;  %4681 = vmatprep.subr.bf16.mxu1 %v5093_v12  ;;  %v5078_v16 = vld [vmem:[%s7779_s3 + $0x30] ss:$12 sps:$4 sm:$0xff]   ;;  %v5096_v19 = vld [vmem:[%s7779_s3 + $0x68] ss:$12 sps:$4 sm:$0xff]   ;;  %7814 = vst [vmem:[#allocation2_spill] sm:$0xff] %v5675_v34 }
  0x11   : > { %661 = vmatpush1.bf16.msra.mxu0 %v5066_v4  ;;  %4697 = vmatprep.mubr.bf16.mxu1 %v401_v8  ;;  %v5094_v13 = vld [vmem:[%s7779_s3 + $0x98] ss:$12 sps:$4 sm:$0xff]   ;;  %v5095_v15 = vld [vmem:[%s7779_s3 + $0x80] ss:$12 sps:$4 sm:$0xff]   ;;  %v5079_v17 = vld [vmem:[%s7779_s3 + $0x1c] ss:$12 sps:$4 sm:$0xff]  }
  0x12   : > { %662 = vmatprep.subr.bf16.mxu0 %v5067_v5  ;;  %4682 = vmatpush3.bf16.msra.mxu1 %v5093_v12  ;;  %v5081_v18 = vld [vmem:[%s7779_s3 + $0x18] ss:$12 sps:$4 sm:$0xff]   ;;  %v5097_v21 = vld [vmem:[%s7779_s3 + $0x50] ss:$12 sps:$4 sm:$0xff]   ;;  %v5084_v22 = vld [vmem:[%s7779_s3] ss:$12 sps:$4 sm:$0xff]  }
  0x13   : > { %4683 = vmatprep.subr.bf16.mxu1 %v5094_v13  ;;  %v5082_v20 = vld [vmem:[%s7779_s3 + $0x4] ss:$12 sps:$4 sm:$0xff]   ;;  %v5099_v24 = vld [vmem:[%s7779_s3 + $0x20] ss:$12 sps:$4 sm:$0xff]   ;;  %v5100_v26 = vld [vmem:[%s7779_s3 + $0x8] ss:$12 sps:$4 sm:$0xff]  }
  0x14   : > { %v5098_v23 = vld [vmem:[%s7779_s3 + $0x38] ss:$12 sps:$4 sm:$0xff]   ;;  %v403_v25 = vld [vmem:[%s5604_s30 + $0x8] sm:$0xff]   ;;  %v405_v27 = vld [vmem:[%s5604_s30 + $0x10] sm:$0xff]   ;;  %v5678_v35 = vsub.s32 0, %v5675_v34  ;;  %s5511_s19 = smov 96  }
  0x15   : > { %663 = vmatpush1.bf16.msra.mxu0 %v5069_v6  ;;  %v407_v28 = vld [vmem:[%s5604_s30 + $0x18] sm:$0xff]   ;;  %v409_v29 = vld [vmem:[%s5604_s30 + $0x20] sm:$0xff]   ;;  %v411_v30 = vld [vmem:[%s5604_s30 + $0x28] sm:$0xff]   ;;  %s4391_s20 = sshll.u32 %s7915_s14, 7  ;;  %s5512_s24 = smov 64   ;;  %vm2885_vm1 = vcmask 523264  }
  0x16   : > { %664 = vmatprep.subr.bf16.mxu0 %v5070_v7  ;;  %4684 = vmatpush3.bf16.msra.mxu1 %v5094_v13  ;;  %v413_v31 = vld [vmem:[%s5604_s30 + $0x30] sm:$0xff]   ;;  %v415_v32 = vld [vmem:[%s5604_s30 + $0x38] sm:$0xff]   ;;  %7815 = vst [vmem:[#allocation3_spill] sm:$0xff] %v5678_v35  ;;  %v5683_v36 = vld [vmem:[%s7780_s4] sm:$0x7]  ;;  %s5927_s23 = scalar_lea.vmem %s7777_s1, %s4391_s20  ;;  %s5513_s26 = smov 32  }
  0x17   : > { %4685 = vmatprep.subr.bf16.mxu1 %v5095_v15  ;;  %v5687_v38 = vrot.slane %v5683_v36, %v5678_v35  ;;  %vm2902_vm2 = vcmask 785408  }
  0x19   : > { %665 = vmatpush1.bf16.msra.mxu0 %v5072_v9 }
  0x1a   : > { %666 = vmatprep.subr.bf16.mxu0 %v5073_v10  ;;  %4686 = vmatpush3.bf16.msra.mxu1 %v5095_v15  ;;  %v7787_v15 = vsub.s32 2, %v5675_v34 }
  0x1b   : > { %4687 = vmatprep.subr.bf16.mxu1 %v5096_v19 }
  0x1d   : > { %667 = vmatpush1.bf16.msra.mxu0 %v5075_v11 }
  0x1e   : > { %668 = vmatprep.subr.bf16.mxu0 %v5076_v14  ;;  %4688 = vmatpush3.bf16.msra.mxu1 %v5096_v19 }
  0x1f   : > { %4689 = vmatprep.subr.bf16.mxu1 %v5097_v21 }
  0x21   : > { %669 = vmatpush1.bf16.msra.mxu0 %v5078_v16 }
  0x22   : > { %670 = vmatprep.subr.bf16.mxu0 %v5079_v17  ;;  %4690 = vmatpush3.bf16.msra.mxu1 %v5097_v21  ;;  %v5743_v21 = vrot.slane %v5683_v36, %v7787_v15 }
  0x23   : > { %4691 = vmatprep.subr.bf16.mxu1 %v5098_v23 }
  0x25   : > { %671 = vmatpush1.bf16.msra.mxu0 %v5081_v18 }
  0x26   : > { %672 = vmatprep.subr.bf16.mxu0 %v5082_v20  ;;  %4692 = vmatpush3.bf16.msra.mxu1 %v5098_v23 }
  0x27   : > { %4693 = vmatprep.subr.bf16.mxu1 %v5099_v24 }
  0x29   : > { %673 = vmatpush1.bf16.msra.mxu0 %v5084_v22 }
  0x2a   : > { %4694 = vmatpush3.bf16.msra.mxu1 %v5099_v24 }
  0x2b   : > { %4695 = vmatprep.subr.bf16.mxu1 %v5100_v26 }
  0x2c   : > { %691 = vmatmul.mubr.bf16.vlgmr.msra.gmra.mxu0 %v401_v8 }
  0x2d   : > { %700 = vmatprep.mubr.bf16.mxu0 %v7788_v2 }
  0x2e   : > { %4696 = vmatpush3.bf16.msra.mxu1 %v5100_v26 }
  0x31   : > { %4698 = vmatmul.mubr.bf16.vlgmr.msra.gmra.mxu1 %v403_v25 }
  0x32   : > { %4701 = vmatprep.mubr.bf16.mxu1 %v405_v27 }
  0x34   : > { %701 = vmatmul.mubr.bf16.gmra.mxu0 %v403_v25 }
  0x35   : > { %710 = vmatprep.mubr.bf16.mxu0 %v7788_v2 }
  0x39   : > { %4702 = vmatmul.mubr.bf16.gmra.mxu1 %v407_v28 }
  0x3a   : > { %4705 = vmatprep.mubr.bf16.mxu1 %v409_v29 }
  0x3c   : > { %711 = vmatmul.mubr.bf16.gmra.mxu0 %v405_v27 }
  0x3d   : > { %720 = vmatprep.mubr.bf16.mxu0 %v7788_v2 }
  0x41   : > { %4706 = vmatmul.mubr.bf16.gmra.mxu1 %v411_v30 }
  0x42   : > { %4709 = vmatprep.mubr.bf16.mxu1 %v413_v31 }
  0x44   : > { %721 = vmatmul.mubr.bf16.gmra.mxu0 %v407_v28 }
  0x45   : > { %730 = vmatprep.mubr.bf16.mxu0 %v7788_v2 }
  0x49   : > { %4710 = vmatmul.mubr.bf16.gmra.mxu1 %v415_v32 }
  0x4c   : > { %731 = vmatmul.mubr.bf16.gmra.mxu0 %v409_v29 }
  0x4d   : > { %740 = vmatprep.mubr.bf16.mxu0 %v7788_v2 }
  0x54   : > { %741 = vmatmul.mubr.bf16.gmra.mxu0 %v411_v30 }
  0x55   : > { %750 = vmatprep.mubr.bf16.mxu0 %v7788_v2 }
  0x5c   : > { %751 = vmatmul.mubr.bf16.gmra.mxu0 %v413_v31 }
  0x5d   : > { %760 = vmatprep.mubr.bf16.mxu0 %v7788_v2 }
  0x64   : > { %761 = vmatmul.mubr.bf16.gmra.mxu0 %v415_v32 }
  0xec   : > { %v692_v37 = vpop.f32.mrf.mxu0 }
  0xed   : > { %v693_v41 = vadd.f32 %v692_v37, %v5687_v38 }
  0xee   : > { %v5689_v39 = vpop.f32.mrf.mxu0 }
  0xf0   : > { %v696_v40 = vpop.f32.mrf.mxu0 }
  0xf1   : > { %v697_v42 = vadd.f32 %v696_v40, %v5687_v38  ;;  %v5705_v51 = vpop.f32.mrf.mxu1 }
  0xf2   : > { %v5693_v43 = vpop.f32.mrf.mxu0 }
  0xf3   : > { %v5695_v44 = vpack.c.bf16 %v697_v42, %v693_v41  ;;  %v5709_v54 = vpop.f32.mrf.mxu1 }
  0xf4   : > { %v702_v45 = vpop.f32.mrf.mxu0 }
  0xf5   : > { %v703_v46 = vadd.f32 %v702_v45, %v5687_v38  ;;  %4729 = vmatprep.mubr.msk.bf16.mxu0 %vm908_vm0, %v5695_v44  ;;  %v5714_v57 = vpop.f32.mrf.mxu1 }
  0xf6   : > { %v5700_v47 = vpop.f32.mrf.mxu0 }
  0xf7   : > { %v5716_v59 = vpop.f32.mrf.mxu1 }
  0xf8   : > { %v706_v48 = vpop.f32.mrf.mxu0 }
  0xf9   : > { %v707_v49 = vadd.f32 %v706_v48, %v5687_v38  ;;  %v4703_v62 = vpop.f32.mrf.mxu1 }
  0xfa   : > { %v5703_v50 = vpop.f32.mrf.mxu0 }
  0xfb   : > { %v5707_v52 = vpack.c.bf16 %v707_v49, %v703_v46  ;;  %v5723_v1 = vpop.f32.mrf.mxu1 }
  0xfc   : > { %v712_v53 = vpop.f32.mrf.mxu0 }
  0xfd   : > { %v713_v55 = vadd.f32 %v712_v53, %v5687_v38  ;;  %v4704_v5 = vpop.f32.mrf.mxu1 }
  0xfe   : > { %v5712_v56 = vpop.f32.mrf.mxu0 }
  0xff   : > { %v5728_v7 = vpop.f32.mrf.mxu1 }
 0x100   : > { %v716_v58 = vpop.f32.mrf.mxu0 }
 0x101   : > { %v717_v60 = vadd.f32 %v716_v58, %v5687_v38  ;;  %v4707_v10 = vpop.f32.mrf.mxu1 }
 0x102   : > { %v5719_v61 = vpop.f32.mrf.mxu0  ;;  %v846_v37 = vadd.f32 %v4707_v10, %v5743_v21 }
 0x103   : > { %v5721_v63 = vpack.c.bf16 %v717_v60, %v713_v55  ;;  %v837_v13 = vpop.f32.mrf.mxu1  ;;  %v5767_v55 = vsub.s32 1, %v5675_v34 }
 0x104   : > { %v722_v0 = vpop.f32.mrf.mxu0 }
 0x105   : > { %v723_v3 = vadd.f32 %v722_v0, %v5687_v38  ;;  %v4708_v17 = vpop.f32.mrf.mxu1  ;;  %7816 = vst [vmem:[#allocation4_spill] sm:$0xff] %v5767_v55  ;;  %v838_v0 = vadd.f32 %v837_v13, %v5743_v21  ;;  %v5778_v10 = vrot.slane %v5683_v36, %v5767_v55  ;;  %v833_v13 = vadd.f32 %v4704_v5, %v5743_v21 }
 0x106   : > { %v5726_v4 = vpop.f32.mrf.mxu0  ;;  %v849_v42 = vadd.f32 %v4708_v17, %v5743_v21  ;;  %v830_v17 = vadd.f32 %v4703_v62, %v5743_v21 }
 0x107   : > { %v840_v19 = vpop.f32.mrf.mxu1 }
 0x108   : > { %v726_v6 = vpop.f32.mrf.mxu0 }
 0x109   : > { %v727_v8 = vadd.f32 %v726_v6, %v5687_v38  ;;  %v4711_v23 = vpop.f32.mrf.mxu1  ;;  %v841_v6 = vadd.f32 %v840_v19, %v5743_v21 }
 0x10a   : > { %v5731_v9 = vpop.f32.mrf.mxu0  ;;  %v862_v28 = vadd.f32 %v4711_v23, %v5743_v21 }
 0x10b   : > { %v5733_v11 = vpack.c.bf16 %v727_v8, %v723_v3  ;;  %v853_v26 = vpop.f32.mrf.mxu1  ;;  %v5772_v3 = vpack.c.bf16 %v849_v42, %v846_v37 }
 0x10c   : > { %v732_v12 = vpop.f32.mrf.mxu0  ;;  %v854_v31 = vadd.f32 %v853_v26, %v5743_v21  ;;  %v822_v26 = vadd.f32 %v5723_v1, %v5743_v21 }
 0x10d   : > { %v733_v14 = vadd.f32 %v732_v12, %v5687_v38  ;;  %v4712_v30 = vpop.f32.mrf.mxu1 }
 0x10e   : > { %v5737_v16 = vpop.f32.mrf.mxu0  ;;  %v865_v32 = vadd.f32 %v4712_v30, %v5743_v21 }
 0x10f   : > { %v856_v40 = vpop.f32.mrf.mxu1 }
 0x110   : > { %v736_v18 = vpop.f32.mrf.mxu0  ;;  %v5758_v45 = vpack.c.bf16 %v865_v32, %v862_v28  ;;  %v857_v46 = vadd.f32 %v856_v40, %v5743_v21  ;;  %v825_v28 = vadd.f32 %v5728_v7, %v5743_v21  ;;  %v814_v32 = vadd.f32 %v5705_v51, %v5743_v21 }
 0x111   : > { %v737_v20 = vadd.f32 %v736_v18, %v5687_v38  ;;  %v5784_v18 = vpack.c.bf16 %v841_v6, %v838_v0  ;;  %v806_v51 = vadd.f32 %v5709_v54, %v5743_v21  ;;  %v735_v6 = vadd.f32 %v5737_v16, %v5778_v10 }
 0x112   : > { %v5745_v22 = vpop.f32.mrf.mxu0  ;;  %v5763_v53 = vpack.c.bf16 %v857_v46, %v854_v31  ;;  %4745 = vmatprep.subr.bf16.mxu1 %v5758_v45  ;;  %v5810_v37 = vpack.c.bf16 %v825_v28, %v822_v26 }
 0x113   : > { %v5747_v24 = vpack.c.bf16 %v737_v20, %v733_v14  ;;  %4746 = vmatpush3.bf16.msra.mxu1 %v5758_v45 }
 0x114   : > { %v742_v25 = vpop.f32.mrf.mxu0  ;;  %4747 = vmatprep.subr.bf16.mxu1 %v5763_v53 }
 0x115   : > { %v743_v27 = vadd.f32 %v742_v25, %v5687_v38 }
 0x116   : > { %v5751_v29 = vpop.f32.mrf.mxu0 }
 0x117   : > { %4748 = vmatpush3.bf16.msra.mxu1 %v5763_v53 }
 0x118   : > { %v746_v33 = vpop.f32.mrf.mxu0  ;;  %4749 = vmatprep.subr.bf16.mxu1 %v5772_v3 }
 0x119   : > { %v747_v41 = vadd.f32 %v746_v33, %v5687_v38  ;;  %v817_v33 = vadd.f32 %v5714_v57, %v5743_v21  ;;  %v809_v57 = vadd.f32 %v5716_v59, %v5743_v21  ;;  %v745_v21 = vadd.f32 %v5751_v29, %v5778_v10 }
 0x11a   : > { %v748_v48 = vpop.f32.mrf.mxu0 }
 0x11b   : > { %v5761_v49 = vpack.c.bf16 %v747_v41, %v743_v27  ;;  %4750 = vmatpush3.bf16.msra.mxu1 %v5772_v3  ;;  %v5797_v27 = vpack.c.bf16 %v833_v13, %v830_v17  ;;  %v5822_v46 = vpack.c.bf16 %v817_v33, %v814_v32  ;;  %v5836_v54 = vpack.c.bf16 %v809_v57, %v806_v51  ;;  %v5946_v33 = vld [vmem:[%s5927_s23 + $0x8] sm:$0xff]  ;;  %v5957_v51 = vld [vmem:[%s5927_s23 + $0x30] sm:$0xff] }
 0x11c   : > { %v752_v58 = vpop.f32.mrf.mxu0  ;;  %4751 = vmatprep.subr.bf16.mxu1 %v5784_v18  ;;  %v749_v59 = vadd.f32 %v748_v48, %v5778_v10  ;;  %v739_v48 = vadd.f32 %v5745_v22, %v5778_v10  ;;  %v719_v22 = vadd.f32 %v5719_v61, %v5778_v10  ;;  %v715_v13 = vadd.f32 %v5712_v56, %v5778_v10 }
 0x11d   : > { %v753_v60 = vadd.f32 %v752_v58, %v5687_v38  ;;  %7818 = vst [vmem:[#allocation6_spill] sm:$0xff] %v5822_v46  ;;  %7819 = vst [vmem:[#allocation7_spill] sm:$0xff] %v5836_v54  ;;  %v699_v61 = vadd.f32 %v5693_v43, %v5778_v10  ;;  %v5930_v43 = vld [vmem:[%s5927_s23 + $0x10] sm:$0xff] }
 0x11e   : > { %v754_v8 = vpop.f32.mrf.mxu0  ;;  %v5855_v29 = vpack.c.bf16 %v739_v48, %v735_v6  ;;  %7823 = vst [vmem:[#allocation11_spill] sm:$0xff] %v5957_v51 }
 0x11f   : > { %v755_v20 = vadd.f32 %v754_v8, %v5778_v10  ;;  %4752 = vmatpush3.bf16.msra.mxu1 %v5784_v18 }
 0x120   : > { %v756_v12 = vpop.f32.mrf.mxu0  ;;  %4753 = vmatprep.subr.bf16.mxu1 %v5797_v27  ;;  %v946_v16 = vsel %vm908_vm0, %v5855_v29, 0 }
 0x121   : > { %v757_v14 = vadd.f32 %v756_v12, %v5687_v38  ;;  %v729_v12 = vadd.f32 %v5731_v9, %v5778_v10  ;;  %v709_v9 = vadd.f32 %v5703_v50, %v5778_v10 }
 0x122   : > { %v758_v19 = vpop.f32.mrf.mxu0 }
 0x123   : > { %v5788_v23 = vpack.c.bf16 %v757_v14, %v753_v60  ;;  %v759_v36 = vadd.f32 %v758_v19, %v5778_v10  ;;  %4754 = vmatpush3.bf16.msra.mxu1 %v5797_v27  ;;  %v5844_v60 = vpack.c.bf16 %v749_v59, %v745_v21  ;;  %v725_v14 = vadd.f32 %v5726_v4, %v5778_v10  ;;  %v5961_v59 = vld [vmem:[%s5927_s23 + $0x38] sm:$0xff] }
 0x124   : > { %v762_v25 = vpop.f32.mrf.mxu0  ;;  %4755 = vmatprep.subr.bf16.mxu1 %v5810_v37  ;;  %v5875_v19 = vpack.c.bf16 %v719_v22, %v715_v13 }
 0x125   : > { %v5794_v62 = vpack.c.bf16 %v759_v36, %v755_v20  ;;  %v763_v5 = vadd.f32 %v762_v25, %v5687_v38  ;;  %7820 = vst [vmem:[#allocation8_spill] sm:$0xff] %v5844_v60  ;;  %v949_v8 = vsel %vm908_vm0, %v5844_v60, 0  ;;  %v5865_v17 = vpack.c.bf16 %v729_v12, %v725_v14  ;;  %v5974_v12 = vld [vmem:[%s5927_s23 + $0x28] sm:$0xff] }
 0x126   : > { %v764_v30 = vpop.f32.mrf.mxu0  ;;  %7822 = vst [vmem:[#allocation10_spill] sm:$0xff] %v5875_v19  ;;  %v705_v20 = vadd.f32 %v5700_v47, %v5778_v10  ;;  %v940_v56 = vsel %vm908_vm0, %v5875_v19, 0  ;;  %v695_v25 = vadd.f32 %v5689_v39, %v5778_v10 }
 0x127   : > { %1347 = vrot.lane.b32.xlu1 %v5794_v62, %s5511_s19  ;;  %v765_v40 = vadd.f32 %v764_v30, %v5778_v10  ;;  %4756 = vmatpush3.bf16.msra.mxu1 %v5810_v37  ;;  %v952_v0 = vsel %vm908_vm0, %v5794_v62, 0  ;;  %7821 = vst [vmem:[#allocation9_spill] sm:$0xff] %v5865_v17  ;;  %v943_v4 = vsel %vm908_vm0, %v5865_v17, 0 }
 0x128   : > { %v766_v31 = vpop.f32.mrf.mxu0  ;;  %4757 = vmatprep.subr.bf16.mxu1 %v5822_v46  ;;  %v5885_v36 = vpack.c.bf16 %v709_v9, %v705_v20  ;;  %v5895_v50 = vpack.c.bf16 %v699_v61, %v695_v25  ;;  %v5988_v9 = vld [vmem:[%s5927_s23 + $0x58] sm:$0xff] }
 0x129   : > { %v767_v1 = vadd.f32 %v766_v31, %v5687_v38  ;;  %v5939_v31 = vld [vmem:[%s5927_s23 + $0x18] sm:$0xff] }
 0x12a   : > { %v768_v7 = vpop.f32.mrf.mxu0  ;;  %v937_v47 = vsel %vm908_vm0, %v5885_v36, 0  ;;  %v934_v26 = vsel %vm908_vm0, %v5895_v50, 0 }
 0x12b   : > { %v5814_v41 = vpack.c.bf16 %v767_v1, %v763_v5  ;;  %v769_v42 = vadd.f32 %v768_v7, %v5778_v10  ;;  %4758 = vmatpush3.bf16.msra.mxu1 %v5822_v46  ;;  %v5933_v5 = vld [vmem:[%s5927_s23] sm:$0xff] }
 0x12c   : > { %4759 = vmatprep.subr.bf16.mxu1 %v5836_v54 }
 0x12d   : > { %v5818_v38 = vpack.c.bf16 %v769_v42, %v765_v40 }
 0x12f   : > { %7817 = vst [vmem:[#allocation5_spill] sm:$0xff] %v5818_v38  ;;  %1349 = vrot.lane.b32.xlu0 %v5818_v38, %s5511_s19  ;;  %5017 = vmatprep.subr.msk.bf16.mxu0 %vm908_vm0, %v5818_v38  ;;  %v955_v58 = vsel %vm908_vm0, %v5818_v38, 0 }
 0x130   : > { %4714 = vmatpush3.bf16.xpose.msra.mxu0 %v955_v58  ;;  %4760 = vmatpush3.bf16.msra.mxu1 %v5836_v54 }
 0x131   : > { %5018 = vmatprep.subr.msk.bf16.mxu0 %vm908_vm0, %v5794_v62 }
 0x138   : > { %4716 = vmatpush3.bf16.xpose.msra.mxu0 %v952_v0  ;;  %v5967_v0 = vld [vmem:[%s5927_s23 + $0x20] sm:$0xff] }
 0x139   : > { %5019 = vmatprep.subr.msk.bf16.mxu0 %vm908_vm0, %v5844_v60  ;;  %7824 = vst [vmem:[#allocation12_spill] sm:$0xff] %v5967_v0 }
 0x140   : > { %4718 = vmatpush3.bf16.xpose.msra.mxu0 %v949_v8 }
 0x141   : > { %5020 = vmatprep.subr.msk.bf16.mxu0 %vm908_vm0, %v5855_v29 }
 0x148   : > { %4720 = vmatpush3.bf16.xpose.msra.mxu0 %v946_v16  ;;  %v5981_v16 = vld [vmem:[%s5927_s23 + $0x50] sm:$0xff] }
 0x149   : > { %5021 = vmatprep.subr.msk.bf16.mxu0 %vm908_vm0, %v5865_v17  ;;  %7825 = vst [vmem:[#allocation13_spill] sm:$0xff] %v5981_v16 }
 0x150   : > { %4722 = vmatpush3.bf16.xpose.msra.mxu0 %v943_v4 }
 0x151   : > { %5022 = vmatprep.subr.msk.bf16.mxu0 %vm908_vm0, %v5875_v19 }
 0x158   : > { %4724 = vmatpush3.bf16.xpose.msra.mxu0 %v940_v56  ;;  %v5995_v56 = vld [vmem:[%s5927_s23 + $0x40] sm:$0xff] }
 0x159   : > { %5023 = vmatprep.subr.msk.bf16.mxu0 %vm908_vm0, %v5885_v36  ;;  %7826 = vst [vmem:[#allocation14_spill] sm:$0xff] %v5995_v56 }
 0x160   : > { %4726 = vmatpush3.bf16.xpose.msra.mxu0 %v937_v47 }
 0x161   : > { %5024 = vmatprep.subr.msk.bf16.mxu0 %vm908_vm0, %v5895_v50 }
 0x168   : > { %4728 = vmatpush3.bf16.xpose.msra.mxu0 %v934_v26  ;;  %v6002_v26 = vld [vmem:[%s5927_s23 + $0x48] sm:$0xff] }
 0x16f   : > { %4730 = vmatmul.mubr.msk.bf16.vlgmr.msra.gmra.mxu0 %vm908_vm0, %v5707_v52 }
 0x170   : > { %4733 = vmatprep.mubr.msk.bf16.mxu0 %vm908_vm0, %v5721_v63 }
 0x177   : > { %4734 = vmatmul.mubr.msk.bf16.gmra.mxu0 %vm908_vm0, %v5733_v11 }
 0x178   : > { %4737 = vmatprep.mubr.msk.bf16.mxu0 %vm908_vm0, %v5747_v24 }
 0x17f   : > { %4738 = vmatmul.mubr.msk.bf16.gmra.mxu0 %vm908_vm0, %v5761_v49 }
 0x180   : > { %4741 = vmatprep.mubr.msk.bf16.mxu0 %vm908_vm0, %v5788_v23 }
 0x187   : > { %4742 = vmatmul.mubr.msk.bf16.gmra.mxu0 %vm908_vm0, %v5814_v41 }
 0x199   : > { %v6045_v15 = vpop.permute.xlu1 %1347 }
 0x1a1   : > { %v5917_v39 = vpop.permute.xlu0 %1349 }
 0x1a2   : > { %5025 = vmatprep.subr.msk.bf16.mxu1 %vm908_vm0, %v5917_v39 }
 0x22f   : > { %v4731_v10 = vpop.f32.mrf.mxu0 }
 0x230   : > { %v5936_v28 = vadd.f32 %v4731_v10, %v5930_v43 }
 0x231   : > { %v991_v30 = vpop.f32.mrf.mxu0 }
 0x232   : > { %v5942_v1 = vadd.f32 %v991_v30, %v5933_v5  ;;  %1058 = vmax.xlane.f32.xlu1 %v5936_v28  ;;  %v6009_v30 = vld [vmem:[%s5927_s23 + $0x70] sm:$0xff] }
 0x233   : > { %v4732_v32 = vpop.f32.mrf.mxu0  ;;  %7827 = vst [vmem:[#allocation15_spill] sm:$0xff] %v6009_v30 }
 0x234   : > { %v5949_v7 = vadd.f32 %v4732_v32, %v5939_v31  ;;  %1054 = vmax.xlane.f32.xlu0 %v5942_v1 }
 0x235   : > { %v994_v40 = vpop.f32.mrf.mxu0 }
 0x236   : > { %v5953_v42 = vadd.f32 %v994_v40, %v5946_v33  ;;  %1060 = vmax.xlane.f32.xlu1 %v5949_v7 }
 0x237   : > { %v4735_v57 = vpop.f32.mrf.mxu0 }
 0x238   : > { %1056 = vmax.xlane.f32.xlu0 %v5953_v42  ;;  %v5964_v21 = vadd.f32 %v4735_v57, %v5957_v51 }
 0x239   : > { %v1007_v58 = vpop.f32.mrf.mxu0 }
 0x23a   : > { %v5977_v14 = vadd.f32 %v1007_v58, %v5967_v0 }
 0x23b   : > { %v4736_v48 = vpop.f32.mrf.mxu0 }
 0x23c   : > { %v5970_v6 = vadd.f32 %v4736_v48, %v5961_v59  ;;  %1066 = vmax.xlane.f32.xlu0 %v5964_v21  ;;  %v6020_v48 = vld [vmem:[%s5927_s23 + $0x60] sm:$0xff] }
 0x23d   : > { %v1010_v8 = vpop.f32.mrf.mxu0  ;;  %7828 = vst [vmem:[#allocation16_spill] sm:$0xff] %v6020_v48 }
 0x23e   : > { %1068 = vmax.xlane.f32.xlu1 %v5970_v6  ;;  %v5984_v13 = vadd.f32 %v1010_v8, %v5974_v12 }
 0x23f   : > { %v4739_v22 = vpop.f32.mrf.mxu0 }
 0x240   : > { %1062 = vmax.xlane.f32.xlu0 %v5977_v14  ;;  %v5991_v20 = vadd.f32 %v4739_v22, %v5981_v16  ;;  %v6032_v22 = vld [vmem:[%s5927_s23 + $0x78] sm:$0xff] }
 0x241   : > { %v1023_v4 = vpop.f32.mrf.mxu0  ;;  %7829 = vst [vmem:[#allocation17_spill] sm:$0xff] %v6032_v22 }
 0x242   : > { %1064 = vmax.xlane.f32.xlu1 %v5984_v13  ;;  %v6005_v10 = vadd.f32 %v1023_v4, %v5995_v56 }
 0x243   : > { %v4740_v61 = vpop.f32.mrf.mxu0 }
 0x244   : > { %v5998_v25 = vadd.f32 %v4740_v61, %v5988_v9  ;;  %1074 = vmax.xlane.f32.xlu0 %v5991_v20 }
 0x245   : > { %v1026_v47 = vpop.f32.mrf.mxu0 }
 0x246   : > { %1076 = vmax.xlane.f32.xlu1 %v5998_v25  ;;  %v6012_v40 = vadd.f32 %v1026_v47, %v6002_v26 }
 0x247   : > { %v4743_v32 = vpop.f32.mrf.mxu0 }
 0x248   : > { %1070 = vmax.xlane.f32.xlu0 %v6005_v10  ;;  %v6016_v57 = vadd.f32 %v4743_v32, %v6009_v30  ;;  %v6038_v32 = vld [vmem:[%s5927_s23 + $0x68] sm:$0xff] }
 0x249   : > { %v1039_v58 = vpop.f32.mrf.mxu0  ;;  %7830 = vst [vmem:[#allocation18_spill] sm:$0xff] %v6038_v32 }
 0x24a   : > { %1072 = vmax.xlane.f32.xlu1 %v6012_v40  ;;  %v6024_v8 = vadd.f32 %v1039_v58, %v6020_v48 }
 0x24b   : > { %v4744_v4 = vpop.f32.mrf.mxu0 }
 0x24c   : > { %1082 = vmax.xlane.f32.xlu0 %v6016_v57  ;;  %v6035_v61 = vadd.f32 %v4744_v4, %v6032_v22 }
 0x24d   : > { %v1042_v47 = vpop.f32.mrf.mxu0 }
 0x24e   : > { %v6042_v58 = vadd.f32 %v1042_v47, %v6038_v32 }
 0x250   : > { %1078 = vmax.xlane.f32.xlu0 %v6024_v8 }
 0x25b   : > { %1343 = vrot.lane.b32.xlu1 %v5855_v29, %s5511_s19 }
 0x266   : > { %1345 = vrot.lane.b32.xlu0 %v5844_v60, %s5511_s19 }
 0x27f   : > { %1084 = vmax.xlane.f32.xlu1 %v6035_v61 }
 0x283   : > { %1080 = vmax.xlane.f32.xlu1 %v6042_v58 }
 0x2bb   : > { %v1059_v2 = vpop.xlane.xlu1 %1058 }
 0x2bc   : > { %v1088_v34 = vsub.f32 %v5936_v28, %v1059_v2 }
 0x2bd   : > { %v1055_v55 = vpop.xlane.xlu0 %1054 }
 0x2be   : > { %v1106_v35 = vmul.f32 1.442695, %v1088_v34  ;;  %v1086_v4 = vsub.f32 %v5942_v1, %v1055_v55 }
 0x2bf   : > { %v1061_v60 = vpop.xlane.xlu1 %1060 }
 0x2c0   : > { %5157 = vpow2.f32 %v1106_v35  ;;  %v1102_v38 = vmul.f32 1.442695, %v1086_v4  ;;  %v1089_v22 = vsub.f32 %v5949_v7, %v1061_v60 }
 0x2c1   : > { %v1057_v48 = vpop.xlane.xlu0 %1056 }
 0x2c2   : > { %v1108_v30 = vmul.f32 1.442695, %v1089_v22  ;;  %v1087_v47 = vsub.f32 %v5953_v42, %v1057_v48  ;;  %5159 = vpow2.f32 %v1102_v38 }
 0x2c4   : > { %5161 = vpow2.f32 %v1108_v30  ;;  %v1104_v32 = vmul.f32 1.442695, %v1087_v47 }
 0x2c5   : > { %v1067_v55 = vpop.xlane.xlu0 %1066 }
 0x2c6   : > { %5163 = vpow2.f32 %v1104_v32  ;;  %v1092_v7 = vsub.f32 %v5964_v21, %v1067_v55 }
 0x2c7   : > { %v1069_v28 = vpop.xlane.xlu1 %1068 }
 0x2c8   : > { %v1114_v22 = vmul.f32 1.442695, %v1092_v7  ;;  %v1093_v4 = vsub.f32 %v5970_v6, %v1069_v28 }
 0x2c9   : > { %v1063_v38 = vpop.xlane.xlu0 %1062 }
 0x2ca   : > { %v1090_v30 = vsub.f32 %v5977_v14, %v1063_v38  ;;  %5165 = vpow2.f32 %v1114_v22  ;;  %v1116_v51 = vmul.f32 1.442695, %v1093_v4 }
 0x2cb   : > { %v1065_v42 = vpop.xlane.xlu1 %1064 }
 0x2cc   : > { %v1091_v32 = vsub.f32 %v5984_v13, %v1065_v42  ;;  %v1110_v47 = vmul.f32 1.442695, %v1090_v30 }
 0x2cd   : > { %v6051_v56 = vpop.eup %5157  ;;  %v1075_v60 = vpop.xlane.xlu0 %1074 }
 0x2ce   : > { %1138 = vadd.xlane.f32.xlu0 %v6051_v56  ;;  %5167 = vpow2.f32 %v1110_v47  ;;  %v1096_v21 = vsub.f32 %v5991_v20, %v1075_v60 }
 0x2cf   : > { %v6054_v2 = vpop.eup %5159  ;;  %v1077_v16 = vpop.xlane.xlu1 %1076 }
 0x2d0   : > { %v1122_v13 = vmul.f32 1.442695, %v1096_v21  ;;  %v1097_v7 = vsub.f32 %v5998_v25, %v1077_v16 }
 0x2d1   : > { %v6056_v34 = vpop.eup %5161  ;;  %v1071_v1 = vpop.xlane.xlu0 %1070 }
 0x2d2   : > { %1140 = vadd.xlane.f32.xlu1 %v6056_v34  ;;  %1134 = vadd.xlane.f32.xlu0 %v6054_v2  ;;  %v1094_v6 = vsub.f32 %v6005_v10, %v1071_v1 }
 0x2d3   : > { %v6060_v35 = vpop.eup %5163  ;;  %v1073_v38 = vpop.xlane.xlu1 %1072 }
 0x2d4   : > { %v1118_v42 = vmul.f32 1.442695, %v1094_v6 }
 0x2d5   : > { %v1083_v48 = vpop.xlane.xlu0 %1082 }
 0x2d6   : > { %1136 = vadd.xlane.f32.xlu1 %v6060_v35  ;;  %v1100_v0 = vsub.f32 %v6016_v57, %v1083_v48 }
 0x2d7   : > { %v6076_v57 = vpop.permute.xlu1 %1343  ;;  %v6078_v30 = vpop.eup %5165 }
 0x2d8   : > { %v1130_v55 = vmul.f32 1.442695, %v1100_v0 }
 0x2db   : > { %v6081_v0 = vpop.eup %5167 }
 0x2e7   : > { %1339 = vrot.lane.b32.xlu1 %v5875_v19, %s5511_s19  ;;  %v1112_v19 = vmul.f32 1.442695, %v1091_v32 }
 0x2e8   : > { %1341 = vrot.lane.b32.xlu0 %v5865_v17, %s5511_s19  ;;  %v1079_v17 = vpop.xlane.xlu0 %1078 }
 0x2e9   : > { %5169 = vpow2.f32 %v1112_v19  ;;  %v1098_v14 = vsub.f32 %v6024_v8, %v1079_v17  ;;  %v1124_v19 = vmul.f32 1.442695, %v1097_v7 }
 0x2ea   : > { %5171 = vpow2.f32 %v1116_v51  ;;  %v1095_v51 = vsub.f32 %v6012_v40, %v1073_v38 }
 0x2eb   : > { %5173 = vpow2.f32 %v1130_v55  ;;  %v1126_v28 = vmul.f32 1.442695, %v1098_v14 }
 0x2ec   : > { %5175 = vpow2.f32 %v1122_v13  ;;  %v1120_v60 = vmul.f32 1.442695, %v1095_v51  ;;  %v1346_v55 = vpop.permute.xlu0 %1345 }
 0x2ed   : > { %5177 = vpow2.f32 %v1126_v28 }
 0x2ee   : > { %5179 = vpow2.f32 %v1118_v42 }
 0x2ef   : > { %5181 = vpow2.f32 %v1124_v19 }
 0x2f6   : > { %v6085_v10 = vpop.eup %5169 }
 0x2f7   : > { %v6089_v8 = vpop.eup %5171 }
 0x2f8   : > { %v6092_v48 = vpop.eup %5173 }
 0x2f9   : > { %v6096_v40 = vpop.eup %5175 }
 0x2fa   : > { %v6098_v22 = vpop.eup %5177 }
 0x2fb   : > { %v6102_v32 = vpop.eup %5179 }
 0x307   : > { %1146 = vadd.xlane.f32.xlu0 %v6078_v30 }
 0x308   : > { %v1085_v17 = vpop.xlane.xlu1 %1084 }
 0x309   : > { %v1101_v20 = vsub.f32 %v6035_v61, %v1085_v17 }
 0x30b   : > { %v1132_v16 = vmul.f32 1.442695, %v1101_v20  ;;  %1144 = vadd.xlane.f32.xlu0 %v6085_v10  ;;  %1142 = vadd.xlane.f32.xlu1 %v6081_v0 }
 0x30c   : > { %v1081_v25 = vpop.xlane.xlu1 %1080 }
 0x30d   : > { %5183 = vpow2.f32 %v1132_v16  ;;  %v1099_v1 = vsub.f32 %v6042_v58, %v1081_v25  ;;  %v6105_v58 = vpop.eup %5181 }
 0x30e   : > { %5185 = vpow2.f32 %v1120_v60 }
 0x30f   : > { %1148 = vadd.xlane.f32.xlu1 %v6089_v8  ;;  %1162 = vadd.xlane.f32.xlu0 %v6092_v48  ;;  %v1128_v61 = vmul.f32 1.442695, %v1099_v1  ;;  %v1397_v1 = vsel %vm908_vm0, %v5917_v39, 0 }
 0x311   : > { %5187 = vpow2.f32 %v1128_v61 }
 0x313   : > { %1154 = vadd.xlane.f32.xlu1 %v6096_v40  ;;  %1158 = vadd.xlane.f32.xlu0 %v6098_v22 }
 0x317   : > { %1150 = vadd.xlane.f32.xlu1 %v6102_v32 }
 0x31a   : > { %v6107_v4 = vpop.eup %5183 }
 0x31b   : > { %1156 = vadd.xlane.f32.xlu1 %v6105_v58  ;;  %1164 = vadd.xlane.f32.xlu0 %v6107_v4  ;;  %v6111_v47 = vpop.eup %5185 }
 0x31e   : > { %v6114_v21 = vpop.eup %5187 }
 0x31f   : > { %1152 = vadd.xlane.f32.xlu1 %v6111_v47 }
 0x323   : > { %1160 = vadd.xlane.f32.xlu1 %v6114_v21 }
 0x331   : > { %1337 = vrot.lane.b32.xlu0 %v5885_v36, %s5511_s19 }
 0x334   : > { %1335 = vrot.lane.b32.xlu1 %v5895_v50, %s5511_s19 }
 0x335   : > { %1311 = vrot.lane.b32.xlu0 %v5695_v44, %s5511_s19 }
 0x338   : > { %1313 = vrot.lane.b32.xlu1 %v5707_v52, %s5511_s19 }
 0x339   : > { %1315 = vrot.lane.b32.xlu0 %v5721_v63, %s5511_s19 }
 0x33c   : > { %1317 = vrot.lane.b32.xlu1 %v5733_v11, %s5511_s19 }
 0x33d   : > { %1319 = vrot.lane.b32.xlu0 %v5747_v24, %s5511_s19 }
 0x340   : > { %1321 = vrot.lane.b32.xlu1 %v5761_v49, %s5511_s19 }
 0x341   : > { %1323 = vrot.lane.b32.xlu0 %v5788_v23, %s5511_s19 }
 0x344   : > { %1325 = vrot.lane.b32.xlu1 %v5814_v41, %s5511_s19 }
 0x345   : > { %1670 = vrot.lane.b32.xlu0 %v5758_v45, %s5511_s19 }
 0x348   : > { %1668 = vrot.lane.b32.xlu1 %v5763_v53, %s5511_s19 }
 0x349   : > { %1666 = vrot.lane.b32.xlu0 %v5772_v3, %s5511_s19 }
 0x34c   : > { %1660 = vrot.lane.b32.xlu1 %v5810_v37, %s5511_s19 }
 0x34d   : > { %1664 = vrot.lane.b32.xlu0 %v5784_v18, %s5511_s19 }
 0x350   : > { %1656 = vrot.lane.b32.xlu1 %v5836_v54, %s5511_s19 }
 0x351   : > { %1662 = vrot.lane.b32.xlu0 %v5797_v27, %s5511_s19 }
 0x357   : > { %v1139_v14 = vpop.xlane.xlu0 %1138 }
 0x35b   : > { %v1141_v38 = vpop.xlane.xlu1 %1140  ;;  %v1135_v13 = vpop.xlane.xlu0 %1134 }
 0x35c   : > { %5189 = vrcp.f32 %v1141_v38 }
 0x35d   : > { %5191 = vrcp.f32 %v1135_v13 }
 0x35e   : > { %5193 = vrcp.f32 %v1139_v14 }
 0x35f   : > { %v1137_v6 = vpop.xlane.xlu1 %1136  ;;  %v1342_v39 = vpop.permute.xlu0 %1341 }
 0x360   : > { %5195 = vrcp.f32 %v1137_v6 }
 0x369   : > { %v5190_v28 = vpop.eup %5189 }
 0x36a   : > { %v5192_v7 = vpop.eup %5191  ;;  %v1185_v17 = vmul.f32 %v5190_v28, %v6056_v34  ;;  %v1394_v34 = vsel %vm908_vm0, %v6045_v15, 0 }
 0x36b   : > { %v5194_v42 = vpop.eup %5193  ;;  %v1182_v51 = vmul.f32 %v5192_v7, %v6054_v2  ;;  %v1391_v2 = vsel %vm908_vm0, %v1346_v55, 0 }
 0x36c   : > { %v1184_v16 = vmul.f32 %v5194_v42, %v6051_v56  ;;  %v1388_v56 = vsel %vm908_vm0, %v6076_v57, 0 }
 0x36d   : > { %v5196_v19 = vpop.eup %5195 }
 0x36e   : > { %v1183_v20 = vmul.f32 %v5196_v19, %v6060_v35  ;;  %v1199_v60 = vpack.c.bf16 %v1185_v17, %v1184_v16  ;;  %v1340_v35 = vpop.permute.xlu1 %1339 }
 0x370   : > { %v1198_v25 = vpack.c.bf16 %v1183_v20, %v1182_v51 }
 0x372   : > { %4761 = vmatprep.mubr.bf16.mxu1 %v1198_v25 }
 0x373   : > { %4762 = vmatmul.mubr.bf16.vlgmr.msra.gmra.mxu1 %v1199_v60 }
 0x374   : > { %4778 = vmatpush3.bf16.xpose.msra.mxu1 %v1397_v1 }
 0x375   : > { %5026 = vmatprep.subr.msk.bf16.mxu1 %vm908_vm0, %v6045_v15  ;;  %v1385_v15 = vsel %vm908_vm0, %v1342_v39, 0 }
 0x37c   : > { %4780 = vmatpush3.bf16.xpose.msra.mxu1 %v1394_v34 }
 0x37d   : > { %5027 = vmatprep.subr.msk.bf16.mxu1 %vm908_vm0, %v1346_v55 }
 0x384   : > { %4782 = vmatpush3.bf16.xpose.msra.mxu1 %v1391_v2 }
 0x385   : > { %5028 = vmatprep.subr.msk.bf16.mxu1 %vm908_vm0, %v6076_v57  ;;  %v1382_v57 = vsel %vm908_vm0, %v1340_v35, 0 }
 0x38c   : > { %4784 = vmatpush3.bf16.xpose.msra.mxu1 %v1388_v56 }
 0x38d   : > { %5029 = vmatprep.subr.msk.bf16.mxu1 %vm908_vm0, %v1342_v39 }
 0x390   : > { %v1147_v61 = vpop.xlane.xlu0 %1146 }
 0x394   : > { %4786 = vmatpush3.bf16.xpose.msra.mxu1 %v1385_v15  ;;  %v1143_v14 = vpop.xlane.xlu1 %1142  ;;  %v1145_v38 = vpop.xlane.xlu0 %1144 }
 0x395   : > { %5197 = vrcp.f32 %v1143_v14  ;;  %5030 = vmatprep.subr.msk.bf16.mxu1 %vm908_vm0, %v1340_v35 }
 0x396   : > { %5199 = vrcp.f32 %v1145_v38 }
 0x397   : > { %5201 = vrcp.f32 %v1147_v61 }
 0x398   : > { %v1149_v55 = vpop.xlane.xlu1 %1148  ;;  %v1163_v13 = vpop.xlane.xlu0 %1162 }
 0x399   : > { %5203 = vrcp.f32 %v1149_v55 }
 0x39c   : > { %4788 = vmatpush3.bf16.xpose.msra.mxu1 %v1382_v57  ;;  %v1155_v6 = vpop.xlane.xlu1 %1154  ;;  %v1159_v28 = vpop.xlane.xlu0 %1158 }
 0x3a0   : > { %v1151_v7 = vpop.xlane.xlu1 %1150 }
 0x3a2   : > { %v5198_v42 = vpop.eup %5197 }
 0x3a3   : > { %v5200_v19 = vpop.eup %5199  ;;  %v1186_v17 = vmul.f32 %v5198_v42, %v6081_v0 }
 0x3a4   : > { %v5202_v51 = vpop.eup %5201  ;;  %v1157_v20 = vpop.xlane.xlu1 %1156  ;;  %v1187_v25 = vmul.f32 %v5200_v19, %v6085_v10 }
 0x3a5   : > { %v1165_v16 = vpop.xlane.xlu0 %1164  ;;  %5205 = vrcp.f32 %v1157_v20  ;;  %v1188_v34 = vmul.f32 %v5202_v51, %v6078_v30 }
 0x3a6   : > { %v5204_v60 = vpop.eup %5203  ;;  %v1200_v1 = vpack.c.bf16 %v1187_v25, %v1186_v17  ;;  %5207 = vrcp.f32 %v1151_v7 }
 0x3a7   : > { %v1189_v2 = vmul.f32 %v5204_v60, %v6089_v8  ;;  %5209 = vrcp.f32 %v1155_v6 }
 0x3a8   : > { %4765 = vmatprep.mubr.bf16.mxu1 %v1200_v1  ;;  %v1153_v56 = vpop.xlane.xlu1 %1152 }
 0x3a9   : > { %v1338_v39 = vpop.permute.xlu0 %1337  ;;  %5211 = vrcp.f32 %v1153_v56  ;;  %v1201_v35 = vpack.c.bf16 %v1189_v2, %v1188_v34 }
 0x3aa   : > { %5031 = vmatprep.subr.msk.bf16.mxu1 %vm908_vm0, %v1338_v39  ;;  %v1379_v0 = vsel %vm908_vm0, %v1338_v39, 0  ;;  %5213 = vrcp.f32 %v1159_v28 }
 0x3ab   : > { %4790 = vmatpush3.bf16.xpose.msra.mxu1 %v1379_v0 }
 0x3ac   : > { %4766 = vmatmul.mubr.bf16.gmra.mxu1 %v1201_v35  ;;  %v1161_v10 = vpop.xlane.xlu1 %1160 }
 0x3ad   : > { %v1312_v61 = vpop.permute.xlu0 %1311  ;;  %5215 = vrcp.f32 %v1161_v10 }
 0x3ae   : > { %5217 = vrcp.f32 %v1165_v16 }
 0x3af   : > { %5219 = vrcp.f32 %v1163_v13 }
 0x3b0   : > { %v1336_v30 = vpop.permute.xlu1 %1335 }
 0x3b1   : > { %v1316_v8 = vpop.permute.xlu0 %1315  ;;  %5032 = vmatprep.subr.msk.bf16.mxu1 %vm908_vm0, %v1336_v30  ;;  %v1376_v15 = vsel %vm908_vm0, %v1336_v30, 0 }
 0x3b2   : > { %v5206_v14 = vpop.eup %5205 }
 0x3b3   : > { %4792 = vmatpush3.bf16.xpose.msra.mxu1 %v1376_v15  ;;  %v5208_v38 = vpop.eup %5207  ;;  %v1193_v28 = vmul.f32 %v5206_v14, %v6105_v58 }
 0x3b4   : > { %v1314_v55 = vpop.permute.xlu1 %1313  ;;  %v5210_v6 = vpop.eup %5209  ;;  %v1190_v42 = vmul.f32 %v5208_v38, %v6102_v32 }
 0x3b5   : > { %v1320_v57 = vpop.permute.xlu0 %1319  ;;  %v1192_v20 = vmul.f32 %v5210_v6, %v6096_v40 }
 0x3b6   : > { %v5212_v7 = vpop.eup %5211 }
 0x3b7   : > { %v1191_v19 = vmul.f32 %v5212_v7, %v6111_v47  ;;  %v5214_v13 = vpop.eup %5213  ;;  %v1203_v60 = vpack.c.bf16 %v1193_v28, %v1192_v20 }
 0x3b8   : > { %v1318_v17 = vpop.permute.xlu1 %1317  ;;  %v1194_v34 = vmul.f32 %v5214_v13, %v6098_v22 }
 0x3b9   : > { %v1324_v51 = vpop.permute.xlu0 %1323  ;;  %v1202_v16 = vpack.c.bf16 %v1191_v19, %v1190_v42 }
 0x3ba   : > { %v5216_v25 = vpop.eup %5215 }
 0x3bb   : > { %v5218_v1 = vpop.eup %5217  ;;  %4769 = vmatprep.mubr.bf16.mxu1 %v1202_v16  ;;  %v1195_v2 = vmul.f32 %v5216_v25, %v6114_v21 }
 0x3bc   : > { %v1322_v56 = vpop.permute.xlu1 %1321  ;;  %4770 = vmatmul.mubr.bf16.gmra.mxu1 %v1203_v60  ;;  %v5220_v32 = vpop.eup %5219  ;;  %v1197_v47 = vmul.f32 %v5218_v1, %v6107_v4 }
 0x3bd   : > { %v1671_v58 = vpop.permute.xlu0 %1670  ;;  %v1204_v39 = vpack.c.bf16 %v1195_v2, %v1194_v34  ;;  %v1196_v0 = vmul.f32 %v5220_v32, %v6092_v48 }
 0x3be   : > { %4809 = vmatprep.subr.bf16.mxu0 %v1671_v58 }
 0x3bf   : > { %4810 = vmatpush3.bf16.msra.mxu0 %v1671_v58  ;;  %4773 = vmatprep.mubr.bf16.mxu1 %v1204_v39  ;;  %v1205_v10 = vpack.c.bf16 %v1197_v47, %v1196_v0 }
 0x3c0   : > { %v1326_v40 = vpop.permute.xlu1 %1325 }
 0x3c1   : > { %v1667_v35 = vpop.permute.xlu0 %1666 }
 0x3c4   : > { %v1669_v30 = vpop.permute.xlu1 %1668  ;;  %4774 = vmatmul.mubr.bf16.gmra.mxu1 %v1205_v10  ;;  %v7848_v10 = vld [vmem:[#allocation12_spill] sm:$0xff] }
 0x3c5   : > { %4793 = vmatprep.mubr.msk.bf16.mxu1 %vm908_vm0, %v1312_v61  ;;  %4811 = vmatprep.subr.bf16.mxu0 %v1669_v30  ;;  %v1665_v22 = vpop.permute.xlu0 %1664 }
 0x3c6   : > { %4812 = vmatpush3.bf16.msra.mxu0 %v1669_v30 }
 0x3c7   : > { %4813 = vmatprep.subr.bf16.mxu0 %v1667_v35 }
 0x3c8   : > { %v1661_v48 = vpop.permute.xlu1 %1660 }
 0x3c9   : > { %v1663_v4 = vpop.permute.xlu0 %1662 }
 0x3ca   : > { %4814 = vmatpush3.bf16.msra.mxu0 %v1667_v35 }
 0x3cb   : > { %4815 = vmatprep.subr.bf16.mxu0 %v1665_v22 }
 0x3cc   : > { %4794 = vmatmul.mubr.msk.bf16.vlgmr.msra.gmra.mxu1 %vm908_vm0, %v1314_v55 }
 0x3cd   : > { %4797 = vmatprep.mubr.msk.bf16.mxu1 %vm908_vm0, %v1316_v8 }
 0x3ce   : > { %4816 = vmatpush3.bf16.msra.mxu0 %v1665_v22 }
 0x3cf   : > { %4817 = vmatprep.subr.bf16.mxu0 %v1663_v4 }
 0x3d2   : > { %4818 = vmatpush3.bf16.msra.mxu0 %v1663_v4 }
 0x3d3   : > { %4819 = vmatprep.subr.bf16.mxu0 %v1661_v48 }
 0x3d4   : > { %4798 = vmatmul.mubr.msk.bf16.gmra.mxu1 %vm908_vm0, %v1318_v17 }
 0x3d5   : > { %4801 = vmatprep.mubr.msk.bf16.mxu1 %vm908_vm0, %v1320_v57 }
 0x3d6   : > { %4820 = vmatpush3.bf16.msra.mxu0 %v1661_v48  ;;  %v7850_v48 = vld [vmem:[#allocation14_spill] sm:$0xff] }
 0x3dc   : > { %4802 = vmatmul.mubr.msk.bf16.gmra.mxu1 %vm908_vm0, %v1322_v56 }
 0x3dd   : > { %4805 = vmatprep.mubr.msk.bf16.mxu1 %vm908_vm0, %v1324_v51 }
 0x3e4   : > { %4806 = vmatmul.mubr.msk.bf16.gmra.mxu1 %vm908_vm0, %v1326_v40 }
 0x433   : > { %v6195_v21 = vpop.f32.mrf.mxu1 }
 0x434   : > { %7831 = vst [vmem:[#allocation19_spill] sm:$0xff] %v6195_v21  ;;  %v6521_v21 = vld [vmem:[%s5927_s23 + $0x48] sm:$0xff] }
 0x435   : > { %v6197_v61 = vpop.f32.mrf.mxu1 }
 0x436   : > { %7832 = vst [vmem:[#allocation20_spill] sm:$0xff] %v6197_v61 }
 0x437   : > { %v6199_v8 = vpop.f32.mrf.mxu1 }
 0x438   : > { %7833 = vst [vmem:[#allocation21_spill] sm:$0xff] %v6199_v8 }
 0x439   : > { %v6201_v15 = vpop.f32.mrf.mxu1 }
 0x43a   : > { %7834 = vst [vmem:[#allocation22_spill] sm:$0xff] %v6201_v15 }
 0x46c   : > { %v6203_v14 = vpop.f32.mrf.mxu1 }
 0x46d   : > { %7835 = vst [vmem:[#allocation23_spill] sm:$0xff] %v6203_v14 }
 0x46e   : > { %v6205_v38 = vpop.f32.mrf.mxu1 }
 0x46f   : > { %7836 = vst [vmem:[#allocation24_spill] sm:$0xff] %v6205_v38 }
 0x470   : > { %v6207_v55 = vpop.f32.mrf.mxu1 }
 0x471   : > { %7837 = vst [vmem:[#allocation25_spill] sm:$0xff] %v6207_v55  ;;  %v6514_v55 = vld [vmem:[%s5927_s23 + $0x58] sm:$0xff] }
 0x472   : > { %v6209_v57 = vpop.f32.mrf.mxu1 }
 0x473   : > { %7838 = vst [vmem:[#allocation26_spill] sm:$0xff] %v6209_v57 }
 0x47c   : > { %v6211_v6 = vpop.f32.mrf.mxu1 }
 0x47d   : > { %7839 = vst [vmem:[#allocation27_spill] sm:$0xff] %v6211_v6 }
 0x47e   : > { %v6213_v7 = vpop.f32.mrf.mxu1 }
 0x47f   : > { %7840 = vst [vmem:[#allocation28_spill] sm:$0xff] %v6213_v7 }
 0x480   : > { %v6215_v28 = vpop.f32.mrf.mxu1 }
 0x481   : > { %7841 = vst [vmem:[#allocation29_spill] sm:$0xff] %v6215_v28 }
 0x482   : > { %v6217_v42 = vpop.f32.mrf.mxu1 }
 0x483   : > { %7842 = vst [vmem:[#allocation30_spill] sm:$0xff] %v6217_v42 }
 0x484   : > { %v6219_v19 = vpop.f32.mrf.mxu1 }
 0x485   : > { %7843 = vst [vmem:[#allocation31_spill] sm:$0xff] %v6219_v19 }
 0x486   : > { %v6221_v13 = vpop.f32.mrf.mxu1 }
 0x487   : > { %7844 = vst [vmem:[#allocation32_spill] sm:$0xff] %v6221_v13 }
 0x488   : > { %v6223_v17 = vpop.f32.mrf.mxu1 }
 0x489   : > { %7845 = vst [vmem:[#allocation33_spill] sm:$0xff] %v6223_v17 }
 0x48a   : > { %v6225_v51 = vpop.f32.mrf.mxu1 }
 0x48b   : > { %7846 = vst [vmem:[#allocation34_spill] sm:$0xff] %v6225_v51 }
 0x48c   : > { %v4795_v20 = vpop.f32.mrf.mxu1 }
 0x48d   : > { %v1442_v16 = vadd.f32 %v4795_v20, %v5930_v43 }
 0x48e   : > { %v1433_v25 = vpop.f32.mrf.mxu1 }
 0x48f   : > { %1500 = vmax.xlane.f32.xlu0 %v1442_v16  ;;  %v1434_v1 = vadd.f32 %v1433_v25, %v5933_v5 }
 0x490   : > { %v4796_v60 = vpop.f32.mrf.mxu1 }
 0x491   : > { %v1445_v58 = vadd.f32 %v4796_v60, %v5939_v31  ;;  %v7851_v60 = vld [vmem:[#allocation15_spill] sm:$0xff] }
 0x492   : > { %v1436_v34 = vpop.f32.mrf.mxu1 }
 0x493   : > { %v6230_v2 = vadd.f32 %v1436_v34, %v5946_v33  ;;  %1496 = vmax.xlane.f32.xlu0 %v1434_v1 }
 0x494   : > { %v4799_v56 = vpop.f32.mrf.mxu1 }
 0x495   : > { %1498 = vmax.xlane.f32.xlu1 %v6230_v2 }
 0x496   : > { %v1449_v32 = vpop.f32.mrf.mxu1 }
 0x497   : > { %1502 = vmax.xlane.f32.xlu0 %v1445_v58  ;;  %v6258_v30 = vadd.f32 %v1449_v32, %v7848_v10  ;;  %v7852_v32 = vld [vmem:[#allocation16_spill] sm:$0xff] }
 0x498   : > { %v4800_v39 = vpop.f32.mrf.mxu1  ;;  %v7856_v10 = vld [vmem:[#allocation8_spill] sm:$0xff] }
 0x499   : > { %v6235_v43 = vadd.f32 %v4800_v39, %v5961_v59 }
 0x49a   : > { %v1452_v47 = vpop.f32.mrf.mxu1 }
 0x49b   : > { %1510 = vmax.xlane.f32.xlu1 %v6235_v43  ;;  %v6239_v40 = vadd.f32 %v1452_v47, %v5974_v12  ;;  %v7847_v12 = vld [vmem:[#allocation11_spill] sm:$0xff]  ;;  %v7853_v47 = vld [vmem:[#allocation17_spill] sm:$0xff] }
 0x49c   : > { %v4803_v5 = vpop.f32.mrf.mxu1 }
 0x49e   : > { %v1465_v33 = vpop.f32.mrf.mxu1 }
 0x49f   : > { %1506 = vmax.xlane.f32.xlu1 %v6239_v40  ;;  %v6266_v20 = vadd.f32 %v1465_v33, %v7850_v48  ;;  %v7854_v33 = vld [vmem:[#allocation18_spill] sm:$0xff] }
 0x4a0   : > { %v4804_v0 = vpop.f32.mrf.mxu1 }
 0x4a1   : > { %v6243_v31 = vadd.f32 %v4804_v0, %v5988_v9  ;;  %v1458_v9 = vadd.f32 %v4799_v56, %v7847_v12  ;;  %v7855_v12 = vld [vmem:[#allocation5_spill] sm:$0xff] }
 0x4a2   : > { %v1468_v35 = vpop.f32.mrf.mxu1 }
 0x4a3   : > { %1518 = vmax.xlane.f32.xlu1 %v6243_v31  ;;  %v6247_v59 = vadd.f32 %v1468_v35, %v6002_v26  ;;  %v7849_v26 = vld [vmem:[#allocation13_spill] sm:$0xff] }
 0x4a4   : > { %v6262_v22 = vadd.f32 %v4803_v5, %v7849_v26  ;;  %v4807_v4 = vpop.f32.mrf.mxu1  ;;  %v7857_v26 = vld [vmem:[#allocation9_spill] sm:$0xff] }
 0x4a5   : > { %v6270_v34 = vadd.f32 %v4807_v4, %v7851_v60 }
 0x4a6   : > { %v1481_v25 = vpop.f32.mrf.mxu1 }
 0x4a7   : > { %1514 = vmax.xlane.f32.xlu1 %v6247_v59  ;;  %v6274_v39 = vadd.f32 %v1481_v25, %v7852_v32  ;;  %v1657_v25 = vpop.permute.xlu1 %1656 }
 0x4a8   : > { %v4808_v56 = vpop.f32.mrf.mxu1 }
 0x4a9   : > { %v6277_v5 = vadd.f32 %v4808_v56, %v7853_v47 }
 0x4aa   : > { %v1484_v0 = vpop.f32.mrf.mxu1 }
 0x4ab   : > { %v6282_v35 = vadd.f32 %v1484_v0, %v7854_v33 }
 0x4ad   : > { %1658 = vrot.lane.b32.xlu0 %v5822_v46, %s5511_s19 }
 0x4b8   : > { %1805 = vrot.lane.b32.xlu1 %v5794_v62, %s5512_s24 }
 0x4bc   : > { %1801 = vrot.lane.b32.xlu1 %v5855_v29, %s5512_s24 }
 0x4cc   : > { %1508 = vmax.xlane.f32.xlu0 %v1458_v9 }
 0x4d0   : > { %1504 = vmax.xlane.f32.xlu0 %v6258_v30 }
 0x4d4   : > { %1516 = vmax.xlane.f32.xlu0 %v6262_v22 }
 0x4d8   : > { %1512 = vmax.xlane.f32.xlu0 %v6266_v20 }
 0x4dc   : > { %1524 = vmax.xlane.f32.xlu0 %v6270_v34 }
 0x4e0   : > { %1526 = vmax.xlane.f32.xlu1 %v6277_v5  ;;  %1520 = vmax.xlane.f32.xlu0 %v6274_v39 }
 0x4e4   : > { %1522 = vmax.xlane.f32.xlu1 %v6282_v35 }
 0x4f6   : > { %1807 = vrot.lane.b32.xlu0 %v7855_v12, %s5512_s24 }
 0x4fa   : > { %1803 = vrot.lane.b32.xlu0 %v7856_v10, %s5512_s24 }
 0x4fe   : > { %1799 = vrot.lane.b32.xlu0 %v7857_v26, %s5512_s24 }
 0x518   : > { %v1501_v4 = vpop.xlane.xlu0 %1500 }
 0x519   : > { %v1530_v48 = vsub.f32 %v1442_v16, %v1501_v4 }
 0x51b   : > { %v1548_v60 = vmul.f32 1.442695, %v1530_v48 }
 0x51c   : > { %v1497_v56 = vpop.xlane.xlu0 %1496 }
 0x51d   : > { %5221 = vpow2.f32 %v1548_v60  ;;  %v1528_v32 = vsub.f32 %v1434_v1, %v1497_v56 }
 0x51e   : > { %v1499_v47 = vpop.xlane.xlu1 %1498 }
 0x51f   : > { %v1544_v0 = vmul.f32 1.442695, %v1528_v32  ;;  %v1529_v17 = vsub.f32 %v6230_v2, %v1499_v47 }
 0x520   : > { %v1503_v33 = vpop.xlane.xlu0 %1502 }
 0x521   : > { %5223 = vpow2.f32 %v1544_v0  ;;  %v1531_v19 = vsub.f32 %v1445_v58, %v1503_v33  ;;  %v1546_v42 = vmul.f32 1.442695, %v1529_v17 }
 0x523   : > { %v1550_v51 = vmul.f32 1.442695, %v1531_v19 }
 0x524   : > { %v1659_v13 = vpop.permute.xlu0 %1658 }
 0x525   : > { %5225 = vpow2.f32 %v1550_v51  ;;  %4821 = vmatprep.subr.bf16.mxu0 %v1659_v13 }
 0x526   : > { %4822 = vmatpush3.bf16.msra.mxu0 %v1659_v13  ;;  %5227 = vpow2.f32 %v1546_v42  ;;  %v1511_v13 = vpop.xlane.xlu1 %1510  ;;  %v7858_v42 = vld [vmem:[#allocation10_spill] sm:$0xff] }
 0x527   : > { %4823 = vmatprep.subr.bf16.mxu0 %v1657_v25  ;;  %v1535_v60 = vsub.f32 %v6235_v43, %v1511_v13 }
 0x529   : > { %v1558_v6 = vmul.f32 1.442695, %v1535_v60 }
 0x52a   : > { %v6292_v16 = vpop.eup %5221  ;;  %4824 = vmatpush3.bf16.msra.mxu0 %v1657_v25  ;;  %v1507_v17 = vpop.xlane.xlu1 %1506 }
 0x52b   : > { %1580 = vadd.xlane.f32.xlu1 %v6292_v16  ;;  %v1533_v2 = vsub.f32 %v6239_v40, %v1507_v17 }
 0x52d   : > { %v1554_v56 = vmul.f32 1.442695, %v1533_v2 }
 0x52e   : > { %v6295_v1 = vpop.eup %5223  ;;  %v1519_v51 = vpop.xlane.xlu1 %1518 }
 0x52f   : > { %1576 = vadd.xlane.f32.xlu1 %v6295_v1 }
 0x532   : > { %v6298_v4 = vpop.eup %5225  ;;  %v1515_v32 = vpop.xlane.xlu1 %1514 }
 0x533   : > { %1582 = vadd.xlane.f32.xlu1 %v6298_v4  ;;  %v6301_v19 = vpop.eup %5227 }
 0x536   : > { %v6310_v57 = vpop.permute.xlu1 %1805 }
 0x537   : > { %1578 = vadd.xlane.f32.xlu1 %v6301_v19 }
 0x548   : > { %1797 = vrot.lane.b32.xlu1 %v7858_v42, %s5512_s24 }
 0x555   : > { %v1509_v58 = vpop.xlane.xlu0 %1508 }
 0x556   : > { %v1534_v48 = vsub.f32 %v1458_v9, %v1509_v58  ;;  %v1539_v9 = vsub.f32 %v6243_v31, %v1519_v51 }
 0x558   : > { %v1556_v25 = vmul.f32 1.442695, %v1534_v48  ;;  %v1566_v2 = vmul.f32 1.442695, %v1539_v9  ;;  %v1537_v48 = vsub.f32 %v6247_v59, %v1515_v32 }
 0x559   : > { %v1505_v47 = vpop.xlane.xlu0 %1504 }
 0x55a   : > { %5229 = vpow2.f32 %v1556_v25  ;;  %v1532_v0 = vsub.f32 %v6258_v30, %v1505_v47  ;;  %v6314_v30 = vpop.permute.xlu1 %1801 }
 0x55b   : > { %5231 = vpow2.f32 %v1554_v56 }
 0x55c   : > { %v1552_v33 = vmul.f32 1.442695, %v1532_v0 }
 0x55d   : > { %v1517_v7 = vpop.xlane.xlu0 %1516 }
 0x55e   : > { %5233 = vpow2.f32 %v1552_v33  ;;  %v1538_v28 = vsub.f32 %v6262_v22, %v1517_v7 }
 0x55f   : > { %5235 = vpow2.f32 %v1558_v6 }
 0x560   : > { %v1564_v40 = vmul.f32 1.442695, %v1538_v28 }
 0x561   : > { %v1513_v43 = vpop.xlane.xlu0 %1512 }
 0x562   : > { %5237 = vpow2.f32 %v1564_v40  ;;  %v1536_v13 = vsub.f32 %v6266_v20, %v1513_v43  ;;  %v1562_v20 = vmul.f32 1.442695, %v1537_v48 }
 0x564   : > { %v1560_v17 = vmul.f32 1.442695, %v1536_v13 }
 0x565   : > { %v1525_v58 = vpop.xlane.xlu0 %1524 }
 0x566   : > { %5239 = vpow2.f32 %v1560_v17  ;;  %v1542_v7 = vsub.f32 %v6270_v34, %v1525_v58 }
 0x567   : > { %v6318_v22 = vpop.eup %5229  ;;  %5241 = vpow2.f32 %v1566_v2 }
 0x568   : > { %v1572_v28 = vmul.f32 1.442695, %v1542_v7  ;;  %1588 = vadd.xlane.f32.xlu0 %v6318_v22  ;;  %v6321_v51 = vpop.eup %5231 }
 0x569   : > { %v1527_v6 = vpop.xlane.xlu1 %1526  ;;  %v1521_v31 = vpop.xlane.xlu0 %1520 }
 0x56a   : > { %5243 = vpow2.f32 %v1572_v28  ;;  %v1540_v25 = vsub.f32 %v6274_v39, %v1521_v31  ;;  %v1543_v59 = vsub.f32 %v6277_v5, %v1527_v6 }
 0x56b   : > { %v6324_v60 = vpop.eup %5233  ;;  %5245 = vpow2.f32 %v1562_v20 }
 0x56c   : > { %v1568_v56 = vmul.f32 1.442695, %v1540_v25  ;;  %1586 = vadd.xlane.f32.xlu1 %v6321_v51  ;;  %1584 = vadd.xlane.f32.xlu0 %v6324_v60  ;;  %v6331_v47 = vpop.eup %5235  ;;  %v1574_v33 = vmul.f32 1.442695, %v1543_v59 }
 0x56d   : > { %v1523_v34 = vpop.xlane.xlu1 %1522  ;;  %v6329_v32 = vpop.permute.xlu0 %1807 }
 0x56e   : > { %v1541_v0 = vsub.f32 %v6282_v35, %v1523_v34  ;;  %5033 = vmatprep.subr.msk.bf16.mxu0 %vm908_vm0, %v6329_v32  ;;  %5247 = vpow2.f32 %v1568_v56 }
 0x56f   : > { %v6336_v39 = vpop.eup %5237 }
 0x570   : > { %v1570_v5 = vmul.f32 1.442695, %v1541_v0  ;;  %1590 = vadd.xlane.f32.xlu0 %v6331_v47  ;;  %1596 = vadd.xlane.f32.xlu1 %v6336_v39 }
 0x572   : > { %5249 = vpow2.f32 %v1570_v5 }
 0x573   : > { %v6340_v40 = vpop.eup %5239  ;;  %5251 = vpow2.f32 %v1574_v33 }
 0x574   : > { %1592 = vadd.xlane.f32.xlu1 %v6340_v40  ;;  %v6343_v9 = vpop.eup %5241 }
 0x577   : > { %v6345_v35 = vpop.eup %5243 }
 0x578   : > { %1598 = vadd.xlane.f32.xlu1 %v6343_v9  ;;  %1604 = vadd.xlane.f32.xlu0 %v6345_v35  ;;  %v6349_v43 = vpop.eup %5245 }
 0x57b   : > { %v6351_v13 = vpop.eup %5247 }
 0x57c   : > { %1594 = vadd.xlane.f32.xlu1 %v6349_v43  ;;  %1600 = vadd.xlane.f32.xlu0 %v6351_v13 }
 0x57f   : > { %v6355_v17 = vpop.eup %5249 }
 0x580   : > { %v6357_v2 = vpop.eup %5251  ;;  %1602 = vadd.xlane.f32.xlu1 %v6355_v17 }
 0x581   : > { %1606 = vadd.xlane.f32.xlu0 %v6357_v2 }
 0x591   : > { %1793 = vrot.lane.b32.xlu1 %v5895_v50, %s5512_s24 }
 0x595   : > { %1779 = vrot.lane.b32.xlu1 %v5707_v52, %s5512_s24 }
 0x597   : > { %1795 = vrot.lane.b32.xlu0 %v5885_v36, %s5512_s24 }
 0x599   : > { %1783 = vrot.lane.b32.xlu1 %v5733_v11, %s5512_s24 }
 0x59b   : > { %1777 = vrot.lane.b32.xlu0 %v5695_v44, %s5512_s24 }
 0x59d   : > { %1787 = vrot.lane.b32.xlu1 %v5761_v49, %s5512_s24 }
 0x59f   : > { %1781 = vrot.lane.b32.xlu0 %v5721_v63, %s5512_s24 }
 0x5a1   : > { %1791 = vrot.lane.b32.xlu1 %v5814_v41, %s5512_s24 }
 0x5a3   : > { %1785 = vrot.lane.b32.xlu0 %v5747_v24, %s5512_s24 }
 0x5a5   : > { %2118 = vrot.lane.b32.xlu1 %v5763_v53, %s5512_s24 }
 0x5a7   : > { %1789 = vrot.lane.b32.xlu0 %v5788_v23, %s5512_s24 }
 0x5a9   : > { %2110 = vrot.lane.b32.xlu1 %v5810_v37, %s5512_s24 }
 0x5ab   : > { %2120 = vrot.lane.b32.xlu0 %v5758_v45, %s5512_s24 }
 0x5ad   : > { %2106 = vrot.lane.b32.xlu1 %v5836_v54, %s5512_s24 }
 0x5af   : > { %2116 = vrot.lane.b32.xlu0 %v5772_v3, %s5512_s24 }
 0x5b3   : > { %2114 = vrot.lane.b32.xlu0 %v5784_v18, %s5512_s24 }
 0x5b4   : > { %v1581_v58 = vpop.xlane.xlu1 %1580 }
 0x5b7   : > { %2112 = vrot.lane.b32.xlu0 %v5797_v27, %s5512_s24 }
 0x5b8   : > { %v1577_v48 = vpop.xlane.xlu1 %1576 }
 0x5bc   : > { %v1583_v7 = vpop.xlane.xlu1 %1582 }
 0x5bd   : > { %5253 = vrcp.f32 %v1583_v7 }
 0x5be   : > { %5255 = vrcp.f32 %v1577_v48  ;;  %v1804_v48 = vpop.permute.xlu0 %1803 }
 0x5bf   : > { %5257 = vrcp.f32 %v1581_v58  ;;  %v1855_v58 = vsel %vm908_vm0, %v6329_v32, 0 }
 0x5c0   : > { %v1579_v28 = vpop.xlane.xlu1 %1578 }
 0x5c1   : > { %5259 = vrcp.f32 %v1579_v28 }
 0x5c4   : > { %v1798_v32 = vpop.permute.xlu1 %1797 }
 0x5ca   : > { %v5254_v6 = vpop.eup %5253 }
 0x5cb   : > { %v5256_v31 = vpop.eup %5255  ;;  %v1627_v59 = vmul.f32 %v5254_v6, %v6298_v4  ;;  %v1852_v4 = vsel %vm908_vm0, %v6310_v57, 0 }
 0x5cc   : > { %v5258_v20 = vpop.eup %5257  ;;  %v1624_v56 = vmul.f32 %v5256_v31, %v6295_v1  ;;  %v1846_v1 = vsel %vm908_vm0, %v6314_v30, 0 }
 0x5cd   : > { %v1626_v0 = vmul.f32 %v5258_v20, %v6292_v16  ;;  %v1849_v16 = vsel %vm908_vm0, %v1804_v48, 0 }
 0x5ce   : > { %v5260_v25 = vpop.eup %5259 }
 0x5cf   : > { %v1625_v34 = vmul.f32 %v5260_v25, %v6301_v19  ;;  %v1641_v5 = vpack.c.bf16 %v1627_v59, %v1626_v0  ;;  %v1800_v19 = vpop.permute.xlu0 %1799 }
 0x5d1   : > { %v1640_v33 = vpack.c.bf16 %v1625_v34, %v1624_v56 }
 0x5d3   : > { %4825 = vmatprep.mubr.bf16.mxu0 %v1640_v33 }
 0x5d4   : > { %4826 = vmatmul.mubr.bf16.vlgmr.msra.gmra.mxu0 %v1641_v5 }
 0x5d5   : > { %4842 = vmatpush3.bf16.xpose.msra.mxu0 %v1855_v58 }
 0x5d6   : > { %5034 = vmatprep.subr.msk.bf16.mxu0 %vm908_vm0, %v6310_v57  ;;  %v1843_v57 = vsel %vm908_vm0, %v1800_v19, 0 }
 0x5dd   : > { %4844 = vmatpush3.bf16.xpose.msra.mxu0 %v1852_v4 }
 0x5de   : > { %5035 = vmatprep.subr.msk.bf16.mxu0 %vm908_vm0, %v1804_v48 }
 0x5e5   : > { %4846 = vmatpush3.bf16.xpose.msra.mxu0 %v1849_v16 }
 0x5e6   : > { %5036 = vmatprep.subr.msk.bf16.mxu0 %vm908_vm0, %v6314_v30  ;;  %v1840_v30 = vsel %vm908_vm0, %v1798_v32, 0 }
 0x5ed   : > { %4848 = vmatpush3.bf16.xpose.msra.mxu0 %v1846_v1 }
 0x5ee   : > { %5037 = vmatprep.subr.msk.bf16.mxu0 %vm908_vm0, %v1800_v19 }
 0x5f1   : > { %v1589_v7 = vpop.xlane.xlu0 %1588 }
 0x5f5   : > { %4850 = vmatpush3.bf16.xpose.msra.mxu0 %v1843_v57  ;;  %v1587_v28 = vpop.xlane.xlu1 %1586  ;;  %v1585_v6 = vpop.xlane.xlu0 %1584 }
 0x5f6   : > { %5261 = vrcp.f32 %v1587_v28  ;;  %5038 = vmatprep.subr.msk.bf16.mxu0 %vm908_vm0, %v1798_v32 }
 0x5f7   : > { %5263 = vrcp.f32 %v1585_v6 }
 0x5f8   : > { %5265 = vrcp.f32 %v1589_v7 }
 0x5f9   : > { %v1597_v31 = vpop.xlane.xlu1 %1596  ;;  %v1591_v20 = vpop.xlane.xlu0 %1590 }
 0x5fa   : > { %5267 = vrcp.f32 %v1591_v20 }
 0x5fd   : > { %4852 = vmatpush3.bf16.xpose.msra.mxu0 %v1840_v30  ;;  %v1593_v25 = vpop.xlane.xlu1 %1592 }
 0x601   : > { %v1599_v59 = vpop.xlane.xlu1 %1598  ;;  %v1605_v56 = vpop.xlane.xlu0 %1604 }
 0x602   : > { %5269 = vrcp.f32 %v1599_v59 }
 0x603   : > { %v5262_v34 = vpop.eup %5261  ;;  %5271 = vrcp.f32 %v1593_v25 }
 0x604   : > { %v5264_v0 = vpop.eup %5263  ;;  %v1629_v33 = vmul.f32 %v5262_v34, %v6321_v51  ;;  %5273 = vrcp.f32 %v1597_v31 }
 0x605   : > { %v1595_v5 = vpop.xlane.xlu1 %1594  ;;  %v1628_v58 = vmul.f32 %v5264_v0, %v6324_v60  ;;  %v5266_v4 = vpop.eup %5265 }
 0x606   : > { %5275 = vrcp.f32 %v1595_v5  ;;  %v1601_v48 = vpop.xlane.xlu0 %1600  ;;  %v1630_v32 = vmul.f32 %v5266_v4, %v6318_v22 }
 0x607   : > { %v1642_v16 = vpack.c.bf16 %v1629_v33, %v1628_v58  ;;  %v5268_v1 = vpop.eup %5267  ;;  %5277 = vrcp.f32 %v1601_v48 }
 0x608   : > { %v1631_v7 = vmul.f32 %v5268_v1, %v6331_v47 }
 0x609   : > { %4829 = vmatprep.mubr.bf16.mxu0 %v1642_v16  ;;  %v1603_v19 = vpop.xlane.xlu1 %1602 }
 0x60a   : > { %5279 = vrcp.f32 %v1603_v19  ;;  %v1607_v57 = vpop.xlane.xlu0 %1606  ;;  %v1643_v51 = vpack.c.bf16 %v1631_v7, %v1630_v32 }
 0x60b   : > { %5281 = vrcp.f32 %v1607_v57 }
 0x60c   : > { %5283 = vrcp.f32 %v1605_v56  ;;  %4830 = vmatmul.mubr.bf16.gmra.mxu0 %v1643_v51 }
 0x60d   : > { %v1794_v28 = vpop.permute.xlu1 %1793 }
 0x60e   : > { %v1796_v60 = vpop.permute.xlu0 %1795  ;;  %v1834_v16 = vsel %vm908_vm0, %v1794_v28, 0 }
 0x60f   : > { %5039 = vmatprep.subr.msk.bf16.mxu0 %vm908_vm0, %v1796_v60  ;;  %v1837_v6 = vsel %vm908_vm0, %v1796_v60, 0  ;;  %v5270_v31 = vpop.eup %5269 }
 0x610   : > { %4854 = vmatpush3.bf16.xpose.msra.mxu0 %v1837_v6  ;;  %v5272_v20 = vpop.eup %5271  ;;  %v1635_v59 = vmul.f32 %v5270_v31, %v6343_v9 }
 0x611   : > { %5040 = vmatprep.subr.msk.bf16.mxu0 %vm908_vm0, %v1794_v28  ;;  %v1780_v22 = vpop.permute.xlu1 %1779  ;;  %v5274_v30 = vpop.eup %5273  ;;  %v1632_v56 = vmul.f32 %v5272_v20, %v6340_v40 }
 0x612   : > { %v1778_v47 = vpop.permute.xlu0 %1777  ;;  %v1634_v5 = vmul.f32 %v5274_v30, %v6336_v39 }
 0x613   : > { %v5276_v25 = vpop.eup %5275 }
 0x614   : > { %v1633_v34 = vmul.f32 %v5276_v25, %v6349_v43  ;;  %v5278_v0 = vpop.eup %5277  ;;  %v1645_v1 = vpack.c.bf16 %v1635_v59, %v1634_v5 }
 0x615   : > { %v1784_v33 = vpop.permute.xlu1 %1783  ;;  %v1636_v32 = vmul.f32 %v5278_v0, %v6351_v13 }
 0x616   : > { %v1782_v58 = vpop.permute.xlu0 %1781  ;;  %v1644_v4 = vpack.c.bf16 %v1633_v34, %v1632_v56 }
 0x617   : > { %v5280_v48 = vpop.eup %5279 }
 0x618   : > { %v5282_v19 = vpop.eup %5281  ;;  %4856 = vmatpush3.bf16.xpose.msra.mxu0 %v1834_v16  ;;  %4833 = vmatprep.mubr.bf16.mxu0 %v1644_v4  ;;  %v1637_v9 = vmul.f32 %v5280_v48, %v6355_v17 }
 0x619   : > { %v1788_v40 = vpop.permute.xlu1 %1787  ;;  %4834 = vmatmul.mubr.bf16.gmra.mxu0 %v1645_v1  ;;  %v5284_v43 = vpop.eup %5283  ;;  %v1639_v39 = vmul.f32 %v5282_v19, %v6357_v2 }
 0x61a   : > { %v1786_v7 = vpop.permute.xlu0 %1785  ;;  %v1646_v57 = vpack.c.bf16 %v1637_v9, %v1636_v32  ;;  %v1638_v51 = vmul.f32 %v5284_v43, %v6345_v35  ;;  %v6472_v9 = vld [vmem:[%s5927_s23 + $0x10] sm:$0xff] }
 0x61c   : > { %4837 = vmatprep.mubr.bf16.mxu0 %v1646_v57  ;;  %v1647_v6 = vpack.c.bf16 %v1639_v39, %v1638_v51  ;;  %v6479_v57 = vld [vmem:[%s5927_s23] sm:$0xff] }
 0x61d   : > { %v1792_v60 = vpop.permute.xlu1 %1791 }
 0x61e   : > { %v1790_v28 = vpop.permute.xlu0 %1789 }
 0x621   : > { %4838 = vmatmul.mubr.bf16.gmra.mxu0 %v1647_v6  ;;  %v2119_v13 = vpop.permute.xlu1 %2118 }
 0x622   : > { %v2121_v31 = vpop.permute.xlu0 %2120  ;;  %4857 = vmatprep.mubr.msk.bf16.mxu0 %vm908_vm0, %v1778_v47 }
 0x623   : > { %4873 = vmatprep.subr.bf16.mxu1 %v2121_v31 }
 0x624   : > { %4874 = vmatpush3.bf16.msra.mxu1 %v2121_v31  ;;  %v6492_v31 = vld [vmem:[%s5927_s23 + $0x18] sm:$0xff] }
 0x625   : > { %4875 = vmatprep.subr.bf16.mxu1 %v2119_v13  ;;  %v2111_v20 = vpop.permute.xlu1 %2110 }
 0x626   : > { %v2117_v17 = vpop.permute.xlu0 %2116 }
 0x628   : > { %4876 = vmatpush3.bf16.msra.mxu1 %v2119_v13 }
 0x629   : > { %4877 = vmatprep.subr.bf16.mxu1 %v2117_v17  ;;  %4858 = vmatmul.mubr.msk.bf16.vlgmr.msra.gmra.mxu0 %vm908_vm0, %v1780_v22 }
 0x62a   : > { %v2115_v2 = vpop.permute.xlu0 %2114  ;;  %4861 = vmatprep.mubr.msk.bf16.mxu0 %vm908_vm0, %v1782_v58 }
 0x62c   : > { %4878 = vmatpush3.bf16.msra.mxu1 %v2117_v17 }
 0x62d   : > { %4879 = vmatprep.subr.bf16.mxu1 %v2115_v2 }
 0x62e   : > { %v2113_v35 = vpop.permute.xlu0 %2112 }
 0x630   : > { %4880 = vmatpush3.bf16.msra.mxu1 %v2115_v2 }
 0x631   : > { %4881 = vmatprep.subr.bf16.mxu1 %v2113_v35  ;;  %4862 = vmatmul.mubr.msk.bf16.gmra.mxu0 %vm908_vm0, %v1784_v33 }
 0x632   : > { %4865 = vmatprep.mubr.msk.bf16.mxu0 %vm908_vm0, %v1786_v7 }
 0x634   : > { %4882 = vmatpush3.bf16.msra.mxu1 %v2113_v35  ;;  %v6500_v35 = vld [vmem:[%s5927_s23 + $0x38] sm:$0xff] }
 0x635   : > { %4883 = vmatprep.subr.bf16.mxu1 %v2111_v20 }
 0x638   : > { %4884 = vmatpush3.bf16.msra.mxu1 %v2111_v20 }
 0x639   : > { %4866 = vmatmul.mubr.msk.bf16.gmra.mxu0 %vm908_vm0, %v1788_v40 }
 0x63a   : > { %4869 = vmatprep.mubr.msk.bf16.mxu0 %vm908_vm0, %v1790_v28 }
 0x641   : > { %4870 = vmatmul.mubr.msk.bf16.gmra.mxu0 %vm908_vm0, %v1792_v60  ;;  %v6485_v60 = vld [vmem:[%s5927_s23 + $0x8] sm:$0xff] }
 0x694   : > { %v6439_v22 = vpop.f32.mrf.mxu0 }
 0x695   : > { %7859 = vst [vmem:[#allocation11_spill] sm:$0xff] %v6439_v22 }
 0x696   : > { %v6441_v30 = vpop.f32.mrf.mxu0 }
 0x697   : > { %7860 = vst [vmem:[#allocation12_spill] sm:$0xff] %v6441_v30 }
 0x698   : > { %v6443_v47 = vpop.f32.mrf.mxu0 }
 0x699   : > { %7861 = vst [vmem:[#allocation13_spill] sm:$0xff] %v6443_v47 }
 0x69a   : > { %v6445_v25 = vpop.f32.mrf.mxu0 }
 0x69b   : > { %7862 = vst [vmem:[#allocation14_spill] sm:$0xff] %v6445_v25 }
 0x6cc   : > { %v6447_v59 = vpop.f32.mrf.mxu0 }
 0x6cd   : > { %7863 = vst [vmem:[#allocation15_spill] sm:$0xff] %v6447_v59  ;;  %v2107_v59 = vpop.permute.xlu1 %2106 }
 0x6ce   : > { %v6449_v56 = vpop.f32.mrf.mxu0 }
 0x6cf   : > { %7864 = vst [vmem:[#allocation16_spill] sm:$0xff] %v6449_v56 }
 0x6d0   : > { %v6451_v34 = vpop.f32.mrf.mxu0 }
 0x6d1   : > { %7865 = vst [vmem:[#allocation17_spill] sm:$0xff] %v6451_v34 }
 0x6d2   : > { %v6453_v0 = vpop.f32.mrf.mxu0 }
 0x6d3   : > { %7866 = vst [vmem:[#allocation18_spill] sm:$0xff] %v6453_v0 }
 0x6d9   : > { %v6455_v33 = vpop.f32.mrf.mxu0 }
 0x6da   : > { %7867 = vst [vmem:[#allocation5_spill] sm:$0xff] %v6455_v33 }
 0x6db   : > { %v6457_v5 = vpop.f32.mrf.mxu0 }
 0x6dc   : > { %7868 = vst [vmem:[#allocation8_spill] sm:$0xff] %v6457_v5 }
 0x6dd   : > { %v6459_v58 = vpop.f32.mrf.mxu0 }
 0x6de   : > { %7869 = vst [vmem:[#allocation9_spill] sm:$0xff] %v6459_v58 }
 0x6df   : > { %v6461_v4 = vpop.f32.mrf.mxu0 }
 0x6e0   : > { %7870 = vst [vmem:[#allocation10_spill] sm:$0xff] %v6461_v4  ;;  %v6575_v4 = vld [vmem:[%s5927_s23 + $0x78] sm:$0xff] }
 0x6e1   : > { %v6463_v48 = vpop.f32.mrf.mxu0 }
 0x6e2   : > { %7871 = vst [vmem:[#allocation35_spill] sm:$0xff] %v6463_v48 }
 0x6e3   : > { %v6465_v16 = vpop.f32.mrf.mxu0 }
 0x6e4   : > { %7872 = vst [vmem:[#allocation36_spill] sm:$0xff] %v6465_v16 }
 0x6e5   : > { %v6467_v1 = vpop.f32.mrf.mxu0 }
 0x6e6   : > { %7873 = vst [vmem:[#allocation37_spill] sm:$0xff] %v6467_v1 }
 0x6e7   : > { %v6469_v19 = vpop.f32.mrf.mxu0 }
 0x6e8   : > { %7874 = vst [vmem:[#allocation38_spill] sm:$0xff] %v6469_v19 }
 0x6e9   : > { %v4859_v32 = vpop.f32.mrf.mxu0 }
 0x6ea   : > { %v6475_v40 = vadd.f32 %v6472_v9, %v4859_v32 }
 0x6eb   : > { %v1891_v43 = vpop.f32.mrf.mxu0 }
 0x6ec   : > { %1958 = vmax.xlane.f32.xlu0 %v6475_v40  ;;  %v6482_v39 = vadd.f32 %v6479_v57, %v1891_v43 }
 0x6ed   : > { %v4860_v7 = vpop.f32.mrf.mxu0 }
 0x6ee   : > { %v6495_v13 = vadd.f32 %v6492_v31, %v4860_v7 }
 0x6ef   : > { %v1894_v51 = vpop.f32.mrf.mxu0 }
 0x6f0   : > { %v6488_v28 = vadd.f32 %v6485_v60, %v1894_v51  ;;  %1954 = vmax.xlane.f32.xlu0 %v6482_v39  ;;  %v6507_v51 = vld [vmem:[%s5927_s23 + $0x28] sm:$0xff] }
 0x6f1   : > { %v4863_v6 = vpop.f32.mrf.mxu0 }
 0x6f2   : > { %1956 = vmax.xlane.f32.xlu1 %v6488_v28 }
 0x6f3   : > { %v1907_v17 = vpop.f32.mrf.mxu0 }
 0x6f4   : > { %1960 = vmax.xlane.f32.xlu0 %v6495_v13 }
 0x6f5   : > { %v4864_v2 = vpop.f32.mrf.mxu0 }
 0x6f6   : > { %v6503_v20 = vadd.f32 %v6500_v35, %v4864_v2 }
 0x6f7   : > { %v1910_v32 = vpop.f32.mrf.mxu0 }
 0x6f8   : > { %1968 = vmax.xlane.f32.xlu1 %v6503_v20  ;;  %v6510_v7 = vadd.f32 %v6507_v51, %v1910_v32 }
 0x6f9   : > { %v4867_v43 = vpop.f32.mrf.mxu0 }
 0x6fb   : > { %v1923_v14 = vpop.f32.mrf.mxu0 }
 0x6fc   : > { %1964 = vmax.xlane.f32.xlu1 %v6510_v7 }
 0x6fd   : > { %v4868_v38 = vpop.f32.mrf.mxu0 }
 0x6fe   : > { %v6517_v2 = vadd.f32 %v6514_v55, %v4868_v38  ;;  %v6534_v38 = vld [vmem:[%s5927_s23 + $0x30] sm:$0xff] }
 0x6ff   : > { %v1926_v15 = vpop.f32.mrf.mxu0  ;;  %v6537_v32 = vadd.f32 %v6534_v38, %v4863_v6  ;;  %v6555_v6 = vld [vmem:[%s5927_s23 + $0x40] sm:$0xff] }
 0x700   : > { %1976 = vmax.xlane.f32.xlu1 %v6517_v2  ;;  %v6524_v61 = vadd.f32 %v6521_v21, %v1926_v15  ;;  %v6541_v15 = vld [vmem:[%s5927_s23 + $0x20] sm:$0xff]  ;;  %v6558_v48 = vadd.f32 %v6555_v6, %v1923_v14 }
 0x701   : > { %v6544_v8 = vadd.f32 %v6541_v15, %v1907_v17  ;;  %v4871_v1 = vpop.f32.mrf.mxu0  ;;  %v6562_v17 = vld [vmem:[%s5927_s23 + $0x70] sm:$0xff] }
 0x702   : > { %v6565_v16 = vadd.f32 %v6562_v17, %v4871_v1  ;;  %v6583_v1 = vld [vmem:[%s5927_s23 + $0x68] sm:$0xff] }
 0x703   : > { %v1939_v19 = vpop.f32.mrf.mxu0 }
 0x704   : > { %1972 = vmax.xlane.f32.xlu1 %v6524_v61 }
 0x705   : > { %v4872_v58 = vpop.f32.mrf.mxu0 }
 0x706   : > { %v6578_v14 = vadd.f32 %v6575_v4, %v4872_v58 }
 0x707   : > { %v1942_v5 = vpop.f32.mrf.mxu0 }
 0x708   : > { %v6586_v34 = vadd.f32 %v6583_v1, %v1942_v5 }
 0x70a   : > { %2108 = vrot.lane.b32.xlu0 %v5822_v46, %s5512_s24 }
 0x715   : > { %2255 = vrot.lane.b32.xlu1 %v5794_v62, %s5513_s26  ;;  %v6548_v62 = vld [vmem:[%s5927_s23 + $0x50] sm:$0xff] }
 0x719   : > { %2251 = vrot.lane.b32.xlu1 %v5855_v29, %s5513_s26  ;;  %v6551_v29 = vadd.f32 %v6548_v62, %v4867_v43  ;;  %v6569_v43 = vld [vmem:[%s5927_s23 + $0x60] sm:$0xff] }
 0x71a   : > { %v6572_v33 = vadd.f32 %v6569_v43, %v1939_v19 }
 0x729   : > { %1966 = vmax.xlane.f32.xlu0 %v6537_v32 }
 0x72d   : > { %1962 = vmax.xlane.f32.xlu0 %v6544_v8 }
 0x731   : > { %1974 = vmax.xlane.f32.xlu0 %v6551_v29 }
 0x735   : > { %1970 = vmax.xlane.f32.xlu0 %v6558_v48 }
 0x739   : > { %1982 = vmax.xlane.f32.xlu0 %v6565_v16 }
 0x73d   : > { %1984 = vmax.xlane.f32.xlu1 %v6578_v14  ;;  %1978 = vmax.xlane.f32.xlu0 %v6572_v33 }
 0x741   : > { %1980 = vmax.xlane.f32.xlu1 %v6586_v34 }
 0x753   : > { %2257 = vrot.lane.b32.xlu0 %v7855_v12, %s5513_s26 }
 0x757   : > { %2253 = vrot.lane.b32.xlu0 %v7856_v10, %s5513_s26 }
 0x75b   : > { %2249 = vrot.lane.b32.xlu0 %v7857_v26, %s5513_s26 }
 0x775   : > { %v1959_v58 = vpop.xlane.xlu0 %1958 }
 0x776   : > { %v1988_v19 = vsub.f32 %v6475_v40, %v1959_v58 }
 0x778   : > { %v2006_v0 = vmul.f32 1.442695, %v1988_v19 }
 0x779   : > { %v1955_v56 = vpop.xlane.xlu0 %1954 }
 0x77a   : > { %5285 = vpow2.f32 %v2006_v0  ;;  %v1986_v5 = vsub.f32 %v6482_v39, %v1955_v56 }
 0x77b   : > { %v1957_v47 = vpop.xlane.xlu1 %1956 }
 0x77c   : > { %v2002_v30 = vmul.f32 1.442695, %v1986_v5  ;;  %v1987_v12 = vsub.f32 %v6488_v28, %v1957_v47 }
 0x77d   : > { %v1961_v22 = vpop.xlane.xlu0 %1960 }
 0x77e   : > { %5287 = vpow2.f32 %v2002_v30  ;;  %v1989_v10 = vsub.f32 %v6495_v13, %v1961_v22  ;;  %v2004_v26 = vmul.f32 1.442695, %v1987_v12 }
 0x780   : > { %v2008_v25 = vmul.f32 1.442695, %v1989_v10 }
 0x781   : > { %v2109_v46 = vpop.permute.xlu0 %2108 }
 0x782   : > { %5289 = vpow2.f32 %v2008_v25  ;;  %4885 = vmatprep.subr.bf16.mxu1 %v2109_v46 }
 0x783   : > { %4886 = vmatpush3.bf16.msra.mxu1 %v2109_v46  ;;  %5291 = vpow2.f32 %v2004_v26  ;;  %v1969_v46 = vpop.xlane.xlu1 %1968 }
 0x784   : > { %4887 = vmatprep.subr.bf16.mxu1 %v2107_v59  ;;  %v1993_v13 = vsub.f32 %v6503_v20, %v1969_v46 }
 0x786   : > { %v2016_v26 = vmul.f32 1.442695, %v1993_v13 }
 0x787   : > { %v6599_v40 = vpop.eup %5285  ;;  %4888 = vmatpush3.bf16.msra.mxu1 %v2107_v59  ;;  %v1965_v47 = vpop.xlane.xlu1 %1964 }
 0x788   : > { %2038 = vadd.xlane.f32.xlu1 %v6599_v40  ;;  %v1991_v59 = vsub.f32 %v6510_v7, %v1965_v47 }
 0x78a   : > { %v2012_v58 = vmul.f32 1.442695, %v1991_v59 }
 0x78b   : > { %v6602_v56 = vpop.eup %5287  ;;  %v1977_v25 = vpop.xlane.xlu1 %1976 }
 0x78c   : > { %2034 = vadd.xlane.f32.xlu1 %v6602_v56 }
 0x78f   : > { %v6605_v30 = vpop.eup %5289  ;;  %v1973_v19 = vpop.xlane.xlu1 %1972 }
 0x790   : > { %2040 = vadd.xlane.f32.xlu1 %v6605_v30  ;;  %v6608_v22 = vpop.eup %5291 }
 0x793   : > { %v6618_v7 = vpop.permute.xlu1 %2255 }
 0x794   : > { %2036 = vadd.xlane.f32.xlu1 %v6608_v22 }
 0x7a5   : > { %2247 = vrot.lane.b32.xlu1 %v7858_v42, %s5513_s26 }
 0x7b2   : > { %v1967_v0 = vpop.xlane.xlu0 %1966 }
 0x7b3   : > { %v1992_v39 = vsub.f32 %v6537_v32, %v1967_v0  ;;  %v1997_v32 = vsub.f32 %v6517_v2, %v1977_v25 }
 0x7b5   : > { %v2014_v28 = vmul.f32 1.442695, %v1992_v39  ;;  %v2024_v0 = vmul.f32 1.442695, %v1997_v32 }
 0x7b6   : > { %v1963_v5 = vpop.xlane.xlu0 %1962 }
 0x7b7   : > { %5293 = vpow2.f32 %v2014_v28  ;;  %v1990_v12 = vsub.f32 %v6544_v8, %v1963_v5  ;;  %v6622_v8 = vpop.permute.xlu1 %2251  ;;  %v1995_v28 = vsub.f32 %v6524_v61, %v1973_v19 }
 0x7b8   : > { %5295 = vpow2.f32 %v2012_v58 }
 0x7b9   : > { %v2010_v10 = vmul.f32 1.442695, %v1990_v12 }
 0x7ba   : > { %v1975_v42 = vpop.xlane.xlu0 %1974 }
 0x7bb   : > { %5297 = vpow2.f32 %v2010_v10  ;;  %v1996_v54 = vsub.f32 %v6551_v29, %v1975_v42 }
 0x7bc   : > { %5299 = vpow2.f32 %v2016_v26 }
 0x7bd   : > { %v2022_v47 = vmul.f32 1.442695, %v1996_v54 }
 0x7be   : > { %v1971_v20 = vpop.xlane.xlu0 %1970 }
 0x7bf   : > { %5301 = vpow2.f32 %v2022_v47  ;;  %v1994_v46 = vsub.f32 %v6558_v48, %v1971_v20  ;;  %v2020_v48 = vmul.f32 1.442695, %v1995_v28 }
 0x7c1   : > { %v2018_v59 = vmul.f32 1.442695, %v1994_v46 }
 0x7c2   : > { %v1983_v39 = vpop.xlane.xlu0 %1982 }
 0x7c3   : > { %5303 = vpow2.f32 %v2018_v59  ;;  %v2000_v29 = vsub.f32 %v6565_v16, %v1983_v39 }
 0x7c4   : > { %v6626_v13 = vpop.eup %5293  ;;  %5305 = vpow2.f32 %v2024_v0 }
 0x7c5   : > { %v2030_v54 = vmul.f32 1.442695, %v2000_v29  ;;  %2046 = vadd.xlane.f32.xlu0 %v6626_v13  ;;  %v6629_v58 = vpop.eup %5295  ;;  %v2302_v29 = vsel %vm908_vm0, %v6618_v7, 0 }
 0x7c6   : > { %v1985_v2 = vpop.xlane.xlu1 %1984  ;;  %v1979_v25 = vpop.xlane.xlu0 %1978 }
 0x7c7   : > { %5307 = vpow2.f32 %v2030_v54  ;;  %v1998_v5 = vsub.f32 %v6572_v33, %v1979_v25  ;;  %v2001_v61 = vsub.f32 %v6578_v14, %v1985_v2 }
 0x7c8   : > { %v6632_v12 = vpop.eup %5297  ;;  %5309 = vpow2.f32 %v2020_v48 }
 0x7c9   : > { %v2026_v19 = vmul.f32 1.442695, %v1998_v5  ;;  %2044 = vadd.xlane.f32.xlu1 %v6629_v58  ;;  %2042 = vadd.xlane.f32.xlu0 %v6632_v12  ;;  %v6637_v26 = vpop.eup %5299  ;;  %v2032_v33 = vmul.f32 1.442695, %v2001_v61 }
 0x7ca   : > { %v1981_v16 = vpop.xlane.xlu1 %1980  ;;  %v2258_v10 = vpop.permute.xlu0 %2257 }
 0x7cb   : > { %v1999_v42 = vsub.f32 %v6586_v34, %v1981_v16  ;;  %5041 = vmatprep.subr.msk.bf16.mxu1 %vm908_vm0, %v2258_v10  ;;  %5311 = vpow2.f32 %v2026_v19  ;;  %v2305_v28 = vsel %vm908_vm0, %v2258_v10, 0 }
 0x7cc   : > { %v6641_v47 = vpop.eup %5301 }
 0x7cd   : > { %v2028_v32 = vmul.f32 1.442695, %v1999_v42  ;;  %2048 = vadd.xlane.f32.xlu0 %v6637_v26  ;;  %2054 = vadd.xlane.f32.xlu1 %v6641_v47 }
 0x7cf   : > { %5313 = vpow2.f32 %v2028_v32 }
 0x7d0   : > { %v6645_v14 = vpop.eup %5303  ;;  %5315 = vpow2.f32 %v2032_v33 }
 0x7d1   : > { %2050 = vadd.xlane.f32.xlu1 %v6645_v14  ;;  %v6648_v20 = vpop.eup %5305 }
 0x7d4   : > { %v6650_v34 = vpop.eup %5307 }
 0x7d5   : > { %2056 = vadd.xlane.f32.xlu1 %v6648_v20  ;;  %2062 = vadd.xlane.f32.xlu0 %v6650_v34  ;;  %v6654_v46 = vpop.eup %5309 }
 0x7d8   : > { %v6656_v59 = vpop.eup %5311 }
 0x7d9   : > { %2052 = vadd.xlane.f32.xlu1 %v6654_v46  ;;  %2058 = vadd.xlane.f32.xlu0 %v6656_v59 }
 0x7dc   : > { %v6660_v0 = vpop.eup %5313 }
 0x7dd   : > { %v6662_v39 = vpop.eup %5315  ;;  %2060 = vadd.xlane.f32.xlu1 %v6660_v0 }
 0x7de   : > { %2064 = vadd.xlane.f32.xlu0 %v6662_v39 }
 0x7ee   : > { %2243 = vrot.lane.b32.xlu1 %v5895_v50, %s5513_s26 }
 0x7f2   : > { %2229 = vrot.lane.b32.xlu1 %v5707_v52, %s5513_s26 }
 0x7f4   : > { %2245 = vrot.lane.b32.xlu0 %v5885_v36, %s5513_s26 }
 0x7f6   : > { %2233 = vrot.lane.b32.xlu1 %v5733_v11, %s5513_s26 }
 0x7f8   : > { %2227 = vrot.lane.b32.xlu0 %v5695_v44, %s5513_s26 }
 0x7fa   : > { %2237 = vrot.lane.b32.xlu1 %v5761_v49, %s5513_s26 }
 0x7fc   : > { %2231 = vrot.lane.b32.xlu0 %v5721_v63, %s5513_s26 }
 0x7fe   : > { %2241 = vrot.lane.b32.xlu1 %v5814_v41, %s5513_s26 }
 0x800   : > { %2235 = vrot.lane.b32.xlu0 %v5747_v24, %s5513_s26 }
 0x802   : > { %2568 = vrot.lane.b32.xlu1 %v5763_v53, %s5513_s26 }
 0x804   : > { %2239 = vrot.lane.b32.xlu0 %v5788_v23, %s5513_s26 }
 0x808   : > { %2570 = vrot.lane.b32.xlu0 %v5758_v45, %s5513_s26 }
 0x80c   : > { %2566 = vrot.lane.b32.xlu0 %v5772_v3, %s5513_s26 }
 0x810   : > { %2564 = vrot.lane.b32.xlu0 %v5784_v18, %s5513_s26 }
 0x811   : > { %v2039_v44 = vpop.xlane.xlu1 %2038 }
 0x815   : > { %v2035_v52 = vpop.xlane.xlu1 %2034 }
 0x819   : > { %v2041_v63 = vpop.xlane.xlu1 %2040 }
 0x81a   : > { %5317 = vrcp.f32 %v2041_v63 }
 0x81b   : > { %5319 = vrcp.f32 %v2035_v52 }
 0x81c   : > { %5321 = vrcp.f32 %v2039_v44 }
 0x81d   : > { %v2037_v11 = vpop.xlane.xlu1 %2036 }
 0x81e   : > { %5323 = vrcp.f32 %v2037_v11 }
 0x821   : > { %v2248_v54 = vpop.permute.xlu1 %2247 }
 0x827   : > { %v5318_v24 = vpop.eup %5317 }
 0x828   : > { %v5320_v49 = vpop.eup %5319  ;;  %v2085_v45 = vmul.f32 %v5318_v24, %v6605_v30  ;;  %v2254_v30 = vpop.permute.xlu0 %2253 }
 0x829   : > { %v5322_v53 = vpop.eup %5321  ;;  %v2082_v41 = vmul.f32 %v5320_v49, %v6602_v56  ;;  %v2299_v56 = vsel %vm908_vm0, %v2254_v30, 0 }
 0x82a   : > { %v2084_v18 = vmul.f32 %v5322_v53, %v6599_v40  ;;  %v2296_v40 = vsel %vm908_vm0, %v6622_v8, 0 }
 0x82b   : > { %v5324_v23 = vpop.eup %5323 }
 0x82c   : > { %v2083_v3 = vmul.f32 %v5324_v23, %v6608_v22  ;;  %v2099_v50 = vpack.c.bf16 %v2085_v45, %v2084_v18  ;;  %v2250_v22 = vpop.permute.xlu0 %2249 }
 0x82e   : > { %v2098_v36 = vpack.c.bf16 %v2083_v3, %v2082_v41 }
 0x830   : > { %4889 = vmatprep.mubr.bf16.mxu1 %v2098_v36 }
 0x831   : > { %4890 = vmatmul.mubr.bf16.vlgmr.msra.gmra.mxu1 %v2099_v50 }
 0x832   : > { %4906 = vmatpush3.bf16.xpose.msra.mxu1 %v2305_v28 }
 0x833   : > { %5042 = vmatprep.subr.msk.bf16.mxu1 %vm908_vm0, %v6618_v7  ;;  %v2293_v7 = vsel %vm908_vm0, %v2250_v22, 0 }
 0x83a   : > { %4908 = vmatpush3.bf16.xpose.msra.mxu1 %v2302_v29 }
 0x83b   : > { %5043 = vmatprep.subr.msk.bf16.mxu1 %vm908_vm0, %v2254_v30 }
 0x842   : > { %4910 = vmatpush3.bf16.xpose.msra.mxu1 %v2299_v56 }
 0x843   : > { %5044 = vmatprep.subr.msk.bf16.mxu1 %vm908_vm0, %v6622_v8  ;;  %v2290_v8 = vsel %vm908_vm0, %v2248_v54, 0 }
 0x84a   : > { %4912 = vmatpush3.bf16.xpose.msra.mxu1 %v2296_v40 }
 0x84b   : > { %5045 = vmatprep.subr.msk.bf16.mxu1 %vm908_vm0, %v2250_v22 }
 0x84e   : > { %v2047_v2 = vpop.xlane.xlu0 %2046 }
 0x852   : > { %4914 = vmatpush3.bf16.xpose.msra.mxu1 %v2293_v7  ;;  %v2045_v25 = vpop.xlane.xlu1 %2044  ;;  %v2043_v48 = vpop.xlane.xlu0 %2042 }
 0x853   : > { %5325 = vrcp.f32 %v2045_v25  ;;  %5046 = vmatprep.subr.msk.bf16.mxu1 %vm908_vm0, %v2248_v54 }
 0x854   : > { %5327 = vrcp.f32 %v2043_v48 }
 0x855   : > { %5329 = vrcp.f32 %v2047_v2 }
 0x856   : > { %v2055_v5 = vpop.xlane.xlu1 %2054  ;;  %v2049_v61 = vpop.xlane.xlu0 %2048 }
 0x857   : > { %5331 = vrcp.f32 %v2049_v61 }
 0x85a   : > { %4916 = vmatpush3.bf16.xpose.msra.mxu1 %v2290_v8  ;;  %v2051_v19 = vpop.xlane.xlu1 %2050 }
 0x85e   : > { %v2057_v16 = vpop.xlane.xlu1 %2056  ;;  %v2063_v10 = vpop.xlane.xlu0 %2062 }
 0x85f   : > { %5333 = vrcp.f32 %v2057_v16 }
 0x860   : > { %v5326_v42 = vpop.eup %5325  ;;  %5335 = vrcp.f32 %v2051_v19 }
 0x861   : > { %v5328_v33 = vpop.eup %5327  ;;  %v2087_v32 = vmul.f32 %v5326_v42, %v6629_v58  ;;  %5337 = vrcp.f32 %v2055_v5 }
 0x862   : > { %v2053_v44 = vpop.xlane.xlu1 %2052  ;;  %v2086_v52 = vmul.f32 %v5328_v33, %v6632_v12  ;;  %v5330_v63 = vpop.eup %5329 }
 0x863   : > { %5339 = vrcp.f32 %v2053_v44  ;;  %v2059_v11 = vpop.xlane.xlu0 %2058  ;;  %v2088_v23 = vmul.f32 %v5330_v63, %v6626_v13 }
 0x864   : > { %v2100_v24 = vpack.c.bf16 %v2087_v32, %v2086_v52  ;;  %v5332_v49 = vpop.eup %5331  ;;  %5341 = vrcp.f32 %v2059_v11 }
 0x865   : > { %v2089_v45 = vmul.f32 %v5332_v49, %v6637_v26 }
 0x866   : > { %4893 = vmatprep.mubr.bf16.mxu1 %v2100_v24  ;;  %v2061_v53 = vpop.xlane.xlu1 %2060 }
 0x867   : > { %5343 = vrcp.f32 %v2061_v53  ;;  %v2065_v41 = vpop.xlane.xlu0 %2064  ;;  %v2101_v58 = vpack.c.bf16 %v2089_v45, %v2088_v23 }
 0x868   : > { %5345 = vrcp.f32 %v2065_v41 }
 0x869   : > { %5347 = vrcp.f32 %v2063_v10  ;;  %4894 = vmatmul.mubr.bf16.gmra.mxu1 %v2101_v58 }
 0x86a   : > { %v2244_v3 = vpop.permute.xlu1 %2243 }
 0x86b   : > { %v2246_v12 = vpop.permute.xlu0 %2245  ;;  %v2284_v5 = vsel %vm908_vm0, %v2244_v3, 0 }
 0x86c   : > { %5047 = vmatprep.subr.msk.bf16.mxu1 %vm908_vm0, %v2246_v12  ;;  %v2287_v18 = vsel %vm908_vm0, %v2246_v12, 0  ;;  %v5334_v36 = vpop.eup %5333 }
 0x86d   : > { %4918 = vmatpush3.bf16.xpose.msra.mxu1 %v2287_v18  ;;  %v5336_v50 = vpop.eup %5335  ;;  %v2093_v30 = vmul.f32 %v5334_v36, %v6648_v20 }
 0x86e   : > { %5048 = vmatprep.subr.msk.bf16.mxu1 %vm908_vm0, %v2244_v3  ;;  %v2230_v13 = vpop.permute.xlu1 %2229  ;;  %v5338_v28 = vpop.eup %5337  ;;  %v2090_v56 = vmul.f32 %v5336_v50, %v6645_v14 }
 0x86f   : > { %v2228_v26 = vpop.permute.xlu0 %2227  ;;  %v2092_v2 = vmul.f32 %v5338_v28, %v6641_v47 }
 0x870   : > { %v5340_v29 = vpop.eup %5339 }
 0x871   : > { %v2091_v40 = vmul.f32 %v5340_v29, %v6654_v46  ;;  %v5342_v22 = vpop.eup %5341  ;;  %v2103_v61 = vpack.c.bf16 %v2093_v30, %v2092_v2 }
 0x872   : > { %v2234_v54 = vpop.permute.xlu1 %2233  ;;  %v2094_v19 = vmul.f32 %v5342_v22, %v6656_v59 }
 0x873   : > { %v2232_v7 = vpop.permute.xlu0 %2231  ;;  %v2102_v25 = vpack.c.bf16 %v2091_v40, %v2090_v56 }
 0x874   : > { %v5344_v48 = vpop.eup %5343 }
 0x875   : > { %v5346_v8 = vpop.eup %5345  ;;  %4920 = vmatpush3.bf16.xpose.msra.mxu1 %v2284_v5  ;;  %4897 = vmatprep.mubr.bf16.mxu1 %v2102_v25  ;;  %v2095_v20 = vmul.f32 %v5344_v48, %v6660_v0 }
 0x876   : > { %v2238_v14 = vpop.permute.xlu1 %2237  ;;  %4898 = vmatmul.mubr.bf16.gmra.mxu1 %v2103_v61  ;;  %v5348_v46 = vpop.eup %5347  ;;  %v2097_v47 = vmul.f32 %v5346_v8, %v6662_v39 }
 0x877   : > { %v2236_v16 = vpop.permute.xlu0 %2235  ;;  %v2104_v10 = vpack.c.bf16 %v2095_v20, %v2094_v19  ;;  %v2096_v42 = vmul.f32 %v5348_v46, %v6650_v34  ;;  %v7875_v34 = vmov 0  }
 0x879   : > { %4901 = vmatprep.mubr.bf16.mxu1 %v2104_v10  ;;  %v2105_v44 = vpack.c.bf16 %v2097_v47, %v2096_v42 }
 0x87a   : > { %v2242_v33 = vpop.permute.xlu1 %2241 }
 0x87b   : > { %v2240_v32 = vpop.permute.xlu0 %2239 }
 0x87e   : > { %4902 = vmatmul.mubr.bf16.gmra.mxu1 %v2105_v44  ;;  %v2569_v59 = vpop.permute.xlu1 %2568 }
 0x87f   : > { %v2571_v52 = vpop.permute.xlu0 %2570  ;;  %4921 = vmatprep.mubr.msk.bf16.mxu1 %vm908_vm0, %v2228_v26 }
 0x880   : > { %4937 = vmatprep.subr.bf16.mxu0 %v2571_v52 }
 0x881   : > { %4938 = vmatpush3.bf16.msra.mxu0 %v2571_v52 }
 0x882   : > { %4939 = vmatprep.subr.bf16.mxu0 %v2569_v59 }
 0x883   : > { %v2567_v0 = vpop.permute.xlu0 %2566 }
 0x885   : > { %4940 = vmatpush3.bf16.msra.mxu0 %v2569_v59 }
 0x886   : > { %4941 = vmatprep.subr.bf16.mxu0 %v2567_v0  ;;  %4922 = vmatmul.mubr.msk.bf16.vlgmr.msra.gmra.mxu1 %vm908_vm0, %v2230_v13 }
 0x887   : > { %4925 = vmatprep.mubr.msk.bf16.mxu1 %vm908_vm0, %v2232_v7  ;;  %v2565_v39 = vpop.permute.xlu0 %2564 }
 0x889   : > { %4942 = vmatpush3.bf16.msra.mxu0 %v2567_v0 }
 0x88a   : > { %4943 = vmatprep.subr.bf16.mxu0 %v2565_v39 }
 0x88d   : > { %4944 = vmatpush3.bf16.msra.mxu0 %v2565_v39 }
 0x88e   : > { %4926 = vmatmul.mubr.msk.bf16.gmra.mxu1 %vm908_vm0, %v2234_v54 }
 0x88f   : > { %4929 = vmatprep.mubr.msk.bf16.mxu1 %vm908_vm0, %v2236_v16 }
 0x896   : > { %4930 = vmatmul.mubr.msk.bf16.gmra.mxu1 %vm908_vm0, %v2238_v14 }
 0x897   : > { %4933 = vmatprep.mubr.msk.bf16.mxu1 %vm908_vm0, %v2240_v32 }
 0x89e   : > { %4934 = vmatmul.mubr.msk.bf16.gmra.mxu1 %vm908_vm0, %v2242_v33 }
 0x89f   : > { %3506 = vmatprep.mubr.bf16.mxu1 %v7875_v34 }
 0x8f1   : > { %v6738_v63 = vpop.f32.mrf.mxu1 }
 0x8f3   : > { %v6740_v11 = vpop.f32.mrf.mxu1 }
 0x8f5   : > { %v6742_v24 = vpop.f32.mrf.mxu1 }
 0x8f7   : > { %v6744_v49 = vpop.f32.mrf.mxu1 }
 0x929   : > { %v6746_v53 = vpop.f32.mrf.mxu1 }
 0x92b   : > { %v6748_v23 = vpop.f32.mrf.mxu1 }
 0x92d   : > { %v6750_v45 = vpop.f32.mrf.mxu1 }
 0x92f   : > { %v6752_v41 = vpop.f32.mrf.mxu1 }
 0x936   : > { %v6754_v58 = vpop.f32.mrf.mxu1 }
 0x938   : > { %v6756_v3 = vpop.f32.mrf.mxu1 }
 0x93a   : > { %v6758_v12 = vpop.f32.mrf.mxu1 }
 0x93c   : > { %v6760_v18 = vpop.f32.mrf.mxu1 }
 0x93e   : > { %v6762_v36 = vpop.f32.mrf.mxu1 }
 0x940   : > { %v6764_v50 = vpop.f32.mrf.mxu1 }
 0x942   : > { %v6766_v13 = vpop.f32.mrf.mxu1 }
 0x944   : > { %v6768_v28 = vpop.f32.mrf.mxu1 }
 0x946   : > { %v4923_v26 = vpop.f32.mrf.mxu1 }
 0x947   : > { %v2350_v29 = vadd.f32 %v6472_v9, %v4923_v26 }
 0x948   : > { %v2341_v30 = vpop.f32.mrf.mxu1 }
 0x949   : > { %2408 = vmax.xlane.f32.xlu0 %v2350_v29  ;;  %v2342_v40 = vadd.f32 %v6479_v57, %v2341_v30 }
 0x94a   : > { %v4924_v56 = vpop.f32.mrf.mxu1 }
 0x94b   : > { %v2353_v7 = vadd.f32 %v6492_v31, %v4924_v56 }
 0x94c   : > { %v2344_v22 = vpop.f32.mrf.mxu1 }
 0x94d   : > { %v2345_v54 = vadd.f32 %v6485_v60, %v2344_v22  ;;  %2404 = vmax.xlane.f32.xlu0 %v2342_v40 }
 0x94e   : > { %v4927_v2 = vpop.f32.mrf.mxu1 }
 0x94f   : > { %2406 = vmax.xlane.f32.xlu1 %v2345_v54  ;;  %v2366_v5 = vadd.f32 %v6534_v38, %v4927_v2 }
 0x950   : > { %v2357_v25 = vpop.f32.mrf.mxu1 }
 0x951   : > { %2410 = vmax.xlane.f32.xlu0 %v2353_v7  ;;  %v2358_v57 = vadd.f32 %v6541_v15, %v2357_v25 }
 0x952   : > { %v4928_v48 = vpop.f32.mrf.mxu1 }
 0x953   : > { %v2369_v9 = vadd.f32 %v6500_v35, %v4928_v48 }
 0x954   : > { %v2360_v61 = vpop.f32.mrf.mxu1 }
 0x955   : > { %2416 = vmax.xlane.f32.xlu0 %v2366_v5  ;;  %2418 = vmax.xlane.f32.xlu1 %v2369_v9  ;;  %v2361_v60 = vadd.f32 %v6507_v51, %v2360_v61 }
 0x956   : > { %v4931_v8 = vpop.f32.mrf.mxu1 }
 0x957   : > { %v6779_v20 = vadd.f32 %v6548_v62, %v4931_v8 }
 0x958   : > { %v2373_v19 = vpop.f32.mrf.mxu1 }
 0x959   : > { %2414 = vmax.xlane.f32.xlu1 %v2361_v60  ;;  %2412 = vmax.xlane.f32.xlu0 %v2358_v57  ;;  %v6787_v35 = vadd.f32 %v6555_v6, %v2373_v19 }
 0x95a   : > { %v4932_v31 = vpop.f32.mrf.mxu1 }
 0x95b   : > { %v6782_v14 = vadd.f32 %v6514_v55, %v4932_v31 }
 0x95c   : > { %v2376_v38 = vpop.f32.mrf.mxu1 }
 0x95d   : > { %2424 = vmax.xlane.f32.xlu0 %v6779_v20  ;;  %2426 = vmax.xlane.f32.xlu1 %v6782_v14  ;;  %v6790_v51 = vadd.f32 %v6521_v21, %v2376_v38 }
 0x95e   : > { %v4935_v15 = vpop.f32.mrf.mxu1 }
 0x95f   : > { %v6795_v62 = vadd.f32 %v6562_v17, %v4935_v15 }
 0x960   : > { %v2389_v55 = vpop.f32.mrf.mxu1 }
 0x961   : > { %2422 = vmax.xlane.f32.xlu1 %v6790_v51  ;;  %2420 = vmax.xlane.f32.xlu0 %v6787_v35  ;;  %v6799_v46 = vadd.f32 %v6569_v43, %v2389_v55 }
 0x962   : > { %v4936_v21 = vpop.f32.mrf.mxu1 }
 0x963   : > { %v6807_v6 = vadd.f32 %v6575_v4, %v4936_v21 }
 0x964   : > { %v2392_v17 = vpop.f32.mrf.mxu1 }
 0x965   : > { %2432 = vmax.xlane.f32.xlu0 %v6795_v62  ;;  %v6811_v16 = vadd.f32 %v6583_v1, %v2392_v17 }
 0x969   : > { %2428 = vmax.xlane.f32.xlu0 %v6799_v46 }
 0x972   : > { %2560 = vrot.lane.b32.xlu1 %v5810_v37, %s5513_s26 }
 0x97f   : > { %2562 = vrot.lane.b32.xlu0 %v5797_v27, %s5513_s26 }
 0x996   : > { %2434 = vmax.xlane.f32.xlu1 %v6807_v6 }
 0x99a   : > { %2430 = vmax.xlane.f32.xlu1 %v6811_v16 }
 0x9d2   : > { %v2409_v43 = vpop.xlane.xlu0 %2408 }
 0x9d3   : > { %v2438_v10 = vsub.f32 %v2350_v29, %v2409_v43 }
 0x9d5   : > { %v2456_v47 = vmul.f32 1.442695, %v2438_v10  ;;  %v7876_v10 = vld [vmem:[#allocation7_spill] sm:$0xff] }
 0x9d6   : > { %v2405_v42 = vpop.xlane.xlu0 %2404 }
 0x9d7   : > { %5349 = vpow2.f32 %v2456_v47  ;;  %v2436_v37 = vsub.f32 %v2342_v40, %v2405_v42  ;;  %v7877_v47 = vld [vmem:[#allocation6_spill] sm:$0xff] }
 0x9d8   : > { %v2407_v33 = vpop.xlane.xlu1 %2406 }
 0x9d9   : > { %v2452_v27 = vmul.f32 1.442695, %v2436_v37  ;;  %v2437_v4 = vsub.f32 %v2345_v54, %v2407_v33 }
 0x9da   : > { %v2411_v32 = vpop.xlane.xlu0 %2410 }
 0x9db   : > { %5351 = vpow2.f32 %v2452_v27  ;;  %v2439_v44 = vsub.f32 %v2353_v7, %v2411_v32  ;;  %v2454_v39 = vmul.f32 1.442695, %v2437_v4 }
 0x9dd   : > { %v2458_v52 = vmul.f32 1.442695, %v2439_v44 }
 0x9de   : > { %v2419_v59 = vpop.xlane.xlu1 %2418  ;;  %v2417_v0 = vpop.xlane.xlu0 %2416 }
 0x9df   : > { %5353 = vpow2.f32 %v2458_v52  ;;  %v2443_v1 = vsub.f32 %v2369_v9, %v2419_v59  ;;  %v2442_v26 = vsub.f32 %v2366_v5, %v2417_v0 }
 0x9e0   : > { %5355 = vpow2.f32 %v2454_v39 }
 0x9e1   : > { %v2464_v30 = vmul.f32 1.442695, %v2442_v26  ;;  %v2466_v22 = vmul.f32 1.442695, %v2443_v1 }
 0x9e2   : > { %v2415_v56 = vpop.xlane.xlu1 %2414  ;;  %v2413_v29 = vpop.xlane.xlu0 %2412 }
 0x9e3   : > { %v2440_v2 = vsub.f32 %v2358_v57, %v2413_v29  ;;  %5357 = vpow2.f32 %v2464_v30  ;;  %v2441_v25 = vsub.f32 %v2361_v60, %v2415_v56 }
 0x9e4   : > { %v6814_v40 = vpop.eup %5349  ;;  %5359 = vpow2.f32 %v2466_v22 }
 0x9e5   : > { %v2460_v48 = vmul.f32 1.442695, %v2440_v2  ;;  %2488 = vadd.xlane.f32.xlu1 %v6814_v40  ;;  %v2462_v61 = vmul.f32 1.442695, %v2441_v25  ;;  %v7878_v25 = vld [vmem:[#allocation14_spill] sm:$0xff] }
 0x9e6   : > { %v2425_v54 = vpop.xlane.xlu0 %2424  ;;  %v2427_v8 = vpop.xlane.xlu1 %2426 }
 0x9e7   : > { %5361 = vpow2.f32 %v2460_v48  ;;  %v2447_v37 = vsub.f32 %v6782_v14, %v2427_v8  ;;  %v2446_v4 = vsub.f32 %v6779_v20, %v2425_v54  ;;  %v7879_v48 = vld [vmem:[#allocation11_spill] sm:$0xff]  ;;  %v7880_v54 = vld [vmem:[#allocation12_spill] sm:$0xff]  ;;  %v7883_v8 = vld [vmem:[#allocation18_spill] sm:$0xff] }
 0x9e8   : > { %v6817_v7 = vpop.eup %5351  ;;  %5363 = vpow2.f32 %v2462_v61  ;;  %v7881_v61 = vld [vmem:[#allocation13_spill] sm:$0xff] }
 0x9e9   : > { %2484 = vadd.xlane.f32.xlu1 %v6817_v7  ;;  %v2474_v32 = vmul.f32 1.442695, %v2447_v37  ;;  %v2472_v59 = vmul.f32 1.442695, %v2446_v4 }
 0x9ea   : > { %v2421_v5 = vpop.xlane.xlu0 %2420  ;;  %v2423_v31 = vpop.xlane.xlu1 %2422 }
 0x9eb   : > { %v2444_v42 = vsub.f32 %v6787_v35, %v2421_v5  ;;  %v2445_v33 = vsub.f32 %v6790_v51, %v2423_v31  ;;  %v7882_v5 = vld [vmem:[#allocation16_spill] sm:$0xff] }
 0x9ec   : > { %v6820_v9 = vpop.eup %5353 }
 0x9ed   : > { %2490 = vadd.xlane.f32.xlu1 %v6820_v9  ;;  %v6823_v60 = vpop.eup %5355  ;;  %v2468_v27 = vmul.f32 1.442695, %v2444_v42  ;;  %v2470_v44 = vmul.f32 1.442695, %v2445_v33 }
 0x9ee   : > { %v2433_v57 = vpop.xlane.xlu0 %2432  ;;  %v2561_v17 = vpop.permute.xlu1 %2560 }
 0x9ef   : > { %5365 = vpow2.f32 %v2468_v27  ;;  %v2450_v14 = vsub.f32 %v6795_v62, %v2433_v57  ;;  %v7884_v57 = vld [vmem:[#allocation15_spill] sm:$0xff] }
 0x9f0   : > { %v6825_v19 = vpop.eup %5357  ;;  %5367 = vpow2.f32 %v2474_v32 }
 0x9f1   : > { %2486 = vadd.xlane.f32.xlu1 %v6823_v60  ;;  %2496 = vadd.xlane.f32.xlu0 %v6825_v19  ;;  %v6829_v15 = vpop.eup %5359  ;;  %5369 = vpow2.f32 %v2470_v44  ;;  %v2480_v20 = vmul.f32 1.442695, %v2450_v14 }
 0x9f2   : > { %v2429_v38 = vpop.xlane.xlu0 %2428  ;;  %5371 = vpow2.f32 %v2472_v59 }
 0x9f3   : > { %v2448_v0 = vsub.f32 %v6799_v46, %v2429_v38 }
 0x9f4   : > { %v6831_v55 = vpop.eup %5361 }
 0x9f5   : > { %2498 = vadd.xlane.f32.xlu0 %v6829_v15  ;;  %2492 = vadd.xlane.f32.xlu1 %v6831_v55  ;;  %v6835_v43 = vpop.eup %5363  ;;  %v2476_v51 = vmul.f32 1.442695, %v2448_v0 }
 0x9f6   : > { %v2563_v21 = vpop.permute.xlu0 %2562 }
 0x9f7   : > { %4945 = vmatprep.subr.bf16.mxu0 %v2563_v21 }
 0x9f8   : > { %4946 = vmatpush3.bf16.msra.mxu0 %v2563_v21 }
 0x9f9   : > { %4947 = vmatprep.subr.bf16.mxu0 %v2561_v17  ;;  %2494 = vadd.xlane.f32.xlu0 %v6835_v43 }
 0x9fc   : > { %4948 = vmatpush3.bf16.msra.mxu0 %v2561_v17  ;;  %v6850_v56 = vpop.eup %5365 }
 0x9fd   : > { %v6853_v46 = vpop.eup %5367 }
 0xa06   : > { %2556 = vrot.lane.b32.xlu1 %v7876_v10, %s5513_s26 }
 0xa0f   : > { %2558 = vrot.lane.b32.xlu0 %v7877_v47, %s5513_s26 }
 0xa1f   : > { %v2435_v52 = vpop.xlane.xlu1 %2434 }
 0xa20   : > { %v2451_v1 = vsub.f32 %v6807_v6, %v2435_v52  ;;  %v6855_v6 = vpop.eup %5369 }
 0xa21   : > { %v6859_v62 = vpop.eup %5371 }
 0xa22   : > { %v2482_v30 = vmul.f32 1.442695, %v2451_v1 }
 0xa23   : > { %v2431_v39 = vpop.xlane.xlu1 %2430 }
 0xa24   : > { %v2449_v35 = vsub.f32 %v6811_v16, %v2431_v39 }
 0xa26   : > { %v2478_v26 = vmul.f32 1.442695, %v2449_v35 }
 0xa28   : > { %5373 = vpow2.f32 %v2478_v26 }
 0xa29   : > { %5375 = vpow2.f32 %v2476_v51 }
 0xa2a   : > { %2500 = vadd.xlane.f32.xlu1 %v6850_v56  ;;  %5377 = vpow2.f32 %v2482_v30 }
 0xa2b   : > { %5379 = vpow2.f32 %v2480_v20 }
 0xa2e   : > { %2502 = vadd.xlane.f32.xlu0 %v6855_v6  ;;  %2506 = vadd.xlane.f32.xlu1 %v6853_v46 }
 0xa32   : > { %2504 = vadd.xlane.f32.xlu0 %v6859_v62 }
 0xa35   : > { %v6862_v16 = vpop.eup %5373 }
 0xa36   : > { %v6864_v29 = vpop.eup %5375  ;;  %2510 = vadd.xlane.f32.xlu1 %v6862_v16 }
 0xa37   : > { %2508 = vadd.xlane.f32.xlu0 %v6864_v29  ;;  %v6868_v22 = vpop.eup %5377 }
 0xa38   : > { %v6870_v2 = vpop.eup %5379 }
 0xa3a   : > { %2514 = vadd.xlane.f32.xlu1 %v6868_v22 }
 0xa3b   : > { %2512 = vadd.xlane.f32.xlu0 %v6870_v2 }
 0xa4b   : > { %2695 = vrot.lane.b32.xlu1 %v7878_v25, %s5513_s26 }
 0xa4f   : > { %2697 = vrot.lane.b32.xlu1 %v7879_v48, %s5513_s26 }
 0xa51   : > { %2693 = vrot.lane.b32.xlu0 %v7880_v54, %s5513_s26 }
 0xa53   : > { %2699 = vrot.lane.b32.xlu1 %v7881_v61, %s5513_s26 }
 0xa55   : > { %2757 = vrot.lane.b32.xlu0 %v6740_v11, %s5512_s24  ;;  %v7885_v11 = vld [vmem:[#allocation17_spill] sm:$0xff] }
 0xa57   : > { %2759 = vrot.lane.b32.xlu1 %v6744_v49, %s5512_s24  ;;  %v7887_v49 = vld [vmem:[#allocation10_spill] sm:$0xff] }
 0xa59   : > { %2761 = vrot.lane.b32.xlu0 %v6738_v63, %s5512_s24  ;;  %v7886_v63 = vld [vmem:[#allocation8_spill] sm:$0xff] }
 0xa5b   : > { %2763 = vrot.lane.b32.xlu1 %v6742_v24, %s5512_s24 }
 0xa5d   : > { %2701 = vrot.lane.b32.xlu0 %v7882_v5, %s5513_s26 }
 0xa5f   : > { %2703 = vrot.lane.b32.xlu1 %v7883_v8, %s5513_s26 }
 0xa61   : > { %2705 = vrot.lane.b32.xlu0 %v7884_v57, %s5513_s26 }
 0xa63   : > { %2707 = vrot.lane.b32.xlu1 %v7885_v11, %s5513_s26 }
 0xa65   : > { %2765 = vrot.lane.b32.xlu0 %v6748_v23, %s5512_s24 }
 0xa67   : > { %2767 = vrot.lane.b32.xlu1 %v6752_v41, %s5512_s24 }
 0xa69   : > { %2769 = vrot.lane.b32.xlu0 %v6746_v53, %s5512_s24 }
 0xa6b   : > { %2771 = vrot.lane.b32.xlu1 %v6750_v45, %s5512_s24 }
 0xa6d   : > { %2709 = vrot.lane.b32.xlu0 %v7886_v63, %s5513_s26 }
 0xa6e   : > { %v2489_v24 = vpop.xlane.xlu1 %2488 }
 0xa6f   : > { %2711 = vrot.lane.b32.xlu1 %v7887_v49, %s5513_s26 }
 0xa72   : > { %v2485_v31 = vpop.xlane.xlu1 %2484 }
 0xa73   : > { %5381 = vrcp.f32 %v2485_v31 }
 0xa76   : > { %v2491_v38 = vpop.xlane.xlu1 %2490 }
 0xa77   : > { %5383 = vrcp.f32 %v2491_v38 }
 0xa7a   : > { %v2487_v23 = vpop.xlane.xlu1 %2486  ;;  %v2497_v41 = vpop.xlane.xlu0 %2496 }
 0xa7b   : > { %5385 = vrcp.f32 %v2487_v23 }
 0xa7c   : > { %5387 = vrcp.f32 %v2489_v24 }
 0xa7e   : > { %v2493_v21 = vpop.xlane.xlu1 %2492  ;;  %v2499_v53 = vpop.xlane.xlu0 %2498 }
 0xa7f   : > { %5389 = vrcp.f32 %v2493_v21 }
 0xa80   : > { %5391 = vrcp.f32 %v2499_v53  ;;  %v5382_v17 = vpop.eup %5381 }
 0xa81   : > { %5393 = vrcp.f32 %v2497_v41  ;;  %v2532_v27 = vmul.f32 %v5382_v17, %v6817_v7  ;;  %v5106_v17 = vld [vmem:[%s7781_s5 + $0x10] sm:$0xff]  }
 0xa82   : > { %v2495_v45 = vpop.xlane.xlu0 %2494  ;;  %v2557_v33 = vpop.permute.xlu1 %2556 }
 0xa83   : > { %5395 = vrcp.f32 %v2495_v45 }
 0xa84   : > { %v5384_v10 = vpop.eup %5383 }
 0xa85   : > { %v2535_v4 = vmul.f32 %v5384_v10, %v6820_v9  ;;  %v5107_v10 = vld [vmem:[%s7781_s5 + $0x8] sm:$0xff]  }
 0xa86   : > { %v2559_v47 = vpop.permute.xlu0 %2558 }
 0xa87   : > { %4949 = vmatprep.subr.bf16.mxu0 %v2559_v47 }
 0xa88   : > { %v5386_v42 = vpop.eup %5385  ;;  %4950 = vmatpush3.bf16.msra.mxu0 %v2559_v47  ;;  %v5108_v47 = vld [vmem:[%s7781_s5] sm:$0xff]  }
 0xa89   : > { %v5388_v37 = vpop.eup %5387  ;;  %v2533_v32 = vmul.f32 %v5386_v42, %v6823_v60  ;;  %4951 = vmatprep.subr.bf16.mxu0 %v2557_v33 }
 0xa8a   : > { %v2534_v52 = vmul.f32 %v5388_v37, %v6814_v40 }
 0xa8b   : > { %v2548_v44 = vpack.c.bf16 %v2533_v32, %v2532_v27  ;;  %v7888_v32 = vld [vmem:[#allocation5_spill] sm:$0xff] }
 0xa8c   : > { %4952 = vmatpush3.bf16.msra.mxu0 %v2557_v33  ;;  %v5390_v59 = vpop.eup %5389  ;;  %v2549_v0 = vpack.c.bf16 %v2535_v4, %v2534_v52 }
 0xa8d   : > { %4953 = vmatprep.mubr.bf16.mxu0 %v2548_v44  ;;  %v5392_v39 = vpop.eup %5391  ;;  %v2536_v14 = vmul.f32 %v5390_v59, %v6831_v55  ;;  %v7889_v44 = vld [vmem:[#allocation9_spill] sm:$0xff] }
 0xa8e   : > { %v5394_v1 = vpop.eup %5393  ;;  %v2539_v60 = vmul.f32 %v5392_v39, %v6829_v15 }
 0xa8f   : > { %4954 = vmatmul.mubr.bf16.vlgmr.msra.gmra.mxu0 %v2549_v0  ;;  %v2538_v9 = vmul.f32 %v5394_v1, %v6825_v19 }
 0xa90   : > { %v5396_v35 = vpop.eup %5395 }
 0xa91   : > { %v2537_v7 = vmul.f32 %v5396_v35, %v6835_v43  ;;  %v2551_v26 = vpack.c.bf16 %v2539_v60, %v2538_v9 }
 0xa93   : > { %v2550_v51 = vpack.c.bf16 %v2537_v7, %v2536_v14 }
 0xa95   : > { %4957 = vmatprep.mubr.bf16.mxu0 %v2550_v51  ;;  %v7892_v51 = vld [vmem:[#allocation35_spill] sm:$0xff] }
 0xa97   : > { %4958 = vmatmul.mubr.bf16.gmra.mxu0 %v2551_v26 }
 0xab3   : > { %v2501_v40 = vpop.xlane.xlu1 %2500 }
 0xab4   : > { %5397 = vrcp.f32 %v2501_v40  ;;  %v7893_v40 = vld [vmem:[#allocation37_spill] sm:$0xff] }
 0xab7   : > { %v2507_v30 = vpop.xlane.xlu1 %2506  ;;  %v2503_v20 = vpop.xlane.xlu0 %2502 }
 0xab8   : > { %5399 = vrcp.f32 %v2503_v20 }
 0xab9   : > { %5401 = vrcp.f32 %v2507_v30 }
 0xabb   : > { %v2505_v25 = vpop.xlane.xlu0 %2504 }
 0xabc   : > { %5403 = vrcp.f32 %v2505_v25 }
 0xabf   : > { %v2511_v48 = vpop.xlane.xlu1 %2510 }
 0xac0   : > { %5405 = vrcp.f32 %v2511_v48  ;;  %v2509_v55 = vpop.xlane.xlu0 %2508 }
 0xac1   : > { %5407 = vrcp.f32 %v2509_v55  ;;  %v5398_v54 = vpop.eup %5397 }
 0xac2   : > { %v2540_v5 = vmul.f32 %v5398_v54, %v6850_v56 }
 0xac3   : > { %v2515_v43 = vpop.xlane.xlu1 %2514 }
 0xac4   : > { %5409 = vrcp.f32 %v2515_v43  ;;  %v2513_v15 = vpop.xlane.xlu0 %2512 }
 0xac5   : > { %5411 = vrcp.f32 %v2513_v15  ;;  %v5400_v19 = vpop.eup %5399 }
 0xac6   : > { %v5402_v61 = vpop.eup %5401  ;;  %v2541_v8 = vmul.f32 %v5400_v19, %v6855_v6 }
 0xac7   : > { %v2543_v24 = vmul.f32 %v5402_v61, %v6853_v46  ;;  %v5101_v46 = vld [vmem:[%s7781_s5 + $0x38] sm:$0xff]   ;;  %v2696_v39 = vpop.permute.xlu1 %2695 }
 0xac8   : > { %v2552_v11 = vpack.c.bf16 %v2541_v8, %v2540_v5  ;;  %4969 = vmatprep.subr.bf16.mxu0 %v5101_v46 }
 0xac9   : > { %v5404_v57 = vpop.eup %5403  ;;  %4970 = vmatpush3.bf16.msra.mxu0 %v5101_v46 }
 0xaca   : > { %v2542_v63 = vmul.f32 %v5404_v57, %v6859_v62  ;;  %4961 = vmatprep.mubr.bf16.mxu0 %v2552_v11  ;;  %v7894_v11 = vld [vmem:[#allocation21_spill] sm:$0xff] }
 0xacb   : > { %v2698_v14 = vpop.permute.xlu1 %2697 }
 0xacc   : > { %v2553_v31 = vpack.c.bf16 %v2543_v24, %v2542_v63 }
 0xacd   : > { %v5406_v49 = vpop.eup %5405 }
 0xace   : > { %v5408_v38 = vpop.eup %5407  ;;  %v2545_v23 = vmul.f32 %v5406_v49, %v6862_v16  ;;  %4962 = vmatmul.mubr.bf16.gmra.mxu0 %v2553_v31  ;;  %v5102_v16 = vld [vmem:[%s7781_s5 + $0x30] sm:$0xff]  }
 0xacf   : > { %v2544_v41 = vmul.f32 %v5408_v38, %v6864_v29  ;;  %4971 = vmatprep.subr.bf16.mxu0 %v5102_v16  ;;  %v5103_v29 = vld [vmem:[%s7781_s5 + $0x28] sm:$0xff]   ;;  %v7895_v31 = vld [vmem:[#allocation20_spill] sm:$0xff] }
 0xad0   : > { %4972 = vmatpush3.bf16.msra.mxu0 %v5102_v16 }
 0xad1   : > { %v5410_v21 = vpop.eup %5409  ;;  %v2554_v53 = vpack.c.bf16 %v2545_v23, %v2544_v41  ;;  %4973 = vmatprep.subr.bf16.mxu0 %v5103_v29  ;;  %v7896_v41 = vld [vmem:[#allocation19_spill] sm:$0xff] }
 0xad2   : > { %v5412_v56 = vpop.eup %5411  ;;  %v2547_v6 = vmul.f32 %v5410_v21, %v6868_v22  ;;  %v5104_v22 = vld [vmem:[%s7781_s5 + $0x20] sm:$0xff]   ;;  %v2871_v21 = vsel %vm908_vm0, %v7896_v41, %v2698_v14  ;;  %v7902_v41 = vld [vmem:[#allocation29_spill] sm:$0xff] }
 0xad3   : > { %4965 = vmatprep.mubr.bf16.mxu0 %v2554_v53  ;;  %v2546_v45 = vmul.f32 %v5412_v56, %v6870_v2  ;;  %v5105_v2 = vld [vmem:[%s7781_s5 + $0x18] sm:$0xff]  }
 0xad4   : > { %4974 = vmatpush3.bf16.msra.mxu0 %v5103_v29 }
 0xad5   : > { %v2555_v62 = vpack.c.bf16 %v2547_v6, %v2546_v45  ;;  %4975 = vmatprep.subr.bf16.mxu0 %v5104_v22  ;;  %v7897_v45 = vld [vmem:[#allocation22_spill] sm:$0xff] }
 0xad7   : > { %4966 = vmatmul.mubr.bf16.gmra.mxu0 %v2555_v62  ;;  %v2870_v62 = vsel %vm908_vm0, %v7897_v45, %v2696_v39  ;;  %v7898_v39 = vld [vmem:[#allocation25_spill] sm:$0xff] }
 0xad8   : > { %4976 = vmatpush3.bf16.msra.mxu0 %v5104_v22 }
 0xad9   : > { %4977 = vmatprep.subr.bf16.mxu0 %v5105_v2 }
 0xadc   : > { %4978 = vmatpush3.bf16.msra.mxu0 %v5105_v2 }
 0xadd   : > { %4979 = vmatprep.subr.bf16.mxu0 %v5106_v17 }
 0xae0   : > { %4980 = vmatpush3.bf16.msra.mxu0 %v5106_v17 }
 0xae1   : > { %4981 = vmatprep.subr.bf16.mxu0 %v5107_v10 }
 0xae4   : > { %4982 = vmatpush3.bf16.msra.mxu0 %v5107_v10 }
 0xae5   : > { %4983 = vmatprep.subr.bf16.mxu0 %v5108_v47 }
 0xae8   : > { %4984 = vmatpush3.bf16.msra.mxu0 %v5108_v47 }
 0xb4f   : > { %v4955_v42 = vpop.f32.mrf.mxu0 }
 0xb50   : > { %2825 = vrot.lane.b32.xlu0 %v4955_v42, %s5511_s19 }
 0xb51   : > { %v2614_v37 = vpop.f32.mrf.mxu0 }
 0xb53   : > { %v4956_v33 = vpop.f32.mrf.mxu0 }
 0xb54   : > { %2821 = vrot.lane.b32.xlu0 %v2614_v37, %s5511_s19  ;;  %2827 = vrot.lane.b32.xlu1 %v4956_v33, %s5511_s19 }
 0xb55   : > { %v2617_v27 = vpop.f32.mrf.mxu0 }
 0xb57   : > { %v4959_v4 = vpop.f32.mrf.mxu0 }
 0xb58   : > { %2713 = vrot.lane.b32.xlu0 %v7888_v32, %s5513_s26  ;;  %2823 = vrot.lane.b32.xlu1 %v2617_v27, %s5511_s19 }
 0xb59   : > { %v2630_v52 = vpop.f32.mrf.mxu0 }
 0xb5b   : > { %v4960_v59 = vpop.f32.mrf.mxu0 }
 0xb5c   : > { %2773 = vrot.lane.b32.xlu0 %v6756_v3, %s5512_s24  ;;  %2715 = vrot.lane.b32.xlu1 %v7889_v44, %s5513_s26  ;;  %v7890_v3 = vld [vmem:[#allocation36_spill] sm:$0xff] }
 0xb5d   : > { %v2633_v0 = vpop.f32.mrf.mxu0 }
 0xb60   : > { %2775 = vrot.lane.b32.xlu1 %v6760_v18, %s5512_s24  ;;  %2833 = vrot.lane.b32.xlu0 %v4959_v4, %s5511_s19  ;;  %v7891_v18 = vld [vmem:[#allocation38_spill] sm:$0xff] }
 0xb64   : > { %2829 = vrot.lane.b32.xlu0 %v2630_v52, %s5511_s19  ;;  %2835 = vrot.lane.b32.xlu1 %v4960_v59, %s5511_s19 }
 0xb68   : > { %2777 = vrot.lane.b32.xlu0 %v6754_v58, %s5512_s24  ;;  %2831 = vrot.lane.b32.xlu1 %v2633_v0, %s5511_s19  ;;  %v2694_v58 = vpop.permute.xlu0 %2693 }
 0xb69   : > { %v2869_v38 = vsel %vm908_vm0, %v7895_v31, %v2694_v58 }
 0xb6c   : > { %2717 = vrot.lane.b32.xlu0 %v7890_v3, %s5513_s26  ;;  %2779 = vrot.lane.b32.xlu1 %v6758_v12, %s5512_s24  ;;  %v2700_v12 = vpop.permute.xlu1 %2699  ;;  %v2758_v9 = vpop.permute.xlu0 %2757 }
 0xb6d   : > { %v2872_v63 = vsel %vm908_vm0, %v7894_v11, %v2700_v12  ;;  %v2886_v53 = vsel %vm2885_vm1, %v2869_v38, %v2758_v9 }
 0xb70   : > { %2719 = vrot.lane.b32.xlu1 %v7891_v18, %s5513_s26  ;;  %v2760_v30 = vpop.permute.xlu1 %2759  ;;  %v2762_v25 = vpop.permute.xlu0 %2761 }
 0xb71   : > { %v2888_v46 = vsel %vm2885_vm1, %v2871_v21, %v2762_v25  ;;  %v2887_v2 = vsel %vm2885_vm1, %v2870_v62, %v2760_v30  ;;  %v7901_v30 = vld [vmem:[#allocation26_spill] sm:$0xff] }
 0xb74   : > { %v2764_v55 = vpop.permute.xlu1 %2763 }
 0xb75   : > { %v2889_v23 = vsel %vm2885_vm1, %v2872_v63, %v2764_v55 }
 0xb78   : > { %v2704_v15 = vpop.permute.xlu1 %2703 }
 0xb8e   : > { %v4963_v1 = vpop.f32.mrf.mxu0 }
 0xb8f   : > { %2841 = vrot.lane.b32.xlu0 %v4963_v1, %s5511_s19 }
 0xb90   : > { %v2646_v35 = vpop.f32.mrf.mxu0 }
 0xb92   : > { %v4964_v7 = vpop.f32.mrf.mxu0 }
 0xb93   : > { %2837 = vrot.lane.b32.xlu0 %v2646_v35, %s5511_s19  ;;  %2843 = vrot.lane.b32.xlu1 %v4964_v7, %s5511_s19  ;;  %v7899_v7 = vld [vmem:[#allocation24_spill] sm:$0xff] }
 0xb94   : > { %v2649_v60 = vpop.f32.mrf.mxu0 }
 0xb97   : > { %2721 = vrot.lane.b32.xlu0 %v7892_v51, %s5513_s26  ;;  %2839 = vrot.lane.b32.xlu1 %v2649_v60, %s5511_s19  ;;  %v4967_v26 = vpop.f32.mrf.mxu0  ;;  %v7900_v51 = vld [vmem:[#allocation23_spill] sm:$0xff] }
 0xb99   : > { %v2662_v20 = vpop.f32.mrf.mxu0 }
 0xb9b   : > { %2781 = vrot.lane.b32.xlu0 %v6764_v50, %s5512_s24  ;;  %2723 = vrot.lane.b32.xlu1 %v7893_v40, %s5513_s26  ;;  %v4968_v48 = vpop.f32.mrf.mxu0  ;;  %v2702_v50 = vpop.permute.xlu0 %2701  ;;  %s7008_s26 = scalar_lea.vmem %s7778_s2, %s4391_s20 }
 0xb9c   : > { %v2922_v56 = vld [vmem:[%s7008_s26 + $0x18] sm:$0xff]  ;;  %v2919_v16 = vld [vmem:[%s7008_s26] sm:$0xff]  ;;  %v2920_v22 = vld [vmem:[%s7008_s26 + $0x8] sm:$0xff]  ;;  %v2873_v58 = vsel %vm908_vm0, %v7899_v7, %v2702_v50 }
 0xb9d   : > { %v2665_v43 = vpop.f32.mrf.mxu0  ;;  %v2921_v17 = vld [vmem:[%s7008_s26 + $0x10] sm:$0xff] }
 0xb9f   : > { %2785 = vrot.lane.b32.xlu0 %v6762_v36, %s5512_s24  ;;  %2783 = vrot.lane.b32.xlu1 %v6768_v28, %s5512_s24  ;;  %v2706_v36 = vpop.permute.xlu0 %2705  ;;  %v2708_v28 = vpop.permute.xlu1 %2707 }
 0xba0   : > { %v2876_v1 = vsel %vm908_vm0, %v7898_v39, %v2708_v28  ;;  %v2875_v12 = vsel %vm908_vm0, %v7900_v51, %v2706_v36  ;;  %v2925_v28 = vld [vmem:[%s7008_s26 + $0x30] sm:$0xff] }
 0xba1   : > { %v7906_v51 = vld [vmem:[#allocation32_spill] sm:$0xff] }
 0xba3   : > { %2787 = vrot.lane.b32.xlu1 %v6766_v13, %s5512_s24  ;;  %2845 = vrot.lane.b32.xlu0 %v2662_v20, %s5511_s19  ;;  %v2766_v54 = vpop.permute.xlu0 %2765  ;;  %v2768_v19 = vpop.permute.xlu1 %2767  ;;  %v2874_v20 = vsel %vm908_vm0, %v7901_v30, %v2704_v15  ;;  %v2931_v30 = vld [vmem:[%s7008_s26 + $0x60] sm:$0xff] }
 0xba4   : > { %v2890_v9 = vsel %vm2885_vm1, %v2873_v58, %v2766_v54  ;;  %v2891_v50 = vsel %vm2885_vm1, %v2874_v20, %v2768_v19 }
 0xba7   : > { %2849 = vrot.lane.b32.xlu0 %v4967_v26, %s5511_s19  ;;  %2847 = vrot.lane.b32.xlu1 %v2665_v43, %s5511_s19  ;;  %v2770_v61 = vpop.permute.xlu0 %2769  ;;  %v2772_v5 = vpop.permute.xlu1 %2771  ;;  %v2926_v26 = vld [vmem:[%s7008_s26 + $0x38] sm:$0xff]  ;;  %v2924_v43 = vld [vmem:[%s7008_s26 + $0x28] sm:$0xff] }
 0xba8   : > { %v2893_v60 = vsel %vm2885_vm1, %v2876_v1, %v2772_v5  ;;  %v2892_v25 = vsel %vm2885_vm1, %v2875_v12, %v2770_v61 }
 0xbab   : > { %2851 = vrot.lane.b32.xlu1 %v4968_v48, %s5511_s19  ;;  %v6994_v13 = vpop.permute.xlu0 %2709  ;;  %v6996_v8 = vpop.permute.xlu1 %2711  ;;  %v2923_v48 = vld [vmem:[%s7008_s26 + $0x20] sm:$0xff] }
 0xbc2   : > { %v2826_v57 = vpop.permute.xlu0 %2825 }
 0xbc3   : > { %v2905_v10 = vsel %vm2902_vm2, %v2888_v46, %v2826_v57  ;;  %v7904_v46 = vld [vmem:[#allocation27_spill] sm:$0xff] }
 0xbc4   : > { %v2937_v4 = vmul.f32 %v2921_v17, %v2905_v10  ;;  %v7905_v17 = vld [vmem:[#allocation30_spill] sm:$0xff] }
 0xbc5   : > { %v2878_v10 = vsel %vm908_vm0, %v7905_v17, %v6996_v8 }
 0xbc6   : > { %v2828_v24 = vpop.permute.xlu1 %2827  ;;  %v2822_v49 = vpop.permute.xlu0 %2821 }
 0xbc7   : > { %v2906_v6 = vsel %vm2902_vm2, %v2889_v23, %v2828_v24  ;;  %v2903_v29 = vsel %vm2902_vm2, %v2886_v53, %v2822_v49 }
 0xbc8   : > { %v2938_v37 = vmul.f32 %v2922_v56, %v2906_v6  ;;  %v2935_v27 = vmul.f32 %v2919_v16, %v2903_v29  ;;  %v7903_v6 = vld [vmem:[#allocation28_spill] sm:$0xff] }
 0xbc9   : > { %v2877_v45 = vsel %vm908_vm0, %v7903_v6, %v6994_v13  ;;  %v2928_v13 = vld [vmem:[%s7008_s26 + $0x48] sm:$0xff] }
 0xbca   : > { %v2824_v47 = vpop.permute.xlu1 %2823  ;;  %v2714_v42 = vpop.permute.xlu0 %2713  ;;  %v2952_v0 = vpack.c.bf16 %v2938_v37, %v2937_v4  ;;  %v2927_v37 = vld [vmem:[%s7008_s26 + $0x40] sm:$0xff]  ;;  %v7910_v6 = vld [vmem:[#allocation3_spill] sm:$0xff] }
 0xbcb   : > { %v2904_v33 = vsel %vm2902_vm2, %v2887_v2, %v2824_v47  ;;  %v2879_v16 = vsel %vm908_vm0, %v7904_v46, %v2714_v42 }
 0xbcc   : > { %v2936_v32 = vmul.f32 %v2920_v22, %v2904_v33  ;;  %v2930_v22 = vld [vmem:[%s7008_s26 + $0x58] sm:$0xff] }
 0xbce   : > { %v2716_v44 = vpop.permute.xlu1 %2715  ;;  %v2774_v52 = vpop.permute.xlu0 %2773  ;;  %v2951_v59 = vpack.c.bf16 %v2936_v32, %v2935_v27  ;;  %v2929_v32 = vld [vmem:[%s7008_s26 + $0x50] sm:$0xff] }
 0xbcf   : > { %v2880_v21 = vsel %vm908_vm0, %v7902_v41, %v2716_v44  ;;  %v2894_v29 = vsel %vm2885_vm1, %v2877_v45, %v2774_v52 }
 0xbd0   : > { %4985 = vmatprep.mubr.bf16.mxu0 %v2951_v59 }
 0xbd1   : > { %4986 = vmatmul.mubr.bf16.vlgmr.msra.gmra.mxu0 %v2952_v0 }
 0xbd2   : > { %v2776_v3 = vpop.permute.xlu1 %2775  ;;  %v2834_v18 = vpop.permute.xlu0 %2833 }
 0xbd3   : > { %v2909_v5 = vsel %vm2902_vm2, %v2892_v25, %v2834_v18  ;;  %v2895_v27 = vsel %vm2885_vm1, %v2878_v10, %v2776_v3  ;;  %v2932_v25 = vld [vmem:[%s7008_s26 + $0x68] sm:$0xff] }
 0xbd4   : > { %v2941_v24 = vmul.f32 %v2925_v28, %v2909_v5 }
 0xbd6   : > { %v2836_v35 = vpop.permute.xlu1 %2835  ;;  %v2830_v14 = vpop.permute.xlu0 %2829 }
 0xbd7   : > { %v2910_v40 = vsel %vm2902_vm2, %v2893_v60, %v2836_v35  ;;  %v2907_v55 = vsel %vm2902_vm2, %v2890_v9, %v2830_v14 }
 0xbd8   : > { %v2942_v57 = vmul.f32 %v2926_v26, %v2910_v40  ;;  %v2939_v11 = vmul.f32 %v2923_v48, %v2907_v55  ;;  %v7907_v26 = vld [vmem:[#allocation34_spill] sm:$0xff] }
 0xbda   : > { %v2832_v36 = vpop.permute.xlu1 %2831  ;;  %v2954_v15 = vpack.c.bf16 %v2942_v57, %v2941_v24  ;;  %v2778_v61 = vpop.permute.xlu0 %2777  ;;  %v2933_v24 = vld [vmem:[%s7008_s26 + $0x70] sm:$0xff] }
 0xbdb   : > { %v2908_v54 = vsel %vm2902_vm2, %v2891_v50, %v2832_v36  ;;  %v2896_v47 = vsel %vm2885_vm1, %v2879_v16, %v2778_v61  ;;  %v7908_v50 = vld [vmem:[#allocation31_spill] sm:$0xff] }
 0xbdc   : > { %v2940_v63 = vmul.f32 %v2924_v43, %v2908_v54 }
 0xbde   : > { %v2953_v49 = vpack.c.bf16 %v2940_v63, %v2939_v11  ;;  %v2780_v31 = vpop.permute.xlu1 %2779  ;;  %v2718_v38 = vpop.permute.xlu0 %2717  ;;  %v7909_v11 = vld [vmem:[#allocation33_spill] sm:$0xff] }
 0xbdf   : > { %v2897_v62 = vsel %vm2885_vm1, %v2880_v21, %v2780_v31  ;;  %v2881_v12 = vsel %vm908_vm0, %v7906_v51, %v2718_v38 }
 0xbe0   : > { %4989 = vmatprep.mubr.bf16.mxu0 %v2953_v49 }
 0xbe1   : > { %4990 = vmatmul.mubr.bf16.gmra.mxu0 %v2954_v15  ;;  %v2934_v15 = vld [vmem:[%s7008_s26 + $0x78] sm:$0xff] }
 0xbe2   : > { %v2720_v19 = vpop.permute.xlu1 %2719 }
 0xbe3   : > { %v2882_v40 = vsel %vm908_vm0, %v7907_v26, %v2720_v19 }
 0xc01   : > { %v2842_v23 = vpop.permute.xlu0 %2841 }
 0xc02   : > { %v2913_v42 = vsel %vm2902_vm2, %v2896_v47, %v2842_v23 }
 0xc03   : > { %v2945_v8 = vmul.f32 %v2929_v32, %v2913_v42 }
 0xc05   : > { %v2844_v53 = vpop.permute.xlu1 %2843  ;;  %v2838_v56 = vpop.permute.xlu0 %2837 }
 0xc06   : > { %v2914_v2 = vsel %vm2902_vm2, %v2897_v62, %v2844_v53  ;;  %v2911_v33 = vsel %vm2902_vm2, %v2894_v29, %v2838_v56  ;;  %v7090_v53 = vld [vmem:[%s7785_s9] sm:$0x3f] }
 0xc07   : > { %v2946_v52 = vmul.f32 %v2930_v22, %v2914_v2  ;;  %v2943_v0 = vmul.f32 %v2927_v37, %v2911_v33  ;;  %v7094_v45 = vrot.slane %v7090_v53, %v7910_v6  ;;  %v5493_v62 = vld [vmem:[%s5604_s30] sm:$0xff]   ;;  %v5494_v2 = vld [vmem:[%s5604_s30 + $0x8] sm:$0xff]  }
 0xc08   : > { %v417_v46 = vunpack.c.l.bf16 %v5493_v62  ;;  %v419_v17 = vunpack.c.l.bf16 %v5494_v2  ;;  %v418_v37 = vunpack.c.h.bf16 %v5493_v62  ;;  %v420_v32 = vunpack.c.h.bf16 %v5494_v2 }
 0xc09   : > { %v2840_v4 = vpop.permute.xlu1 %2839  ;;  %v2722_v44 = vpop.permute.xlu0 %2721  ;;  %v2956_v14 = vpack.c.bf16 %v2946_v52, %v2945_v8 }
 0xc0a   : > { %v2912_v59 = vsel %vm2902_vm2, %v2895_v27, %v2840_v4  ;;  %v2883_v28 = vsel %vm908_vm0, %v7908_v50, %v2722_v44  ;;  %v5498_v50 = vld [vmem:[%s5604_s30 + $0x28] sm:$0xff]  }
 0xc0b   : > { %v2944_v18 = vmul.f32 %v2928_v13, %v2912_v59  ;;  %v5495_v59 = vld [vmem:[%s5604_s30 + $0x10] sm:$0xff]  }
 0xc0d   : > { %v2724_v39 = vpop.permute.xlu1 %2723  ;;  %v2782_v1 = vpop.permute.xlu0 %2781  ;;  %v2955_v35 = vpack.c.bf16 %v2944_v18, %v2943_v0  ;;  %v421_v0 = vunpack.c.l.bf16 %v5495_v59 }
 0xc0e   : > { %v2898_v9 = vsel %vm2885_vm1, %v2881_v12, %v2782_v1  ;;  %v2884_v63 = vsel %vm908_vm0, %v7909_v11, %v2724_v39  ;;  %v5496_v1 = vld [vmem:[%s5604_s30 + $0x18] sm:$0xff]  }
 0xc0f   : > { %4993 = vmatprep.mubr.bf16.mxu0 %v2955_v35  ;;  %v423_v35 = vunpack.c.l.bf16 %v5496_v1  ;;  %v424_v12 = vunpack.c.h.bf16 %v5496_v1 }
 0xc10   : > { %4994 = vmatmul.mubr.bf16.gmra.mxu0 %v2956_v14 }
 0xc11   : > { %v2784_v3 = vpop.permute.xlu1 %2783  ;;  %v2786_v7 = vpop.permute.xlu0 %2785 }
 0xc12   : > { %v2899_v48 = vsel %vm2885_vm1, %v2882_v40, %v2784_v3  ;;  %v2900_v36 = vsel %vm2885_vm1, %v2883_v28, %v2786_v7  ;;  %v422_v7 = vunpack.c.h.bf16 %v5495_v59  ;;  %v427_v28 = vunpack.c.l.bf16 %v5498_v50 }
 0xc15   : > { %v2788_v58 = vpop.permute.xlu1 %2787  ;;  %v2846_v60 = vpop.permute.xlu0 %2845 }
 0xc16   : > { %v2915_v20 = vsel %vm2902_vm2, %v2898_v9, %v2846_v60  ;;  %v2901_v61 = vsel %vm2885_vm1, %v2884_v63, %v2788_v58 }
 0xc17   : > { %v2947_v57 = vmul.f32 %v2931_v30, %v2915_v20  ;;  %v5497_v20 = vld [vmem:[%s5604_s30 + $0x20] sm:$0xff]  }
 0xc19   : > { %v2848_v55 = vpop.permute.xlu1 %2847  ;;  %v2850_v43 = vpop.permute.xlu0 %2849 }
 0xc1a   : > { %v2916_v5 = vsel %vm2902_vm2, %v2899_v48, %v2848_v55  ;;  %v2917_v49 = vsel %vm2902_vm2, %v2900_v36, %v2850_v43 }
 0xc1b   : > { %v2948_v54 = vmul.f32 %v2932_v25, %v2916_v5  ;;  %v2949_v23 = vmul.f32 %v2933_v24, %v2917_v49  ;;  %v425_v25 = vunpack.c.l.bf16 %v5497_v20  ;;  %v428_v24 = vunpack.c.h.bf16 %v5498_v50 }
 0xc1d   : > { %v2852_v31 = vpop.permute.xlu1 %2851  ;;  %v2957_v38 = vpack.c.bf16 %v2948_v54, %v2947_v57  ;;  %v426_v57 = vunpack.c.h.bf16 %v5497_v20 }
 0xc1e   : > { %v2918_v19 = vsel %vm2902_vm2, %v2901_v61, %v2852_v31 }
 0xc1f   : > { %v2950_v41 = vmul.f32 %v2934_v15, %v2918_v19  ;;  %4997 = vmatprep.mubr.bf16.mxu0 %v2957_v38  ;;  %v5499_v38 = vld [vmem:[%s5604_s30 + $0x30] sm:$0xff]  }
 0xc20   : > { %v429_v19 = vunpack.c.l.bf16 %v5499_v38 }
 0xc21   : > { %v2958_v21 = vpack.c.bf16 %v2950_v41, %v2949_v23 }
 0xc23   : > { %4998 = vmatmul.mubr.bf16.gmra.mxu0 %v2958_v21 }
 0xc91   : > { %v4987_v56 = vpop.f32.mrf.mxu0 }
 0xc92   : > { %v3071_v10 = vadd.f32 %v4987_v56, %v7094_v45  ;;  %v5500_v56 = vld [vmem:[%s5604_s30 + $0x38] sm:$0xff]  }
 0xc93   : > { %v3062_v16 = vpop.f32.mrf.mxu0  ;;  %v431_v62 = vunpack.c.l.bf16 %v5500_v56 }
 0xc94   : > { %v3063_v29 = vadd.f32 %v3062_v16, %v7094_v45  ;;  %v7104_v27 = vadd.f32 %v3071_v10, %v419_v17  ;;  %v432_v10 = vunpack.c.h.bf16 %v5500_v56  ;;  %v5127_v56 = vld [vmem:[%s7782_s6 + $0x10] ss:$8 sps:$4 sm:$0xff]  }
 0xc95   : > { %v4988_v22 = vpop.f32.mrf.mxu0 }
 0xc96   : > { %v7100_v47 = vadd.f32 %v3063_v29, %v417_v46  ;;  %v3074_v42 = vadd.f32 %v4988_v22, %v7094_v45  ;;  %v430_v29 = vunpack.c.h.bf16 %v5499_v38 }
 0xc97   : > { %v3065_v33 = vpop.f32.mrf.mxu0 }
 0xc98   : > { %v3066_v13 = vadd.f32 %v3065_v33, %v7094_v45  ;;  %3141 = vadd.xlane.f32.xlu0 %v7100_v47  ;;  %v7111_v44 = vadd.f32 %v3074_v42, %v420_v32  ;;  %v5109_v32 = vld [vmem:[%s7782_s6 + $0x70] ss:$8 sps:$4 sm:$0xff]   ;;  %v5111_v42 = vld [vmem:[%s7782_s6 + $0x74] ss:$8 sps:$4 sm:$0xff]  }
 0xc99   : > { %3474 = vmatprep.subr.bf16.mxu1 %v5111_v42 }
 0xc9a   : > { %v7107_v4 = vadd.f32 %v3066_v13, %v418_v37  ;;  %3475 = vmatpush1.bf16.msra.mxu1 %v5109_v32 }
 0xc9c   : > { %3143 = vadd.xlane.f32.xlu1 %v7107_v4  ;;  %3145 = vadd.xlane.f32.xlu0 %v7104_v27 }
 0xca0   : > { %3147 = vadd.xlane.f32.xlu0 %v7111_v44 }
 0xca1   : > { %v4991_v52 = vpop.f32.mrf.mxu0 }
 0xca2   : > { %v3087_v14 = vadd.f32 %v4991_v52, %v7094_v45 }
 0xca3   : > { %v3078_v18 = vpop.f32.mrf.mxu0 }
 0xca4   : > { %v3079_v8 = vadd.f32 %v3078_v18, %v7094_v45  ;;  %v7122_v51 = vadd.f32 %v3087_v14, %v423_v35 }
 0xca5   : > { %v4992_v39 = vpop.f32.mrf.mxu0 }
 0xca6   : > { %v7118_v3 = vadd.f32 %v3079_v8, %v421_v0  ;;  %v3090_v9 = vadd.f32 %v4992_v39, %v7094_v45 }
 0xca7   : > { %v3081_v58 = vpop.f32.mrf.mxu0 }
 0xca8   : > { %v3082_v60 = vadd.f32 %v3081_v58, %v7094_v45  ;;  %3149 = vadd.xlane.f32.xlu0 %v7118_v3  ;;  %v7129_v40 = vadd.f32 %v3090_v9, %v424_v12 }
 0xcaa   : > { %v7125_v26 = vadd.f32 %v3082_v60, %v422_v7 }
 0xcac   : > { %3151 = vadd.xlane.f32.xlu1 %v7125_v26  ;;  %3153 = vadd.xlane.f32.xlu0 %v7122_v51 }
 0xcb0   : > { %3155 = vadd.xlane.f32.xlu1 %v7129_v40 }
 0xcd0   : > { %v4995_v30 = vpop.f32.mrf.mxu0 }
 0xcd1   : > { %v3103_v5 = vadd.f32 %v4995_v30, %v7094_v45  ;;  %v5114_v30 = vld [vmem:[%s7782_s6 + $0x64] ss:$8 sps:$4 sm:$0xff]  }
 0xcd2   : > { %v3094_v48 = vpop.f32.mrf.mxu0  ;;  %3476 = vmatprep.subr.bf16.mxu1 %v5114_v30 }
 0xcd3   : > { %v3095_v55 = vadd.f32 %v3094_v48, %v7094_v45  ;;  %v7140_v63 = vadd.f32 %v3103_v5, %v427_v28  ;;  %v5117_v28 = vld [vmem:[%s7782_s6 + $0x54] ss:$8 sps:$4 sm:$0xff]  }
 0xcd4   : > { %v4996_v43 = vpop.f32.mrf.mxu0 }
 0xcd5   : > { %v7136_v36 = vadd.f32 %v3095_v55, %v425_v25  ;;  %v3106_v49 = vadd.f32 %v4996_v43, %v7094_v45 }
 0xcd6   : > { %v3097_v54 = vpop.f32.mrf.mxu0 }
 0xcd7   : > { %v3098_v11 = vadd.f32 %v3097_v54, %v7094_v45  ;;  %3157 = vadd.xlane.f32.xlu0 %v7136_v36  ;;  %v7147_v61 = vadd.f32 %v3106_v49, %v428_v24 }
 0xcd9   : > { %v7143_v15 = vadd.f32 %v3098_v11, %v426_v57  ;;  %v5115_v57 = vld [vmem:[%s7782_s6 + $0x50] ss:$8 sps:$4 sm:$0xff]  }
 0xcdb   : > { %3159 = vadd.xlane.f32.xlu1 %v7143_v15  ;;  %3161 = vadd.xlane.f32.xlu0 %v7140_v63 }
 0xcdf   : > { %3163 = vadd.xlane.f32.xlu1 %v7147_v61 }
 0xce3   : > { %v4999_v31 = vpop.f32.mrf.mxu0 }
 0xce4   : > { %v3119_v46 = vadd.f32 %v4999_v31, %v7094_v45  ;;  %v5118_v31 = vld [vmem:[%s7782_s6 + $0x40] ss:$8 sps:$4 sm:$0xff]  }
 0xce5   : > { %v3110_v23 = vpop.f32.mrf.mxu0 }
 0xce6   : > { %v3111_v41 = vadd.f32 %v3110_v23, %v7094_v45  ;;  %v7158_v17 = vadd.f32 %v3119_v46, %v431_v62  ;;  %v5126_v23 = vld [vmem:[%s7782_s6 + $0x24] ss:$8 sps:$4 sm:$0xff]   ;;  %v5130_v46 = vld [vmem:[%s7782_s6] ss:$8 sps:$4 sm:$0xff]  }
 0xce7   : > { %v5000_v21 = vpop.f32.mrf.mxu0  ;;  %v5132_v62 = vld [vmem:[%s7782_s6 + $0x4] ss:$8 sps:$4 sm:$0xff]  }
 0xce8   : > { %v7154_v16 = vadd.f32 %v3111_v41, %v429_v19  ;;  %v3122_v37 = vadd.f32 %v5000_v21, %v7094_v45  ;;  %v5123_v19 = vld [vmem:[%s7782_s6 + $0x34] ss:$8 sps:$4 sm:$0xff]   ;;  %v5124_v41 = vld [vmem:[%s7782_s6 + $0x20] ss:$8 sps:$4 sm:$0xff]  }
 0xce9   : > { %v3113_v22 = vpop.f32.mrf.mxu0  ;;  %v5129_v21 = vld [vmem:[%s7782_s6 + $0x14] ss:$8 sps:$4 sm:$0xff]  }
 0xcea   : > { %v3114_v2 = vadd.f32 %v3113_v22, %v7094_v45  ;;  %3165 = vadd.xlane.f32.xlu0 %v7154_v16  ;;  %v7165_v13 = vadd.f32 %v3122_v37, %v432_v10 }
 0xcec   : > { %v7161_v33 = vadd.f32 %v3114_v2, %v430_v29 }
 0xcee   : > { %3167 = vadd.xlane.f32.xlu1 %v7161_v33  ;;  %3169 = vadd.xlane.f32.xlu0 %v7158_v17 }
 0xcf2   : > { %3171 = vadd.xlane.f32.xlu1 %v7165_v13 }
 0xd21   : > { %v3142_v45 = vpop.xlane.xlu0 %3141 }
 0xd22   : > { %v3174_v52 = vmul.f32 0.0078125, %v3142_v45 }
 0xd24   : > { %v7175_v59 = vsub.f32 %v7100_v47, %v3174_v52 }
 0xd25   : > { %v3144_v0 = vpop.xlane.xlu1 %3143  ;;  %v3146_v18 = vpop.xlane.xlu0 %3145 }
 0xd26   : > { %v3175_v8 = vmul.f32 0.0078125, %v3144_v0  ;;  %v3176_v39 = vmul.f32 0.0078125, %v3146_v18  ;;  %v3206_v1 = vmul.f32 %v7175_v59, %v7175_v59 }
 0xd28   : > { %v7180_v35 = vsub.f32 %v7107_v4, %v3175_v8  ;;  %v7183_v14 = vsub.f32 %v7104_v27, %v3176_v39  ;;  %3222 = vadd.xlane.f32.xlu0 %v3206_v1 }
 0xd29   : > { %v3148_v7 = vpop.xlane.xlu0 %3147 }
 0xd2a   : > { %v3177_v58 = vmul.f32 0.0078125, %v3148_v7  ;;  %v3207_v47 = vmul.f32 %v7180_v35, %v7180_v35  ;;  %v3208_v60 = vmul.f32 %v7183_v14, %v7183_v14 }
 0xd2c   : > { %v7190_v12 = vsub.f32 %v7111_v44, %v3177_v58  ;;  %3224 = vadd.xlane.f32.xlu1 %v3207_v47  ;;  %3226 = vadd.xlane.f32.xlu0 %v3208_v60  ;;  %v5112_v44 = vld [vmem:[%s7782_s6 + $0x60] ss:$8 sps:$4 sm:$0xff]  }
 0xd2d   : > { %3477 = vmatpush1.bf16.msra.mxu1 %v5112_v44 }
 0xd2e   : > { %v3209_v4 = vmul.f32 %v7190_v12, %v7190_v12  ;;  %3478 = vmatprep.subr.bf16.mxu1 %v5117_v28  ;;  %v7319_v28 = vld [vmem:[%s7784_s8 + $0x68] sm:$0xff]  }
 0xd30   : > { %3228 = vadd.xlane.f32.xlu1 %v3209_v4 }
 0xd31   : > { %v3150_v27 = vpop.xlane.xlu0 %3149  ;;  %3479 = vmatpush1.bf16.msra.mxu1 %v5115_v57 }
 0xd32   : > { %v3178_v9 = vmul.f32 0.0078125, %v3150_v27 }
 0xd34   : > { %v7198_v20 = vsub.f32 %v7118_v3, %v3178_v9 }
 0xd35   : > { %v3152_v25 = vpop.xlane.xlu1 %3151  ;;  %v3154_v48 = vpop.xlane.xlu0 %3153 }
 0xd36   : > { %v3179_v55 = vmul.f32 0.0078125, %v3152_v25  ;;  %v3180_v43 = vmul.f32 0.0078125, %v3154_v48  ;;  %v3210_v50 = vmul.f32 %v7198_v20, %v7198_v20 }
 0xd38   : > { %v7209_v3 = vsub.f32 %v7125_v26, %v3179_v55  ;;  %v7212_v5 = vsub.f32 %v7122_v51, %v3180_v43  ;;  %3230 = vadd.xlane.f32.xlu0 %v3210_v50  ;;  %v5120_v51 = vld [vmem:[%s7782_s6 + $0x44] ss:$8 sps:$4 sm:$0xff]   ;;  %v7302_v43 = vld [vmem:[%s7784_s8 + $0x38] sm:$0xff]   ;;  %v7313_v50 = vld [vmem:[%s7784_s8 + $0x30] sm:$0xff]  }
 0xd39   : > { %v3156_v54 = vpop.xlane.xlu1 %3155  ;;  %3480 = vmatprep.subr.bf16.mxu1 %v5120_v51 }
 0xd3a   : > { %v3181_v11 = vmul.f32 0.0078125, %v3156_v54  ;;  %v3211_v24 = vmul.f32 %v7209_v3, %v7209_v3  ;;  %v3212_v49 = vmul.f32 %v7212_v5, %v7212_v5  ;;  %3481 = vmatpush1.bf16.msra.mxu1 %v5118_v31  ;;  %v7325_v54 = vld [vmem:[%s7784_s8 + $0x28] sm:$0xff]  }
 0xd3b   : > { %3482 = vmatprep.subr.bf16.mxu1 %v5123_v19 }
 0xd3c   : > { %v7225_v26 = vsub.f32 %v7129_v40, %v3181_v11  ;;  %3232 = vadd.xlane.f32.xlu1 %v3211_v24  ;;  %3234 = vadd.xlane.f32.xlu0 %v3212_v49  ;;  %v5121_v40 = vld [vmem:[%s7782_s6 + $0x30] ss:$8 sps:$4 sm:$0xff]   ;;  %v7331_v24 = vld [vmem:[%s7784_s8 + $0x60] sm:$0xff]  }
 0xd3e   : > { %v3213_v38 = vmul.f32 %v7225_v26, %v7225_v26  ;;  %3483 = vmatpush1.bf16.msra.mxu1 %v5121_v40 }
 0xd3f   : > { %3484 = vmatprep.subr.bf16.mxu1 %v5126_v23  ;;  %v7343_v23 = vld [vmem:[%s7784_s8 + $0x58] sm:$0xff]  }
 0xd40   : > { %3236 = vadd.xlane.f32.xlu1 %v3213_v38  ;;  %v7337_v38 = vld [vmem:[%s7784_s8 + $0x20] sm:$0xff]  }
 0xd42   : > { %3485 = vmatpush1.bf16.msra.mxu1 %v5124_v41 }
 0xd43   : > { %3486 = vmatprep.subr.bf16.mxu1 %v5129_v21 }
 0xd46   : > { %3487 = vmatpush1.bf16.msra.mxu1 %v5127_v56 }
 0xd47   : > { %3488 = vmatprep.subr.bf16.mxu1 %v5132_v62  ;;  %v7349_v62 = vld [vmem:[%s7784_s8 + $0x18] sm:$0xff]  }
 0xd4a   : > { %3489 = vmatpush1.bf16.msra.mxu1 %v5130_v46 }
 0xd60   : > { %v3158_v29 = vpop.xlane.xlu0 %3157 }
 0xd61   : > { %v3182_v22 = vmul.f32 0.0078125, %v3158_v29 }
 0xd63   : > { %v7257_v2 = vsub.f32 %v7136_v36, %v3182_v22 }
 0xd64   : > { %v3160_v10 = vpop.xlane.xlu1 %3159  ;;  %v3162_v37 = vpop.xlane.xlu0 %3161 }
 0xd65   : > { %v3183_v32 = vmul.f32 0.0078125, %v3160_v10  ;;  %v3184_v42 = vmul.f32 0.0078125, %v3162_v37  ;;  %v3214_v45 = vmul.f32 %v7257_v2, %v7257_v2 }
 0xd67   : > { %v7262_v52 = vsub.f32 %v7143_v15, %v3183_v32  ;;  %v7265_v0 = vsub.f32 %v7140_v63, %v3184_v42  ;;  %3238 = vadd.xlane.f32.xlu0 %v3214_v45  ;;  %v7911_v32 = vld [vmem:[#allocation4_spill] sm:$0xff] }
 0xd68   : > { %v3164_v18 = vpop.xlane.xlu1 %3163  ;;  %v7355_v42 = vrot.slane %v7090_v53, %v7911_v32 }
 0xd69   : > { %v3185_v8 = vmul.f32 0.0078125, %v3164_v18  ;;  %v3215_v36 = vmul.f32 %v7262_v52, %v7262_v52  ;;  %v3216_v39 = vmul.f32 %v7265_v0, %v7265_v0 }
 0xd6b   : > { %v7272_v1 = vsub.f32 %v7147_v61, %v3185_v8  ;;  %3240 = vadd.xlane.f32.xlu1 %v3215_v36  ;;  %3242 = vadd.xlane.f32.xlu0 %v3216_v39 }
 0xd6d   : > { %v3217_v15 = vmul.f32 %v7272_v1, %v7272_v1 }
 0xd6f   : > { %3244 = vadd.xlane.f32.xlu1 %v3217_v15 }
 0xd73   : > { %v3166_v63 = vpop.xlane.xlu0 %3165 }
 0xd74   : > { %v3186_v7 = vmul.f32 0.0078125, %v3166_v63 }
 0xd76   : > { %v7277_v58 = vsub.f32 %v7154_v16, %v3186_v7  ;;  %v7912_v7 = vld [vmem:[#allocation2_spill] sm:$0xff] }
 0xd77   : > { %v3168_v47 = vpop.xlane.xlu1 %3167  ;;  %v3170_v60 = vpop.xlane.xlu0 %3169 }
 0xd78   : > { %v3187_v4 = vmul.f32 0.0078125, %v3168_v47  ;;  %v3188_v27 = vmul.f32 0.0078125, %v3170_v60  ;;  %v3218_v9 = vmul.f32 %v7277_v58, %v7277_v58  ;;  %v7913_v47 = vsub.s32 2, %v7912_v7 }
 0xd7a   : > { %v7282_v61 = vsub.f32 %v7161_v33, %v3187_v4  ;;  %v7285_v30 = vsub.f32 %v7158_v17, %v3188_v27  ;;  %3246 = vadd.xlane.f32.xlu0 %v3218_v9  ;;  %v5133_v17 = vld [vmem:[%s7784_s8 + $0x78] sm:$0xff]   ;;  %v7361_v60 = vrot.slane %v7090_v53, %v7913_v47 }
 0xd7b   : > { %v3172_v44 = vpop.xlane.xlu1 %3171  ;;  %4617 = vmatprep.subr.bf16.mxu0 %v5133_v17  ;;  %5001 = vmatprep.subr.bf16.mxu1 %v5133_v17 }
 0xd7c   : > { %v3189_v25 = vmul.f32 0.0078125, %v3172_v44  ;;  %v3219_v16 = vmul.f32 %v7282_v61, %v7282_v61  ;;  %v3220_v48 = vmul.f32 %v7285_v30, %v7285_v30  ;;  %4618 = vmatpush3.bf16.msra.mxu0 %v7302_v43 }
 0xd7e   : > { %v7292_v55 = vsub.f32 %v7165_v13, %v3189_v25  ;;  %3248 = vadd.xlane.f32.xlu1 %v3219_v16  ;;  %3250 = vadd.xlane.f32.xlu0 %v3220_v48  ;;  %v7307_v13 = vld [vmem:[%s7784_s8 + $0x70] sm:$0xff]  }
 0xd7f   : > { %4619 = vmatprep.subr.bf16.mxu0 %v7307_v13 }
 0xd80   : > { %v3221_v33 = vmul.f32 %v7292_v55, %v7292_v55  ;;  %4620 = vmatpush3.bf16.msra.mxu0 %v7313_v50 }
 0xd81   : > { %4621 = vmatprep.subr.bf16.mxu0 %v7319_v28 }
 0xd82   : > { %3252 = vadd.xlane.f32.xlu1 %v3221_v33 }
 0xd84   : > { %4622 = vmatpush3.bf16.msra.mxu0 %v7325_v54 }
 0xd85   : > { %4623 = vmatprep.subr.bf16.mxu0 %v7331_v24 }
 0xd88   : > { %4624 = vmatpush3.bf16.msra.mxu0 %v7337_v38 }
 0xd89   : > { %4625 = vmatprep.subr.bf16.mxu0 %v7343_v23 }
 0xd8c   : > { %4626 = vmatpush3.bf16.msra.mxu0 %v7349_v62 }
 0xdb1   : > { %v3223_v57 = vpop.xlane.xlu0 %3222 }
 0xdb2   : > { %v3254_v11 = vmul.f32 0.0078125, %v3223_v57 }
 0xdb4   : > { %v3270_v49 = vadd.f32 1e-05, %v3254_v11 }
 0xdb5   : > { %v3225_v51 = vpop.xlane.xlu1 %3224  ;;  %v3227_v31 = vpop.xlane.xlu0 %3226 }
 0xdb6   : > { %5413 = vrsqrt.f32 %v3270_v49  ;;  %v3255_v19 = vmul.f32 0.0078125, %v3225_v51  ;;  %v3256_v40 = vmul.f32 0.0078125, %v3227_v31 }
 0xdb8   : > { %v3271_v41 = vadd.f32 1e-05, %v3255_v19  ;;  %v3272_v21 = vadd.f32 1e-05, %v3256_v40 }
 0xdb9   : > { %v3229_v56 = vpop.xlane.xlu1 %3228 }
 0xdba   : > { %5415 = vrsqrt.f32 %v3271_v41  ;;  %v3257_v46 = vmul.f32 0.0078125, %v3229_v56 }
 0xdbb   : > { %5417 = vrsqrt.f32 %v3272_v21 }
 0xdbc   : > { %v3273_v29 = vadd.f32 1e-05, %v3257_v46 }
 0xdbe   : > { %5419 = vrsqrt.f32 %v3273_v29 }
 0xdc1   : > { %v3231_v22 = vpop.xlane.xlu0 %3230 }
 0xdc2   : > { %v3258_v10 = vmul.f32 0.0078125, %v3231_v22 }
 0xdc3   : > { %v5414_v37 = vpop.eup %5413 }
 0xdc4   : > { %v3302_v45 = vmul.f32 %v5414_v37, %v7175_v59  ;;  %v3274_v18 = vadd.f32 1e-05, %v3258_v10 }
 0xdc5   : > { %v3233_v8 = vpop.xlane.xlu1 %3232  ;;  %v3235_v36 = vpop.xlane.xlu0 %3234 }
 0xdc6   : > { %5421 = vrsqrt.f32 %v3274_v18  ;;  %v3259_v39 = vmul.f32 0.0078125, %v3233_v8  ;;  %v3260_v15 = vmul.f32 0.0078125, %v3235_v36  ;;  %v3322_v4 = vmul.f32 %v7355_v42, %v3302_v45 }
 0xdc7   : > { %v5416_v63 = vpop.eup %5415 }
 0xdc8   : > { %v5418_v27 = vpop.eup %5417  ;;  %v3303_v9 = vmul.f32 %v5416_v63, %v7180_v35  ;;  %v3275_v44 = vadd.f32 1e-05, %v3259_v39  ;;  %v3276_v25 = vadd.f32 1e-05, %v3260_v15  ;;  %v7367_v17 = vadd.f32 %v7361_v60, %v3322_v4 }
 0xdc9   : > { %v3237_v59 = vpop.xlane.xlu1 %3236  ;;  %v3304_v57 = vmul.f32 %v5418_v27, %v7183_v14 }
 0xdca   : > { %5423 = vrsqrt.f32 %v3275_v44  ;;  %v3261_v16 = vmul.f32 0.0078125, %v3237_v59  ;;  %v3323_v48 = vmul.f32 %v7355_v42, %v3303_v9 }
 0xdcb   : > { %v5420_v33 = vpop.eup %5419  ;;  %5425 = vrsqrt.f32 %v3276_v25  ;;  %v3324_v31 = vmul.f32 %v7355_v42, %v3304_v57 }
 0xdcc   : > { %v3277_v53 = vadd.f32 1e-05, %v3261_v16  ;;  %v7371_v11 = vadd.f32 %v7361_v60, %v3323_v48  ;;  %v3305_v35 = vmul.f32 %v5420_v33, %v7190_v12 }
 0xdcd   : > { %v7385_v12 = vadd.f32 %v7361_v60, %v3324_v31 }
 0xdce   : > { %5427 = vrsqrt.f32 %v3277_v53  ;;  %v3358_v49 = vpack.c.bf16 %v7371_v11, %v7367_v17  ;;  %v3325_v51 = vmul.f32 %v7355_v42, %v3305_v35 }
 0xdd0   : > { %3507 = vmatmul.mubr.bf16.vlgmr.msra.gmra.mxu1 %v3358_v49  ;;  %v7381_v14 = vadd.f32 %v7361_v60, %v3325_v51 }
 0xdd1   : > { %3516 = vmatprep.mubr.bf16.mxu1 %v7875_v34  ;;  %5009 = vmatpush3.bf16.msra.mxu1 %v7302_v43 }
 0xdd2   : > { %5002 = vmatprep.subr.bf16.mxu1 %v7307_v13  ;;  %v3359_v41 = vpack.c.bf16 %v7381_v14, %v7385_v12 }
 0xdd3   : > { %v5422_v19 = vpop.eup %5421 }
 0xdd4   : > { %v3306_v40 = vmul.f32 %v5422_v19, %v7198_v20 }
 0xdd5   : > { %5010 = vmatpush3.bf16.msra.mxu1 %v7313_v50 }
 0xdd6   : > { %5003 = vmatprep.subr.bf16.mxu1 %v7319_v28  ;;  %v3326_v56 = vmul.f32 %v7355_v42, %v3306_v40 }
 0xdd7   : > { %v5424_v21 = vpop.eup %5423 }
 0xdd8   : > { %3517 = vmatmul.mubr.bf16.gmra.mxu1 %v3359_v41  ;;  %v3307_v43 = vmul.f32 %v5424_v21, %v7209_v3  ;;  %v5426_v13 = vpop.eup %5425  ;;  %v7399_v46 = vadd.f32 %v7361_v60, %v3326_v56 }
 0xdd9   : > { %3526 = vmatprep.mubr.bf16.mxu1 %v7875_v34  ;;  %5011 = vmatpush3.bf16.msra.mxu1 %v7325_v54  ;;  %v3308_v3 = vmul.f32 %v5426_v13, %v7212_v5 }
 0xdda   : > { %v3327_v20 = vmul.f32 %v7355_v42, %v3307_v43  ;;  %5004 = vmatprep.subr.bf16.mxu1 %v7331_v24 }
 0xddb   : > { %v5428_v50 = vpop.eup %5427  ;;  %v3328_v24 = vmul.f32 %v7355_v42, %v3308_v3 }
 0xddc   : > { %v7402_v28 = vadd.f32 %v7361_v60, %v3327_v20  ;;  %v3309_v29 = vmul.f32 %v5428_v50, %v7225_v26 }
 0xddd   : > { %5012 = vmatpush3.bf16.msra.mxu1 %v7337_v38  ;;  %v7418_v26 = vadd.f32 %v7361_v60, %v3328_v24 }
 0xdde   : > { %v3360_v54 = vpack.c.bf16 %v7402_v28, %v7399_v46  ;;  %v3329_v22 = vmul.f32 %v7355_v42, %v3309_v29  ;;  %5005 = vmatprep.subr.bf16.mxu1 %v7343_v23 }
 0xde0   : > { %3527 = vmatmul.mubr.bf16.gmra.mxu1 %v3360_v54  ;;  %v7415_v5 = vadd.f32 %v7361_v60, %v3329_v22 }
 0xde1   : > { %3536 = vmatprep.mubr.bf16.mxu1 %v7875_v34  ;;  %5013 = vmatpush3.bf16.msra.mxu1 %v7349_v62 }
 0xde2   : > { %v3361_v38 = vpack.c.bf16 %v7415_v5, %v7418_v26 }
 0xde8   : > { %3537 = vmatmul.mubr.bf16.gmra.mxu1 %v3361_v38  ;;  %v5145_v38 = vld [vmem:[%s7784_s8 + $0x48] sm:$0xff]  }
 0xde9   : > { %3546 = vmatprep.mubr.bf16.mxu1 %v7875_v34 }
 0xdf0   : > { %v3239_v23 = vpop.xlane.xlu0 %3238 }
 0xdf1   : > { %v3262_v10 = vmul.f32 0.0078125, %v3239_v23 }
 0xdf3   : > { %v3278_v37 = vadd.f32 1e-05, %v3262_v10  ;;  %v5146_v10 = vld [vmem:[%s7784_s8 + $0x8] sm:$0xff]  }
 0xdf4   : > { %v3241_v45 = vpop.xlane.xlu1 %3240  ;;  %v3243_v18 = vpop.xlane.xlu0 %3242 }
 0xdf5   : > { %5429 = vrsqrt.f32 %v3278_v37  ;;  %v3263_v8 = vmul.f32 0.0078125, %v3241_v45  ;;  %v3264_v62 = vmul.f32 0.0078125, %v3243_v18  ;;  %v5147_v45 = vld [vmem:[%s7784_s8 + $0x40] sm:$0xff]  }
 0xdf7   : > { %v3279_v36 = vadd.f32 1e-05, %v3263_v8  ;;  %v3280_v39 = vadd.f32 1e-05, %v3264_v62 }
 0xdf8   : > { %v3245_v15 = vpop.xlane.xlu1 %3244 }
 0xdf9   : > { %5431 = vrsqrt.f32 %v3279_v36  ;;  %v3265_v63 = vmul.f32 0.0078125, %v3245_v15 }
 0xdfa   : > { %5433 = vrsqrt.f32 %v3280_v39 }
 0xdfb   : > { %v3281_v47 = vadd.f32 1e-05, %v3265_v63 }
 0xdfd   : > { %5435 = vrsqrt.f32 %v3281_v47 }
 0xe02   : > { %v5430_v4 = vpop.eup %5429 }
 0xe03   : > { %v3247_v27 = vpop.xlane.xlu0 %3246  ;;  %v3310_v9 = vmul.f32 %v5430_v4, %v7257_v2 }
 0xe04   : > { %v3266_v44 = vmul.f32 0.0078125, %v3247_v27 }
 0xe05   : > { %v3330_v57 = vmul.f32 %v7355_v42, %v3310_v9 }
 0xe06   : > { %v5432_v25 = vpop.eup %5431  ;;  %v3282_v59 = vadd.f32 1e-05, %v3266_v44 }
 0xe07   : > { %v3249_v16 = vpop.xlane.xlu1 %3248  ;;  %v3251_v48 = vpop.xlane.xlu0 %3250  ;;  %v3311_v33 = vmul.f32 %v5432_v25, %v7262_v52  ;;  %v7428_v2 = vadd.f32 %v7361_v60, %v3330_v57 }
 0xe08   : > { %v5434_v53 = vpop.eup %5433  ;;  %5437 = vrsqrt.f32 %v3282_v59  ;;  %v3267_v35 = vmul.f32 0.0078125, %v3249_v16  ;;  %v3268_v49 = vmul.f32 0.0078125, %v3251_v48 }
 0xe09   : > { %v3331_v51 = vmul.f32 %v7355_v42, %v3311_v33  ;;  %v3312_v52 = vmul.f32 %v5434_v53, %v7265_v0  ;;  %v5143_v0 = vld [vmem:[%s7784_s8 + $0x50] sm:$0xff]  }
 0xe0a   : > { %v5436_v31 = vpop.eup %5435  ;;  %v3283_v19 = vadd.f32 1e-05, %v3267_v35  ;;  %v3284_v40 = vadd.f32 1e-05, %v3268_v49  ;;  %4627 = vmatprep.subr.bf16.mxu0 %v5143_v0  ;;  %5006 = vmatprep.subr.bf16.mxu1 %v5143_v0 }
 0xe0b   : > { %v3253_v41 = vpop.xlane.xlu1 %3252  ;;  %v7431_v21 = vadd.f32 %v7361_v60, %v3331_v51  ;;  %v3313_v43 = vmul.f32 %v5436_v31, %v7272_v1  ;;  %v3332_v3 = vmul.f32 %v7355_v42, %v3312_v52  ;;  %v5144_v1 = vld [vmem:[%s7784_s8 + $0x10] sm:$0xff]  }
 0xe0c   : > { %5439 = vrsqrt.f32 %v3283_v19  ;;  %v3269_v56 = vmul.f32 0.0078125, %v3253_v41  ;;  %4628 = vmatpush3.bf16.msra.mxu0 %v5144_v1  ;;  %5014 = vmatpush3.bf16.msra.mxu1 %v5144_v1 }
 0xe0d   : > { %v3362_v13 = vpack.c.bf16 %v7431_v21, %v7428_v2  ;;  %v3333_v20 = vmul.f32 %v7355_v42, %v3313_v43  ;;  %5441 = vrsqrt.f32 %v3284_v40  ;;  %v7450_v54 = vadd.f32 %v7361_v60, %v3332_v3  ;;  %4629 = vmatprep.subr.bf16.mxu0 %v5145_v38  ;;  %5007 = vmatprep.subr.bf16.mxu1 %v5145_v38 }
 0xe0e   : > { %v3285_v50 = vadd.f32 1e-05, %v3269_v56 }
 0xe0f   : > { %3547 = vmatmul.mubr.bf16.gmra.mxu1 %v3362_v13  ;;  %v7441_v29 = vadd.f32 %v7361_v60, %v3333_v20 }
 0xe10   : > { %5443 = vrsqrt.f32 %v3285_v50  ;;  %3556 = vmatprep.mubr.bf16.mxu1 %v7875_v34  ;;  %4630 = vmatpush3.bf16.msra.mxu0 %v5146_v10 }
 0xe11   : > { %v3363_v24 = vpack.c.bf16 %v7441_v29, %v7450_v54  ;;  %5015 = vmatpush3.bf16.msra.mxu1 %v5146_v10  ;;  %4631 = vmatprep.subr.bf16.mxu0 %v5147_v45 }
 0xe12   : > { %5008 = vmatprep.subr.bf16.mxu1 %v5147_v45 }
 0xe15   : > { %v5438_v22 = vpop.eup %5437 }
 0xe16   : > { %v3314_v23 = vmul.f32 %v5438_v22, %v7277_v58  ;;  %v5148_v58 = vld [vmem:[%s7784_s8] sm:$0xff]  }
 0xe17   : > { %3557 = vmatmul.mubr.bf16.gmra.mxu1 %v3363_v24  ;;  %4632 = vmatpush3.bf16.msra.mxu0 %v5148_v58 }
 0xe18   : > { %3566 = vmatprep.mubr.bf16.mxu1 %v7875_v34  ;;  %v3334_v8 = vmul.f32 %v7355_v42, %v3314_v23  ;;  %5016 = vmatpush3.bf16.msra.mxu1 %v5148_v58 }
 0xe19   : > { %v5440_v37 = vpop.eup %5439 }
 0xe1a   : > { %v3315_v18 = vmul.f32 %v5440_v37, %v7282_v61  ;;  %v5442_v62 = vpop.eup %5441  ;;  %v7472_v15 = vadd.f32 %v7361_v60, %v3334_v8 }
 0xe1b   : > { %v3316_v61 = vmul.f32 %v5442_v62, %v7285_v30 }
 0xe1c   : > { %v3335_v36 = vmul.f32 %v7355_v42, %v3315_v18 }
 0xe1d   : > { %v5444_v39 = vpop.eup %5443  ;;  %v3336_v9 = vmul.f32 %v7355_v42, %v3316_v61 }
 0xe1e   : > { %v7475_v63 = vadd.f32 %v7361_v60, %v3335_v36  ;;  %v3317_v47 = vmul.f32 %v5444_v39, %v7292_v55  ;;  %v3382_v55 = vld [vmem:[%s7783_s7] sm:$0x3] }
 0xe1f   : > { %v7488_v25 = vadd.f32 %v7361_v60, %v3336_v9  ;;  %v7496_v16 = vrot.slane %v3382_v55, %v7911_v32 }
 0xe20   : > { %v3364_v4 = vpack.c.bf16 %v7475_v63, %v7472_v15  ;;  %v3337_v27 = vmul.f32 %v7355_v42, %v3317_v47 }
 0xe22   : > { %3567 = vmatmul.mubr.bf16.gmra.mxu1 %v3364_v4  ;;  %v7485_v44 = vadd.f32 %v7361_v60, %v3337_v27 }
 0xe23   : > { %3576 = vmatprep.mubr.bf16.mxu1 %v7875_v34  ;;  %v7499_v34 = vrot.slane %v3382_v55, %v7910_v6 }
 0xe24   : > { %v3365_v30 = vpack.c.bf16 %v7485_v44, %v7488_v25 }
 0xe2a   : > { %3577 = vmatmul.mubr.bf16.gmra.mxu1 %v3365_v30 }
 0xe90   : > { %v3508_v59 = vpop.f32.mrf.mxu1 }
 0xe91   : > { %v3509_v57 = vadd.f32 %v3508_v59, %v7499_v34 }
 0xe92   : > { %v3510_v42 = vpop.f32.mrf.mxu1 }
 0xe93   : > { %v3511_v60 = vadd.f32 %v3510_v42, %v7496_v16  ;;  %v3587_v32 = vmax.f32 %v3509_v57, 0.0 }
 0xe94   : > { %v3512_v48 = vpop.f32.mrf.mxu1 }
 0xe95   : > { %v3513_v33 = vadd.f32 %v3512_v48, %v7499_v34  ;;  %v3588_v31 = vmax.f32 %v3511_v60, 0.0 }
 0xe96   : > { %v3514_v53 = vpop.f32.mrf.mxu1 }
 0xe97   : > { %v3515_v35 = vadd.f32 %v3514_v53, %v7496_v16  ;;  %v3589_v49 = vmax.f32 %v3513_v33, 0.0 }
 0xe98   : > { %v3518_v51 = vpop.f32.mrf.mxu1 }
 0xe99   : > { %v3590_v19 = vmax.f32 %v3515_v35, 0.0  ;;  %v3619_v6 = vpack.c.bf16 %v3589_v49, %v3587_v32  ;;  %v3519_v13 = vadd.f32 %v3518_v51, %v7499_v34 }
 0xe9a   : > { %v3520_v40 = vpop.f32.mrf.mxu1 }
 0xe9b   : > { %v3620_v41 = vpack.c.bf16 %v3590_v19, %v3588_v31  ;;  %v3521_v43 = vadd.f32 %v3520_v40, %v7496_v16  ;;  %v3591_v24 = vmax.f32 %v3519_v13, 0.0 }
 0xe9c   : > { %v3522_v52 = vpop.f32.mrf.mxu1 }
 0xe9d   : > { %v3523_v56 = vadd.f32 %v3522_v52, %v7499_v34  ;;  %3799 = vmatprep.mubr.bf16.mxu0 %v3620_v41  ;;  %v3592_v1 = vmax.f32 %v3521_v43, 0.0 }
 0xe9e   : > { %v3524_v20 = vpop.f32.mrf.mxu1  ;;  %3800 = vmatmul.mubr.bf16.vlgmr.msra.gmra.mxu0 %v3619_v6 }
 0xe9f   : > { %v3525_v50 = vadd.f32 %v3524_v20, %v7496_v16  ;;  %v3593_v3 = vmax.f32 %v3523_v56, 0.0 }
 0xea0   : > { %v3528_v0 = vpop.f32.mrf.mxu1 }
 0xea1   : > { %v3594_v22 = vmax.f32 %v3525_v50, 0.0  ;;  %v3621_v10 = vpack.c.bf16 %v3593_v3, %v3591_v24  ;;  %v3529_v8 = vadd.f32 %v3528_v0, %v7499_v34 }
 0xea2   : > { %v3530_v38 = vpop.f32.mrf.mxu1 }
 0xea3   : > { %v3622_v23 = vpack.c.bf16 %v3594_v22, %v3592_v1  ;;  %v3531_v45 = vadd.f32 %v3530_v38, %v7496_v16  ;;  %v3595_v4 = vmax.f32 %v3529_v8, 0.0 }
 0xea4   : > { %v3532_v37 = vpop.f32.mrf.mxu1 }
 0xea5   : > { %v3533_v18 = vadd.f32 %v3532_v37, %v7499_v34  ;;  %3807 = vmatprep.mubr.bf16.mxu0 %v3622_v23  ;;  %v3596_v61 = vmax.f32 %v3531_v45, 0.0 }
 0xea6   : > { %v3534_v58 = vpop.f32.mrf.mxu1  ;;  %3808 = vmatmul.mubr.bf16.gmra.mxu0 %v3621_v10 }
 0xea7   : > { %v3535_v62 = vadd.f32 %v3534_v58, %v7496_v16  ;;  %v3597_v36 = vmax.f32 %v3533_v18, 0.0 }
 0xea8   : > { %v3538_v39 = vpop.f32.mrf.mxu1 }
 0xea9   : > { %v3598_v47 = vmax.f32 %v3535_v62, 0.0  ;;  %v3623_v30 = vpack.c.bf16 %v3597_v36, %v3595_v4  ;;  %v3539_v48 = vadd.f32 %v3538_v39, %v7499_v34 }
 0xeaa   : > { %v3540_v27 = vpop.f32.mrf.mxu1 }
 0xeab   : > { %v3624_v9 = vpack.c.bf16 %v3598_v47, %v3596_v61  ;;  %v3541_v59 = vadd.f32 %v3540_v27, %v7496_v16  ;;  %v3599_v49 = vmax.f32 %v3539_v48, 0.0 }
 0xeac   : > { %v3542_v55 = vpop.f32.mrf.mxu1 }
 0xead   : > { %v3543_v42 = vadd.f32 %v3542_v55, %v7499_v34  ;;  %3815 = vmatprep.mubr.bf16.mxu0 %v3624_v9  ;;  %v3600_v53 = vmax.f32 %v3541_v59, 0.0 }
 0xeae   : > { %v3544_v60 = vpop.f32.mrf.mxu1  ;;  %3816 = vmatmul.mubr.bf16.gmra.mxu0 %v3623_v30 }
 0xeaf   : > { %v3545_v33 = vadd.f32 %v3544_v60, %v7496_v16  ;;  %v3601_v57 = vmax.f32 %v3543_v42, 0.0 }
 0xeb1   : > { %v3602_v35 = vmax.f32 %v3545_v33, 0.0  ;;  %v3625_v31 = vpack.c.bf16 %v3601_v57, %v3599_v49 }
 0xeb3   : > { %v3626_v51 = vpack.c.bf16 %v3602_v35, %v3600_v53 }
 0xeb5   : > { %3823 = vmatprep.mubr.bf16.mxu0 %v3626_v51 }
 0xeb6   : > { %3824 = vmatmul.mubr.bf16.gmra.mxu0 %v3625_v31 }
 0xecf   : > { %v3548_v19 = vpop.f32.mrf.mxu1 }
 0xed0   : > { %v3549_v52 = vadd.f32 %v3548_v19, %v7499_v34 }
 0xed1   : > { %v3550_v32 = vpop.f32.mrf.mxu1 }
 0xed2   : > { %v3551_v41 = vadd.f32 %v3550_v32, %v7496_v16  ;;  %v3603_v0 = vmax.f32 %v3549_v52, 0.0 }
 0xed3   : > { %v3552_v40 = vpop.f32.mrf.mxu1 }
 0xed4   : > { %v3553_v6 = vadd.f32 %v3552_v40, %v7499_v34  ;;  %v3604_v50 = vmax.f32 %v3551_v41, 0.0 }
 0xed5   : > { %v3554_v43 = vpop.f32.mrf.mxu1 }
 0xed6   : > { %v3555_v56 = vadd.f32 %v3554_v43, %v7496_v16  ;;  %v3605_v13 = vmax.f32 %v3553_v6, 0.0 }
 0xed7   : > { %v3558_v20 = vpop.f32.mrf.mxu1 }
 0xed8   : > { %v3606_v3 = vmax.f32 %v3555_v56, 0.0  ;;  %v3627_v24 = vpack.c.bf16 %v3605_v13, %v3603_v0  ;;  %v3559_v37 = vadd.f32 %v3558_v20, %v7499_v34 }
 0xed9   : > { %v3560_v1 = vpop.f32.mrf.mxu1 }
 0xeda   : > { %v3628_v22 = vpack.c.bf16 %v3606_v3, %v3604_v50  ;;  %v3561_v23 = vadd.f32 %v3560_v1, %v7496_v16  ;;  %v3607_v36 = vmax.f32 %v3559_v37, 0.0  ;;  %v3669_v3 = vsub.s32 3, %v7912_v7  ;;  %v7537_v1 = vld [vmem:[%s7785_s9] sm:$0x3f] }
 0xedb   : > { %v3562_v38 = vpop.f32.mrf.mxu1 }
 0xedc   : > { %v3563_v10 = vadd.f32 %v3562_v38, %v7499_v34  ;;  %3831 = vmatprep.mubr.bf16.mxu0 %v3628_v22  ;;  %v3608_v58 = vmax.f32 %v3561_v23, 0.0 }
 0xedd   : > { %v3564_v45 = vpop.f32.mrf.mxu1  ;;  %3832 = vmatmul.mubr.bf16.gmra.mxu0 %v3627_v24 }
 0xede   : > { %v3565_v18 = vadd.f32 %v3564_v45, %v7496_v16  ;;  %v3609_v8 = vmax.f32 %v3563_v10, 0.0 }
 0xee0   : > { %v3610_v62 = vmax.f32 %v3565_v18, 0.0  ;;  %v3629_v47 = vpack.c.bf16 %v3609_v8, %v3607_v36 }
 0xee2   : > { %v3630_v39 = vpack.c.bf16 %v3610_v62, %v3608_v58  ;;  %v3568_v61 = vpop.f32.mrf.mxu1 }
 0xee3   : > { %v3569_v55 = vadd.f32 %v3568_v61, %v7499_v34 }
 0xee4   : > { %v3570_v4 = vpop.f32.mrf.mxu1  ;;  %3839 = vmatprep.mubr.bf16.mxu0 %v3630_v39 }
 0xee5   : > { %3840 = vmatmul.mubr.bf16.gmra.mxu0 %v3629_v47  ;;  %v3571_v9 = vadd.f32 %v3570_v4, %v7496_v16  ;;  %v3611_v53 = vmax.f32 %v3569_v55, 0.0 }
 0xee6   : > { %v3572_v27 = vpop.f32.mrf.mxu1 }
 0xee7   : > { %v3573_v30 = vadd.f32 %v3572_v27, %v7499_v34  ;;  %v3612_v33 = vmax.f32 %v3571_v9, 0.0 }
 0xee8   : > { %v3574_v59 = vpop.f32.mrf.mxu1 }
 0xee9   : > { %v3575_v42 = vadd.f32 %v3574_v59, %v7496_v16  ;;  %v3613_v48 = vmax.f32 %v3573_v30, 0.0 }
 0xeea   : > { %v3578_v60 = vpop.f32.mrf.mxu1 }
 0xeeb   : > { %v3614_v57 = vmax.f32 %v3575_v42, 0.0  ;;  %v3631_v51 = vpack.c.bf16 %v3613_v48, %v3611_v53  ;;  %v3579_v40 = vadd.f32 %v3578_v60, %v7499_v34 }
 0xeec   : > { %v3580_v35 = vpop.f32.mrf.mxu1 }
 0xeed   : > { %v3632_v49 = vpack.c.bf16 %v3614_v57, %v3612_v33  ;;  %v3581_v19 = vadd.f32 %v3580_v35, %v7496_v16  ;;  %v3615_v13 = vmax.f32 %v3579_v40, 0.0 }
 0xeee   : > { %v3582_v31 = vpop.f32.mrf.mxu1 }
 0xeef   : > { %v3583_v32 = vadd.f32 %v3582_v31, %v7499_v34  ;;  %3847 = vmatprep.mubr.bf16.mxu1 %v3632_v49  ;;  %v3616_v43 = vmax.f32 %v3581_v19, 0.0  ;;  %v7540_v34 = vrot.slane %v7537_v1, %v3669_v3 }
 0xef0   : > { %v3584_v41 = vpop.f32.mrf.mxu1  ;;  %3848 = vmatmul.mubr.bf16.vlgmr.msra.gmra.mxu1 %v3631_v51 }
 0xef1   : > { %v3585_v6 = vadd.f32 %v3584_v41, %v7496_v16  ;;  %v3617_v52 = vmax.f32 %v3583_v32, 0.0 }
 0xef3   : > { %v3618_v56 = vmax.f32 %v3585_v6, 0.0  ;;  %v3633_v50 = vpack.c.bf16 %v3617_v52, %v3615_v13 }
 0xef5   : > { %v3634_v20 = vpack.c.bf16 %v3618_v56, %v3616_v43 }
 0xef7   : > { %3855 = vmatprep.mubr.bf16.mxu1 %v3634_v20 }
 0xef8   : > { %3856 = vmatmul.mubr.bf16.gmra.mxu1 %v3633_v50 }
 0xf5e   : > { %v4633_v0 = vpop.f32.mrf.mxu0 }
 0xf60   : > { %v4634_v16 = vpop.f32.mrf.mxu0 }
 0xf61   : > { %v4635_v22 = vadd.f32 %v4634_v16, %v4633_v0 }
 0xf62   : > { %v4636_v24 = vpop.f32.mrf.mxu0 }
 0xf63   : > { %v3802_v38 = vadd.f32 %v4635_v22, %v7540_v34 }
 0xf64   : > { %v4637_v23 = vpop.f32.mrf.mxu0 }
 0xf65   : > { %v4638_v10 = vadd.f32 %v4637_v23, %v4636_v24  ;;  %v7544_v37 = vadd.f32 %v3802_v38, %v7367_v17 }
 0xf66   : > { %v4639_v45 = vpop.f32.mrf.mxu0 }
 0xf67   : > { %v3805_v18 = vadd.f32 %v4638_v10, %v7540_v34  ;;  %3880 = vadd.xlane.f32.xlu0 %v7544_v37 }
 0xf68   : > { %v4640_v8 = vpop.f32.mrf.mxu0 }
 0xf69   : > { %v4641_v58 = vadd.f32 %v4640_v8, %v4639_v45  ;;  %v7549_v62 = vadd.f32 %v3805_v18, %v7371_v11 }
 0xf6a   : > { %v4642_v36 = vpop.f32.mrf.mxu0 }
 0xf6b   : > { %v3810_v39 = vadd.f32 %v4641_v58, %v7540_v34  ;;  %3882 = vadd.xlane.f32.xlu1 %v7549_v62 }
 0xf6c   : > { %v4643_v61 = vpop.f32.mrf.mxu0 }
 0xf6d   : > { %v4644_v47 = vadd.f32 %v4643_v61, %v4642_v36  ;;  %v7554_v17 = vadd.f32 %v3810_v39, %v7385_v12 }
 0xf6e   : > { %v4645_v4 = vpop.f32.mrf.mxu0 }
 0xf6f   : > { %v3813_v27 = vadd.f32 %v4644_v47, %v7540_v34  ;;  %3884 = vadd.xlane.f32.xlu0 %v7554_v17 }
 0xf70   : > { %v4646_v9 = vpop.f32.mrf.mxu0 }
 0xf71   : > { %v4647_v30 = vadd.f32 %v4646_v9, %v4645_v4  ;;  %v7559_v11 = vadd.f32 %v3813_v27, %v7381_v14 }
 0xf72   : > { %v4648_v55 = vpop.f32.mrf.mxu0 }
 0xf73   : > { %v3818_v59 = vadd.f32 %v4647_v30, %v7540_v34  ;;  %3886 = vadd.xlane.f32.xlu1 %v7559_v11 }
 0xf74   : > { %v4649_v42 = vpop.f32.mrf.mxu0 }
 0xf75   : > { %v4650_v48 = vadd.f32 %v4649_v42, %v4648_v55  ;;  %v7564_v12 = vadd.f32 %v3818_v59, %v7399_v46 }
 0xf76   : > { %v4651_v60 = vpop.f32.mrf.mxu0 }
 0xf77   : > { %v3821_v33 = vadd.f32 %v4650_v48, %v7540_v34  ;;  %3888 = vadd.xlane.f32.xlu0 %v7564_v12 }
 0xf78   : > { %v4652_v57 = vpop.f32.mrf.mxu0 }
 0xf79   : > { %v4653_v53 = vadd.f32 %v4652_v57, %v4651_v60  ;;  %v7569_v14 = vadd.f32 %v3821_v33, %v7402_v28 }
 0xf7a   : > { %v4654_v35 = vpop.f32.mrf.mxu0 }
 0xf7b   : > { %v3826_v49 = vadd.f32 %v4653_v53, %v7540_v34  ;;  %3890 = vadd.xlane.f32.xlu1 %v7569_v14 }
 0xf7c   : > { %v4655_v51 = vpop.f32.mrf.mxu0 }
 0xf7d   : > { %v4656_v31 = vadd.f32 %v4655_v51, %v4654_v35  ;;  %v7574_v46 = vadd.f32 %v3826_v49, %v7418_v26 }
 0xf7f   : > { %v3829_v19 = vadd.f32 %v4656_v31, %v7540_v34  ;;  %3892 = vadd.xlane.f32.xlu0 %v7574_v46 }
 0xf81   : > { %v7579_v32 = vadd.f32 %v3829_v19, %v7415_v5 }
 0xf83   : > { %3894 = vadd.xlane.f32.xlu1 %v7579_v32 }
 0xf9d   : > { %v4657_v28 = vpop.f32.mrf.mxu0 }
 0xf9f   : > { %v4658_v40 = vpop.f32.mrf.mxu0 }
 0xfa0   : > { %v4659_v41 = vadd.f32 %v4658_v40, %v4657_v28 }
 0xfa1   : > { %v4660_v6 = vpop.f32.mrf.mxu0 }
 0xfa2   : > { %v3834_v52 = vadd.f32 %v4659_v41, %v7540_v34 }
 0xfa3   : > { %v4661_v43 = vpop.f32.mrf.mxu0 }
 0xfa4   : > { %v4662_v56 = vadd.f32 %v4661_v43, %v4660_v6  ;;  %v7584_v26 = vadd.f32 %v3834_v52, %v7428_v2 }
 0xfa5   : > { %v4663_v13 = vpop.f32.mrf.mxu0 }
 0xfa6   : > { %v3837_v20 = vadd.f32 %v4662_v56, %v7540_v34  ;;  %3896 = vadd.xlane.f32.xlu0 %v7584_v26 }
 0xfa7   : > { %v4664_v5 = vpop.f32.mrf.mxu0 }
 0xfa8   : > { %v4665_v50 = vadd.f32 %v4664_v5, %v4663_v13  ;;  %v7589_v3 = vadd.f32 %v3837_v20, %v7431_v21 }
 0xfa9   : > { %v4666_v0 = vpop.f32.mrf.mxu0 }
 0xfaa   : > { %v3842_v16 = vadd.f32 %v4665_v50, %v7540_v34  ;;  %3898 = vadd.xlane.f32.xlu1 %v7589_v3 }
 0xfab   : > { %v4667_v22 = vpop.f32.mrf.mxu0 }
 0xfac   : > { %v4668_v24 = vadd.f32 %v4667_v22, %v4666_v0  ;;  %v7594_v2 = vadd.f32 %v3842_v16, %v7450_v54 }
 0xfae   : > { %v3845_v38 = vadd.f32 %v4668_v24, %v7540_v34  ;;  %3900 = vadd.xlane.f32.xlu0 %v7594_v2 }
 0xfb0   : > { %v4669_v23 = vpop.f32.mrf.mxu1  ;;  %v7599_v10 = vadd.f32 %v3845_v38, %v7441_v29 }
 0xfb2   : > { %3902 = vadd.xlane.f32.xlu1 %v7599_v10  ;;  %v4670_v21 = vpop.f32.mrf.mxu1 }
 0xfb3   : > { %v4671_v45 = vadd.f32 %v4670_v21, %v4669_v23 }
 0xfb4   : > { %v4672_v18 = vpop.f32.mrf.mxu1 }
 0xfb5   : > { %v3850_v8 = vadd.f32 %v4671_v45, %v7540_v34 }
 0xfb6   : > { %v4673_v58 = vpop.f32.mrf.mxu1 }
 0xfb7   : > { %v4674_v36 = vadd.f32 %v4673_v58, %v4672_v18  ;;  %v7604_v54 = vadd.f32 %v3850_v8, %v7472_v15 }
 0xfb8   : > { %v4675_v39 = vpop.f32.mrf.mxu1 }
 0xfb9   : > { %v3853_v61 = vadd.f32 %v4674_v36, %v7540_v34  ;;  %3904 = vadd.xlane.f32.xlu0 %v7604_v54 }
 0xfba   : > { %v4676_v47 = vpop.f32.mrf.mxu1 }
 0xfbb   : > { %v4677_v29 = vadd.f32 %v4676_v47, %v4675_v39  ;;  %v7609_v4 = vadd.f32 %v3853_v61, %v7475_v63 }
 0xfbc   : > { %v4678_v27 = vpop.f32.mrf.mxu1 }
 0xfbd   : > { %v3858_v9 = vadd.f32 %v4677_v29, %v7540_v34  ;;  %3906 = vadd.xlane.f32.xlu1 %v7609_v4 }
 0xfbe   : > { %v4679_v30 = vpop.f32.mrf.mxu1 }
 0xfbf   : > { %v4680_v55 = vadd.f32 %v4679_v30, %v4678_v27  ;;  %v7614_v15 = vadd.f32 %v3858_v9, %v7488_v25 }
 0xfc1   : > { %v3861_v59 = vadd.f32 %v4680_v55, %v7540_v34  ;;  %3908 = vadd.xlane.f32.xlu0 %v7614_v15 }
 0xfc3   : > { %v7619_v42 = vadd.f32 %v3861_v59, %v7485_v44 }
 0xfc5   : > { %3910 = vadd.xlane.f32.xlu1 %v7619_v42 }
 0xff0   : > { %v3881_v63 = vpop.xlane.xlu0 %3880 }
 0xff1   : > { %v3912_v48 = vmul.f32 0.0078125, %v3881_v63 }
 0xff3   : > { %v7623_v60 = vsub.f32 %v7544_v37, %v3912_v48 }
 0xff4   : > { %v3883_v33 = vpop.xlane.xlu1 %3882 }
 0xff5   : > { %v3913_v57 = vmul.f32 0.0078125, %v3883_v33  ;;  %v3944_v25 = vmul.f32 %v7623_v60, %v7623_v60 }
 0xff7   : > { %v7628_v53 = vsub.f32 %v7549_v62, %v3913_v57  ;;  %3960 = vadd.xlane.f32.xlu0 %v3944_v25 }
 0xff8   : > { %v3885_v34 = vpop.xlane.xlu0 %3884 }
 0xff9   : > { %v3914_v35 = vmul.f32 0.0078125, %v3885_v34  ;;  %v3945_v44 = vmul.f32 %v7628_v53, %v7628_v53 }
 0xffb   : > { %v7633_v49 = vsub.f32 %v7554_v17, %v3914_v35  ;;  %3962 = vadd.xlane.f32.xlu1 %v3945_v44 }
 0xffc   : > { %v3887_v37 = vpop.xlane.xlu1 %3886 }
 0xffd   : > { %v3915_v51 = vmul.f32 0.0078125, %v3887_v37  ;;  %v3946_v31 = vmul.f32 %v7633_v49, %v7633_v49 }
 0xfff   : > { %v7638_v19 = vsub.f32 %v7559_v11, %v3915_v51  ;;  %3964 = vadd.xlane.f32.xlu0 %v3946_v31 }
0x1000   : > { %v3889_v62 = vpop.xlane.xlu0 %3888 }
0x1001   : > { %v3916_v28 = vmul.f32 0.0078125, %v3889_v62  ;;  %v3947_v40 = vmul.f32 %v7638_v19, %v7638_v19 }
0x1003   : > { %v7643_v41 = vsub.f32 %v7564_v12, %v3916_v28  ;;  %3966 = vadd.xlane.f32.xlu1 %v3947_v40  ;;  %v4058_v40 = vsub.s32 4, %v7912_v7 }
0x1004   : > { %v3891_v17 = vpop.xlane.xlu1 %3890 }
0x1005   : > { %v3917_v6 = vmul.f32 0.0078125, %v3891_v17  ;;  %v3948_v52 = vmul.f32 %v7643_v41, %v7643_v41 }
0x1007   : > { %v7648_v43 = vsub.f32 %v7569_v14, %v3917_v6  ;;  %3968 = vadd.xlane.f32.xlu0 %v3948_v52 }
0x1008   : > { %v3893_v11 = vpop.xlane.xlu0 %3892 }
0x1009   : > { %v3918_v56 = vmul.f32 0.0078125, %v3893_v11  ;;  %v3949_v13 = vmul.f32 %v7648_v43, %v7648_v43 }
0x100b   : > { %v7653_v20 = vsub.f32 %v7574_v46, %v3918_v56  ;;  %3970 = vadd.xlane.f32.xlu1 %v3949_v13  ;;  %v7704_v56 = vrot.slane %v7537_v1, %v4058_v40  ;;  %v4078_v13 = vsub.s32 5, %v7912_v7 }
0x100c   : > { %v3895_v12 = vpop.xlane.xlu1 %3894 }
0x100d   : > { %v3919_v5 = vmul.f32 0.0078125, %v3895_v12  ;;  %v3950_v50 = vmul.f32 %v7653_v20, %v7653_v20 }
0x100f   : > { %v7658_v0 = vsub.f32 %v7579_v32, %v3919_v5  ;;  %3972 = vadd.xlane.f32.xlu0 %v3950_v50 }
0x1011   : > { %v3951_v14 = vmul.f32 %v7658_v0, %v7658_v0 }
0x1013   : > { %3974 = vadd.xlane.f32.xlu1 %v3951_v14 }
0x102f   : > { %v3897_v16 = vpop.xlane.xlu0 %3896 }
0x1030   : > { %v3920_v22 = vmul.f32 0.0078125, %v3897_v16 }
0x1032   : > { %v7663_v24 = vsub.f32 %v7584_v26, %v3920_v22  ;;  %v7709_v22 = vrot.slane %v7537_v1, %v4078_v13 }
0x1033   : > { %v3899_v46 = vpop.xlane.xlu1 %3898 }
0x1034   : > { %v3921_v38 = vmul.f32 0.0078125, %v3899_v46  ;;  %v3952_v23 = vmul.f32 %v7663_v24, %v7663_v24 }
0x1036   : > { %v7668_v21 = vsub.f32 %v7589_v3, %v3921_v38  ;;  %3976 = vadd.xlane.f32.xlu0 %v3952_v23 }
0x1037   : > { %v3901_v32 = vpop.xlane.xlu0 %3900 }
0x1038   : > { %v3922_v45 = vmul.f32 0.0078125, %v3901_v32  ;;  %v3953_v18 = vmul.f32 %v7668_v21, %v7668_v21 }
0x103a   : > { %v7673_v8 = vsub.f32 %v7594_v2, %v3922_v45  ;;  %3978 = vadd.xlane.f32.xlu1 %v3953_v18 }
0x103b   : > { %v3903_v26 = vpop.xlane.xlu1 %3902 }
0x103c   : > { %v3923_v58 = vmul.f32 0.0078125, %v3903_v26  ;;  %v3954_v36 = vmul.f32 %v7673_v8, %v7673_v8 }
0x103e   : > { %v7678_v39 = vsub.f32 %v7599_v10, %v3923_v58  ;;  %3980 = vadd.xlane.f32.xlu0 %v3954_v36 }
0x1040   : > { %v3955_v3 = vmul.f32 %v7678_v39, %v7678_v39 }
0x1042   : > { %3982 = vadd.xlane.f32.xlu1 %v3955_v3  ;;  %v3905_v61 = vpop.xlane.xlu0 %3904 }
0x1043   : > { %v3924_v47 = vmul.f32 0.0078125, %v3905_v61 }
0x1045   : > { %v7683_v29 = vsub.f32 %v7604_v54, %v3924_v47 }
0x1046   : > { %v3907_v2 = vpop.xlane.xlu1 %3906 }
0x1047   : > { %v3925_v27 = vmul.f32 0.0078125, %v3907_v2  ;;  %v3956_v9 = vmul.f32 %v7683_v29, %v7683_v29 }
0x1049   : > { %v7688_v30 = vsub.f32 %v7609_v4, %v3925_v27  ;;  %3984 = vadd.xlane.f32.xlu0 %v3956_v9 }
0x104a   : > { %v3909_v10 = vpop.xlane.xlu0 %3908 }
0x104b   : > { %v3926_v55 = vmul.f32 0.0078125, %v3909_v10  ;;  %v3957_v59 = vmul.f32 %v7688_v30, %v7688_v30 }
0x104d   : > { %v7693_v63 = vsub.f32 %v7614_v15, %v3926_v55  ;;  %3986 = vadd.xlane.f32.xlu1 %v3957_v59 }
0x104e   : > { %v3911_v54 = vpop.xlane.xlu1 %3910 }
0x104f   : > { %v3927_v48 = vmul.f32 0.0078125, %v3911_v54  ;;  %v3958_v33 = vmul.f32 %v7693_v63, %v7693_v63 }
0x1051   : > { %v7698_v57 = vsub.f32 %v7619_v42, %v3927_v48  ;;  %3988 = vadd.xlane.f32.xlu0 %v3958_v33 }
0x1053   : > { %v3959_v4 = vmul.f32 %v7698_v57, %v7698_v57 }
0x1055   : > { %3990 = vadd.xlane.f32.xlu1 %v3959_v4 }
0x1080   : > { %v3961_v25 = vpop.xlane.xlu0 %3960 }
0x1081   : > { %v3992_v34 = vmul.f32 0.0078125, %v3961_v25 }
0x1083   : > { %v4008_v35 = vadd.f32 1e-05, %v3992_v34 }
0x1084   : > { %v3963_v44 = vpop.xlane.xlu1 %3962 }
0x1085   : > { %5445 = vrsqrt.f32 %v4008_v35  ;;  %v3993_v15 = vmul.f32 0.0078125, %v3963_v44 }
0x1087   : > { %v4009_v37 = vadd.f32 1e-05, %v3993_v15 }
0x1088   : > { %v3965_v51 = vpop.xlane.xlu0 %3964 }
0x1089   : > { %5447 = vrsqrt.f32 %v4009_v37  ;;  %v3994_v31 = vmul.f32 0.0078125, %v3965_v51 }
0x108b   : > { %v4010_v62 = vadd.f32 1e-05, %v3994_v31 }
0x108c   : > { %v3967_v28 = vpop.xlane.xlu1 %3966 }
0x108d   : > { %5449 = vrsqrt.f32 %v4010_v62  ;;  %v3995_v42 = vmul.f32 0.0078125, %v3967_v28 }
0x108f   : > { %v4011_v17 = vadd.f32 1e-05, %v3995_v42 }
0x1090   : > { %v3969_v6 = vpop.xlane.xlu0 %3968 }
0x1091   : > { %5451 = vrsqrt.f32 %v4011_v17  ;;  %v3996_v52 = vmul.f32 0.0078125, %v3969_v6 }
0x1092   : > { %v5446_v11 = vpop.eup %5445 }
0x1093   : > { %v4040_v12 = vmul.f32 %v5446_v11, %v7623_v60  ;;  %v4012_v5 = vadd.f32 1e-05, %v3996_v52 }
0x1094   : > { %v3971_v50 = vpop.xlane.xlu1 %3970 }
0x1095   : > { %5453 = vrsqrt.f32 %v4012_v5  ;;  %v3997_v14 = vmul.f32 0.0078125, %v3971_v50  ;;  %v4060_v46 = vmul.f32 %v7704_v56, %v4040_v12 }
0x1096   : > { %v5448_v16 = vpop.eup %5447 }
0x1097   : > { %v4041_v38 = vmul.f32 %v5448_v16, %v7628_v53  ;;  %v4013_v23 = vadd.f32 1e-05, %v3997_v14  ;;  %v4080_v18 = vadd.f32 %v7709_v22, %v4060_v46 }
0x1098   : > { %v3973_v32 = vpop.xlane.xlu0 %3972 }
0x1099   : > { %v4061_v45 = vmul.f32 %v7704_v56, %v4041_v38  ;;  %5455 = vrsqrt.f32 %v4013_v23  ;;  %v3998_v7 = vmul.f32 0.0078125, %v3973_v32 }
0x109a   : > { %v5450_v60 = vpop.eup %5449 }
0x109b   : > { %v4081_v26 = vadd.f32 %v7709_v22, %v4061_v45  ;;  %v4042_v58 = vmul.f32 %v5450_v60, %v7633_v49  ;;  %v4014_v36 = vadd.f32 1e-05, %v3998_v7 }
0x109c   : > { %v3975_v1 = vpop.xlane.xlu1 %3974 }
0x109d   : > { %v4413_v53 = vpack.c.bf16 %v4081_v26, %v4080_v18  ;;  %5457 = vrsqrt.f32 %v4014_v36  ;;  %v3999_v3 = vmul.f32 0.0078125, %v3975_v1  ;;  %v4062_v47 = vmul.f32 %v7704_v56, %v4042_v58 }
0x109e   : > { %v5452_v61 = vpop.eup %5451 }
0x109f   : > { %4414 = vst [vmem:[%s7722_s16] sm:$0xff] %v4413_v53   ;;  %v4043_v2 = vmul.f32 %v5452_v61, %v7638_v19  ;;  %v4015_v49 = vadd.f32 1e-05, %v3999_v3  ;;  %v4082_v10 = vadd.f32 %v7709_v22, %v4062_v47 }
0x10a1   : > { %v4063_v27 = vmul.f32 %v7704_v56, %v4043_v2  ;;  %5459 = vrsqrt.f32 %v4015_v49 }
0x10a2   : > { %v5454_v9 = vpop.eup %5453 }
0x10a3   : > { %v4083_v55 = vadd.f32 %v7709_v22, %v4063_v27  ;;  %v4044_v59 = vmul.f32 %v5454_v9, %v7643_v41 }
0x10a5   : > { %v4418_v54 = vpack.c.bf16 %v4083_v55, %v4082_v10  ;;  %v4064_v33 = vmul.f32 %v7704_v56, %v4044_v59 }
0x10a6   : > { %v5456_v48 = vpop.eup %5455 }
0x10a7   : > { %4450 = vst [vmem:[%s7722_s16 + $0x8] sm:$0xff] %v4418_v54   ;;  %v4045_v19 = vmul.f32 %v5456_v48, %v7648_v43  ;;  %v4084_v34 = vadd.f32 %v7709_v22, %v4064_v33 }
0x10a9   : > { %v4065_v4 = vmul.f32 %v7704_v56, %v4045_v19 }
0x10aa   : > { %v5458_v25 = vpop.eup %5457 }
0x10ab   : > { %v4085_v35 = vadd.f32 %v7709_v22, %v4065_v4  ;;  %v4046_v44 = vmul.f32 %v5458_v25, %v7653_v20 }
0x10ad   : > { %v4423_v15 = vpack.c.bf16 %v4085_v35, %v4084_v34  ;;  %v4066_v41 = vmul.f32 %v7704_v56, %v4046_v44 }
0x10ae   : > { %v5460_v37 = vpop.eup %5459 }
0x10af   : > { %4451 = vst [vmem:[%s7722_s16 + $0x10] sm:$0xff] %v4423_v15   ;;  %v4047_v51 = vmul.f32 %v5460_v37, %v7658_v0  ;;  %v4086_v43 = vadd.f32 %v7709_v22, %v4066_v41 }
0x10b1   : > { %v4067_v31 = vmul.f32 %v7704_v56, %v4047_v51 }
0x10b3   : > { %v4087_v62 = vadd.f32 %v7709_v22, %v4067_v31 }
0x10b5   : > { %v4428_v28 = vpack.c.bf16 %v4087_v62, %v4086_v43 }
0x10b7   : > { %4452 = vst [vmem:[%s7722_s16 + $0x18] sm:$0xff] %v4428_v28  }
0x10bf   : > { %v3977_v42 = vpop.xlane.xlu0 %3976 }
0x10c0   : > { %v4000_v40 = vmul.f32 0.0078125, %v3977_v42 }
0x10c2   : > { %v4016_v17 = vadd.f32 1e-05, %v4000_v40 }
0x10c3   : > { %v3979_v6 = vpop.xlane.xlu1 %3978 }
0x10c4   : > { %5461 = vrsqrt.f32 %v4016_v17  ;;  %v4001_v20 = vmul.f32 0.0078125, %v3979_v6 }
0x10c6   : > { %v4017_v52 = vadd.f32 1e-05, %v4001_v20 }
0x10c7   : > { %v3981_v11 = vpop.xlane.xlu0 %3980 }
0x10c8   : > { %5463 = vrsqrt.f32 %v4017_v52  ;;  %v4002_v13 = vmul.f32 0.0078125, %v3981_v11 }
0x10ca   : > { %v4018_v12 = vadd.f32 1e-05, %v4002_v13 }
0x10cb   : > { %v3983_v0 = vpop.xlane.xlu1 %3982 }
0x10cc   : > { %5465 = vrsqrt.f32 %v4018_v12  ;;  %v4003_v5 = vmul.f32 0.0078125, %v3983_v0 }
0x10ce   : > { %v4019_v50 = vadd.f32 1e-05, %v4003_v5 }
0x10d0   : > { %5467 = vrsqrt.f32 %v4019_v50 }
0x10d1   : > { %v5462_v14 = vpop.eup %5461 }
0x10d2   : > { %v4048_v16 = vmul.f32 %v5462_v14, %v7663_v24  ;;  %v3985_v46 = vpop.xlane.xlu0 %3984 }
0x10d3   : > { %v4004_v38 = vmul.f32 0.0078125, %v3985_v46 }
0x10d4   : > { %v4068_v45 = vmul.f32 %v7704_v56, %v4048_v16 }
0x10d5   : > { %v5464_v23 = vpop.eup %5463  ;;  %v4020_v32 = vadd.f32 1e-05, %v4004_v38 }
0x10d6   : > { %v4049_v7 = vmul.f32 %v5464_v23, %v7668_v21  ;;  %v3987_v60 = vpop.xlane.xlu1 %3986  ;;  %v4088_v1 = vadd.f32 %v7709_v22, %v4068_v45 }
0x10d7   : > { %5469 = vrsqrt.f32 %v4020_v32  ;;  %v4005_v18 = vmul.f32 0.0078125, %v3987_v60 }
0x10d8   : > { %v4069_v26 = vmul.f32 %v7704_v56, %v4049_v7 }
0x10d9   : > { %v5466_v58 = vpop.eup %5465  ;;  %v4021_v36 = vadd.f32 1e-05, %v4005_v18 }
0x10da   : > { %v4089_v24 = vadd.f32 %v7709_v22, %v4069_v26  ;;  %v4050_v53 = vmul.f32 %v5466_v58, %v7673_v8  ;;  %v3989_v3 = vpop.xlane.xlu0 %3988 }
0x10db   : > { %5471 = vrsqrt.f32 %v4021_v36  ;;  %v4006_v61 = vmul.f32 0.0078125, %v3989_v3 }
0x10dc   : > { %v4433_v47 = vpack.c.bf16 %v4089_v24, %v4088_v1  ;;  %v4070_v49 = vmul.f32 %v7704_v56, %v4050_v53 }
0x10dd   : > { %v5468_v2 = vpop.eup %5467  ;;  %v4022_v21 = vadd.f32 1e-05, %v4006_v61 }
0x10de   : > { %4453 = vst [vmem:[%s7722_s16 + $0x20] sm:$0xff] %v4433_v47   ;;  %v4051_v27 = vmul.f32 %v5468_v2, %v7678_v39  ;;  %v3991_v9 = vpop.xlane.xlu1 %3990  ;;  %v4090_v8 = vadd.f32 %v7709_v22, %v4070_v49 }
0x10df   : > { %5473 = vrsqrt.f32 %v4022_v21  ;;  %v4007_v10 = vmul.f32 0.0078125, %v3991_v9 }
0x10e0   : > { %v4071_v55 = vmul.f32 %v7704_v56, %v4051_v27 }
0x10e1   : > { %v4023_v59 = vadd.f32 1e-05, %v4007_v10 }
0x10e2   : > { %v4091_v54 = vadd.f32 %v7709_v22, %v4071_v55 }
0x10e3   : > { %5475 = vrsqrt.f32 %v4023_v59 }
0x10e4   : > { %v5470_v48 = vpop.eup %5469  ;;  %v4438_v33 = vpack.c.bf16 %v4091_v54, %v4090_v8 }
0x10e5   : > { %v4052_v19 = vmul.f32 %v5470_v48, %v7683_v29 }
0x10e6   : > { %4454 = vst [vmem:[%s7722_s16 + $0x28] sm:$0xff] %v4438_v33  }
0x10e7   : > { %v4072_v39 = vmul.f32 %v7704_v56, %v4052_v19 }
0x10e8   : > { %v5472_v4 = vpop.eup %5471 }
0x10e9   : > { %v4053_v25 = vmul.f32 %v5472_v4, %v7688_v30  ;;  %v4092_v44 = vadd.f32 %v7709_v22, %v4072_v39 }
0x10eb   : > { %v4073_v34 = vmul.f32 %v7704_v56, %v4053_v25 }
0x10ec   : > { %v5474_v35 = vpop.eup %5473 }
0x10ed   : > { %v4093_v15 = vadd.f32 %v7709_v22, %v4073_v34  ;;  %v4054_v37 = vmul.f32 %v5474_v35, %v7693_v63 }
0x10ef   : > { %v4443_v41 = vpack.c.bf16 %v4093_v15, %v4092_v44  ;;  %v4074_v29 = vmul.f32 %v7704_v56, %v4054_v37 }
0x10f0   : > { %v5476_v51 = vpop.eup %5475 }
0x10f1   : > { %4455 = vst [vmem:[%s7722_s16 + $0x30] sm:$0xff] %v4443_v41   ;;  %v4055_v31 = vmul.f32 %v5476_v51, %v7698_v57  ;;  %v4094_v30 = vadd.f32 %v7709_v22, %v4074_v29 }
0x10f3   : > { %v4075_v43 = vmul.f32 %v7704_v56, %v4055_v31 }
0x10f5   : > { %v4095_v62 = vadd.f32 %v7709_v22, %v4075_v43 }
0x10f7   : > { %v4448_v28 = vpack.c.bf16 %v4095_v62, %v4094_v30 }
0x10f9   : > { %4456 = vst [vmem:[%s7722_s16 + $0x38] sm:$0xff] %v4448_v28  }
0x10fa PF: > { %s20_s13 = sadd.s32 1, %s5508_s13  }
0x10fb   : > { %p17_p4 = scmp.ge.s32.totalorder %s20_s13, 6  }
0x10fd   :  { %19 = sbr.rel (!%p17_p4) target bundleno = 1 (0x1), region = 96 }

</bundles_post_ra>
